<compile_context>
chip_gen: v6e
topology: v6e:2x2x1
jax: 0.10.0
libtpu: 0.0.40
codegen_flags: <defaults>
</compile_context>

<pallas_src>
import jax
import jax.numpy as jnp
from jax import lax
from jax.experimental import pallas as pl
from jax.experimental.pallas import tpu as pltpu

# ----------------------------- problem sizes --------------------------------
B = 4                     # demo batch
BQ = 8                    # query-tile rows (one sublane tile)
DOF = 7                   # robot_world.kinematics.get_dof()
N_SPHERES = 8             # link_spheres.shape[0]
LANE_PAD = 128            # lane-dense output width
FEATURE_DIMS = N_SPHERES * 5 + 7 + 1           # 48
FINAL_FEATURE_DIMS = FEATURE_DIMS + 1 + 7      # 56

# synthetic obstacle (baked into the kernel as splat constants)
_OBS_X, _OBS_Y, _OBS_Z = 0.3, 0.0, 0.3
_OBS_R = 0.1


# --------------------------- fused Pallas kernel -----------------------------
def _mmb(a, w):
    """bf16-weight matmul with f32 accumulation (cast only at the dot input)."""
    return jnp.dot(a.astype(jnp.bfloat16), w, preferred_element_type=jnp.float32)


def _curobo_fused_kernel(
    x_ref,        # (BQ, 16)  f32  [px,py,pz,qw,qx,qy,qz,0, px,py,pz,0, qw,qx,qy,qz]
    wfeat,        # (1040, 512) bf16  [fw1(16 rows, 7 used) | fw2(512) | fw3(512)]
    bfeat,        # (3, 512)  f32   rows = fb1, fb2, fb3
    w4,           # (512, 8)  bf16  feature_mlp last layer (DOF padded 7->8)
    wworld,       # (8, 32)   bf16  [fk_x(8)|fk_y(8)|fk_z(8)|ee_pos(4)|ee_quat(4)]
    gcxyz,        # (24, 256) bf16  final layer-1 rows for sphere centers
    gsdf,         # (8, 256)  bf16  final layer-1 rows for sdf feature
    gep,          # (4, 256)  bf16  final layer-1 rows for ee_pos (row 3 zero)
    geq,          # (4, 256)  bf16  final layer-1 rows for ee_quat
    gxpose,       # (8, 256)  bf16  final layer-1 rows for [x_pos(3)+pad, x_quat(4)]
    gw2,          # (256, 256) bf16
    gw3,          # (256, 64)  bf16
    gw4,          # (64, 128)  bf16 (DOF padded to 128 lanes, pads zero)
    c,            # (24, 256)  f32 constants slab (see prepare_kernel_args)
    o_ref):       # (BQ, 128)  f32 out; [:, :DOF] is the real result
    x = x_ref[...]                                              # (BQ, 16)

    # ---------------- feature_mlp: (Linear,ReLU6)x3, Linear, Tanh, *scale ----
    h = jnp.clip(_mmb(x, wfeat[0:16, :]) + bfeat[0:1, :], 0.0, 6.0)
    h = jnp.clip(_mmb(h, wfeat[16:528, :]) + bfeat[1:2, :], 0.0, 6.0)
    h = jnp.clip(_mmb(h, wfeat[528:1040, :]) + bfeat[2:3, :], 0.0, 6.0)
    # 8-lane intermediate only (lane 7 exactly 0); bound_scale applied here
    q8 = c[1:2, 0:8] * jnp.tanh(_mmb(h, w4[...]) + c[0:1, 0:8])  # (BQ, 8)

    # ---------------- synthetic get_features: fused FK + EE (one K=8 push) ---
    fk = _mmb(q8, wworld[...])                                  # (BQ, 32)
    cxyz = jnp.tanh(fk[:, 0:24])                                # sphere centers
    cx = cxyz[:, 0:8]
    cy = cxyz[:, 8:16]
    cz = cxyz[:, 16:24]
    ee_pos = jnp.tanh(fk[:, 24:28])                             # lane 3 == 0
    ee_q = fk[:, 28:32] + c[2:3, 0:4]                           # + b_ee_quat
    ee_quat = ee_q * lax.rsqrt(
        jnp.sum(ee_q * ee_q, axis=-1, keepdims=True) + 1e-12)

    # signed distance of each sphere to the obstacle
    radii = c[3:4, 0:8]
    dxo = cx - _OBS_X
    dyo = cy - _OBS_Y
    dzo = cz - _OBS_Z
    q_sdf = jnp.sqrt(dxo * dxo + dyo * dyo + dzo * dzo) - radii - _OBS_R

    # self-collision: independent per-sphere penetration planes + balanced tree
    rsum = c[4:12, 0:8]                                         # diag = -1e9
    pens = []
    for j in range(N_SPHERES):
        dx = cx - cx[:, j:j + 1]
        dy = cy - cy[:, j:j + 1]
        dz = cz - cz[:, j:j + 1]
        dj = jnp.sqrt(dx * dx + dy * dy + dz * dz)
        pens.append(jnp.maximum(rsum[j:j + 1, :] - dj, 0.0))
    while len(pens) > 1:                                        # depth-3 max tree
        pens = [jnp.maximum(pens[k], pens[k + 1]) for k in range(0, len(pens), 2)]
    q_self = jnp.max(pens[0], axis=-1, keepdims=True)           # (BQ, 1)

    # pose distance to x_des (lane-3 pads are exact zeros on both sides)
    xp = x[:, 8:12]
    xq = x[:, 12:16]
    dp = ee_pos - xp
    pd_pos = jnp.sqrt(jnp.sum(dp * dp, axis=-1, keepdims=True))
    pd_rot = 1.0 - jnp.abs(jnp.sum(ee_quat * xq, axis=-1, keepdims=True))
    pose_d = pd_pos + pd_rot                                    # (BQ, 1)

    # ---------------- final_mlp ----------------------------------------------
    # layer 1 as a sum of partial matmuls (== concat(features) @ W1); the
    # constant radii feature block is pre-folded into the bias (c row 12).
    h = (_mmb(cxyz, gcxyz[...])
         + _mmb(q_sdf, gsdf[...])
         + _mmb(ee_pos, gep[...])
         + _mmb(ee_quat, geq[...])
         + _mmb(x[:, 8:16], gxpose[...])
         + q_self * c[15:16, :]
         + pose_d * c[16:17, :]
         + c[12:13, :])
    h = jnp.clip(h, 0.0, 6.0)
    h = jnp.clip(_mmb(h, gw2[...]) + c[13:14, :], 0.0, 6.0)       # (BQ, 256)
    h = jnp.clip(_mmb(h, gw3[...]) + c[14:15, 0:64], 0.0, 6.0)    # (BQ, 64)
    # lane-dense, unmasked final store; padded lanes are exactly 0
    o_ref[...] = c[17:18, 0:128] * jnp.tanh(_mmb(h, gw4[...]) + c[14:15, 128:256])


def _fused_forward(x_in, *kargs):
    bpad = x_in.shape[0]
    nt = bpad // BQ
    flops = nt * 2 * BQ * (16 * 512 + 512 * 512 + 512 * 512 + 512 * 8   # feature_mlp
                           + 8 * 32                                      # fused FK/EE
                           + 24 * 256 + 8 * 256 + 4 * 256 + 4 * 256 + 8 * 256
                           + 256 * 256 + 256 * 64 + 64 * 128)            # final_mlp
    bytes_accessed = int(x_in.size) * 4 + bpad * LANE_PAD * 4
    bytes_accessed += sum(int(a.size) * a.dtype.itemsize for a in kargs)
    ce = pl.CostEstimate(flops=int(flops), transcendentals=int(nt * BQ * 400),
                         bytes_accessed=int(bytes_accessed))

    def w_spec(a):
        # constant index_map -> weights stay VMEM-resident across query tiles
        return pl.BlockSpec(a.shape, lambda i: (0, 0))

    return pl.pallas_call(
        _curobo_fused_kernel,
        out_shape=jax.ShapeDtypeStruct((bpad, LANE_PAD), jnp.float32),
        grid=(nt,),
        in_specs=[pl.BlockSpec((BQ, 16), lambda i: (i, 0))]
                 + [w_spec(a) for a in kargs],
        out_specs=pl.BlockSpec((BQ, LANE_PAD), lambda i: (i, 0)),
        compiler_params=pltpu.CompilerParams(
            dimension_semantics=("parallel",)),
        cost_estimate=ce,
    )(x_in, *kargs)


# ------------------- synthetic RobotWorld (parameter factory) ----------------
def make_world(key):
    k = jax.random.split(key, 5)
    return {
        "bound_scale": jnp.array([2.8, 1.7, 2.8, 3.0, 2.8, 3.7, 2.8],
                                 dtype=jnp.float32)[:DOF],
        # synthetic FK: q -> sphere centers, stored per coordinate
        "w_fk_x": 0.3 * jax.random.normal(k[0], (DOF, N_SPHERES), jnp.float32),
        "w_fk_y": 0.3 * jax.random.normal(k[1], (DOF, N_SPHERES), jnp.float32),
        "w_fk_z": 0.3 * jax.random.normal(k[2], (DOF, N_SPHERES), jnp.float32),
        "radii": (0.05 + 0.01 * jnp.arange(N_SPHERES, dtype=jnp.float32)),
        "w_ee_pos": 0.3 * jax.random.normal(k[3], (DOF, 3), jnp.float32),
        "w_ee_quat": 0.3 * jax.random.normal(k[4], (DOF, 4), jnp.float32),
        "b_ee_quat": jnp.array([1.0, 0.0, 0.0, 0.0], dtype=jnp.float32),
    }


# --------------------------- parameter init ----------------------------------
def _init_linear(key, fan_in, fan_out):
    kw, kb = jax.random.split(key)
    bound = 1.0 / jnp.sqrt(jnp.float32(fan_in))
    w = jax.random.uniform(kw, (fan_in, fan_out), jnp.float32, -bound, bound)
    b = jax.random.uniform(kb, (fan_out,), jnp.float32, -bound, bound)
    return w, b


# (name, #rows) blocks of final_mlp's first Linear(56, 256), in feature order
_BLOCK_ROWS = (("cx", 8), ("cy", 8), ("cz", 8), ("radii", 8), ("sdf", 8),
               ("self", 1), ("ee_pos", 3), ("ee_quat", 4), ("pose_d", 1),
               ("x_pos", 3), ("x_quat", 4))
assert sum(r for _, r in _BLOCK_ROWS) == FINAL_FEATURE_DIMS


def init_params(key):
    feat_dims = [(7, 512), (512, 512), (512, 512), (512, DOF)]
    final_rest_dims = [(256, 256), (256, 64), (64, DOF)]
    n_keys = len(feat_dims) + len(_BLOCK_ROWS) + 1 + len(final_rest_dims)
    keys = list(jax.random.split(key, n_keys))

    feature_mlp = [_init_linear(keys.pop(0), *d) for d in feat_dims]

    bound1 = 1.0 / jnp.sqrt(jnp.float32(FINAL_FEATURE_DIMS))
    final_blocks = {
        name: jax.random.uniform(keys.pop(0), (rows, 256), jnp.float32,
                                 -bound1, bound1)
        for name, rows in _BLOCK_ROWS
    }
    final_b1 = jax.random.uniform(keys.pop(0), (256,), jnp.float32,
                                  -bound1, bound1)
    final_rest = [_init_linear(keys.pop(0), *d) for d in final_rest_dims]
    return {"feature_mlp": feature_mlp, "final_blocks": final_blocks,
            "final_b1": final_b1, "final_rest": final_rest}


# ------------------- one-time kernel-argument preparation --------------------
def prepare_kernel_args(params, world):
    """Pad / cast / fold / pack parameters into the fused kernel's arguments."""
    bf16, f32 = jnp.bfloat16, jnp.float32
    (w1, b1), (w2, b2), (w3, b3), (w4, b4) = params["feature_mlp"]
    blocks = params["final_blocks"]
    fb1v = params["final_b1"]
    (gw2, gb2), (gw3, gb3), (gw4, gb4) = params["final_rest"]
    radii = world["radii"].astype(f32)
    bscale = world["bound_scale"].reshape(-1).astype(f32)          # (7,)

    # --- feature_mlp: layers 1-3 stacked into one bf16 slab ---
    fw1_16 = jnp.zeros((16, 512), f32).at[0:DOF, :].set(w1)        # rows 7..15 zero
    w_feat = jnp.concatenate([fw1_16, w2, w3], axis=0).astype(bf16)  # (1040, 512)
    b_feat = jnp.stack([b1, b2, b3], axis=0).astype(f32)           # (3, 512)
    w4_8 = jnp.zeros((512, 8), f32).at[:, 0:DOF].set(w4).astype(bf16)

    # --- synthetic RobotWorld: fused FK + EE weights (bf16, K=8) ---
    w_world = jnp.zeros((8, 32), f32)
    w_world = w_world.at[0:DOF, 0:8].set(world["w_fk_x"])
    w_world = w_world.at[0:DOF, 8:16].set(world["w_fk_y"])
    w_world = w_world.at[0:DOF, 16:24].set(world["w_fk_z"])
    w_world = w_world.at[0:DOF, 24:27].set(world["w_ee_pos"])      # col 27 zero
    w_world = w_world.at[0:DOF, 28:32].set(world["w_ee_quat"])
    w_world = w_world.astype(bf16)

    # --- final_mlp layer-1 blocks (radii block folded into the bias) ---
    g_cxyz = jnp.concatenate(
        [blocks["cx"], blocks["cy"], blocks["cz"]], axis=0).astype(bf16)  # (24,256)
    g_sdf = blocks["sdf"].astype(bf16)                             # (8, 256)
    g_ep = jnp.zeros((4, 256), f32).at[0:3, :].set(blocks["ee_pos"]).astype(bf16)
    g_eq = blocks["ee_quat"].astype(bf16)                          # (4, 256)
    g_xpose = jnp.zeros((8, 256), f32)
    g_xpose = g_xpose.at[0:3, :].set(blocks["x_pos"])
    g_xpose = g_xpose.at[4:8, :].set(blocks["x_quat"])
    g_xpose = g_xpose.astype(bf16)

    # --- final_mlp layers 2..4 ---
    gw2b = gw2.astype(bf16)                                        # (256, 256)
    gw3b = gw3.astype(bf16)                                        # (256, 64)
    gw4_128 = jnp.zeros((64, 128), f32).at[:, 0:DOF].set(gw4).astype(bf16)

    # --- single f32 constants slab (24, 256) ---
    rsum = radii[:, None] + radii[None, :]
    rsum = jnp.where(jnp.eye(N_SPHERES, dtype=bool), -1e9, rsum).astype(f32)
    gb1_folded = fb1v + radii @ blocks["radii"]

    consts = jnp.zeros((24, 256), f32)
    consts = consts.at[0, 0:DOF].set(b4)                           # feature_mlp bias4
    consts = consts.at[1, 0:DOF].set(bscale)                       # bound_scale (8-lane)
    consts = consts.at[2, 0:4].set(world["b_ee_quat"])
    consts = consts.at[3, 0:8].set(radii)
    consts = consts.at[4:12, 0:8].set(rsum)
    consts = consts.at[12, :].set(gb1_folded)                      # final bias1 (+radii)
    consts = consts.at[13, :].set(gb2)                             # final bias2
    consts = consts.at[14, 0:64].set(gb3)                          # final bias3
    consts = consts.at[14, 128:128 + DOF].set(gb4)                 # final bias4 (padded)
    consts = consts.at[15, :].set(blocks["self"].reshape(-1))      # q_self weight row
    consts = consts.at[16, :].set(blocks["pose_d"].reshape(-1))    # pose_d weight row
    consts = consts.at[17, 0:DOF].set(bscale)                      # bound_scale (128-lane)

    kargs = (w_feat, b_feat, w4_8, w_world, g_cxyz, g_sdf, g_ep, g_eq,
             g_xpose, gw2b, gw3b, gw4_128, consts)
    assert len(kargs) == 13
    return kargs


# ------------------------------- forward --------------------------------------
@jax.jit
def curobo_forward(kargs, q, x_pos, x_quat):
    # NOTE: like the PyTorch module, `q` is not used by forward (kept for parity).
    del q
    b = x_pos.shape[0]
    bpad = max(BQ, ((b + BQ - 1) // BQ) * BQ)
    x_in = jnp.zeros((bpad, 16), jnp.float32)
    x_in = x_in.at[:b, 0:3].set(x_pos)
    x_in = x_in.at[:b, 3:7].set(x_quat)
    x_in = x_in.at[:b, 8:11].set(x_pos)       # duplicated for the pose-distance slice
    x_in = x_in.at[:b, 12:16].set(x_quat)
    out = _fused_forward(x_in, *kargs)        # (bpad, 128)
    return out[:b, :DOF]


# --------------------------------- main ---------------------------------------
if __name__ == "__main__":
    key = jax.random.PRNGKey(0)
    k_in, k_params, k_world = jax.random.split(key, 3)

    kq, kp, kr = jax.random.split(k_in, 3)
    q_current = jax.random.uniform(kq, (B, DOF), jnp.float32, -1.0, 1.0)
    x_pos = jax.random.uniform(kp, (B, 3), jnp.float32, -0.5, 0.5)
    x_quat = jax.random.normal(kr, (B, 4), jnp.float32)
    x_quat = x_quat / jnp.linalg.norm(x_quat, axis=-1, keepdims=True)

    params = init_params(k_params)
    world = make_world(k_world)
    kargs = prepare_kernel_args(params, world)

    q_out = curobo_forward(kargs, q_current, x_pos, x_quat)
    q_out = jax.block_until_ready(q_out)

    assert q_out.shape == (B, DOF) and q_out.dtype == jnp.float32
    assert bool(jnp.all(jnp.isfinite(q_out)))
    print("KERNEL_OK")
</pallas_src>

<mosaic_0001>
module attributes {stable_mosaic.version = 11 : i64} {
  func.func @_curobo_fused_kernel(%arg0: i32, %arg1: memref<8x16xf32, #tpu.memory_space<vmem>>, %arg2: memref<1040x512xbf16, #tpu.memory_space<vmem>>, %arg3: memref<3x512xf32, #tpu.memory_space<vmem>>, %arg4: memref<512x8xbf16, #tpu.memory_space<vmem>>, %arg5: memref<8x32xbf16, #tpu.memory_space<vmem>>, %arg6: memref<24x256xbf16, #tpu.memory_space<vmem>>, %arg7: memref<8x256xbf16, #tpu.memory_space<vmem>>, %arg8: memref<4x256xbf16, #tpu.memory_space<vmem>>, %arg9: memref<4x256xbf16, #tpu.memory_space<vmem>>, %arg10: memref<8x256xbf16, #tpu.memory_space<vmem>>, %arg11: memref<256x256xbf16, #tpu.memory_space<vmem>>, %arg12: memref<256x64xbf16, #tpu.memory_space<vmem>>, %arg13: memref<64x128xbf16, #tpu.memory_space<vmem>>, %arg14: memref<24x256xf32, #tpu.memory_space<vmem>>, %arg15: memref<8x128xf32, #tpu.memory_space<vmem>>) attributes {dimension_semantics = [#tpu.dimension_semantics<parallel>], iteration_bounds = array<i64: 1>, scalar_prefetch = 0 : i64, scratch_operands = 0 : i64, tpu.core_type = #tpu.core_type<tc>, window_params = [{transform_indices = @transform_0, window_bounds = array<i64: 8, 16>}, {pipeline_mode = #tpu.pipeline_mode<synchronous>, transform_indices = @transform_1, window_bounds = array<i64: 1040, 512>}, {pipeline_mode = #tpu.pipeline_mode<synchronous>, transform_indices = @transform_2, window_bounds = array<i64: 3, 512>}, {pipeline_mode = #tpu.pipeline_mode<synchronous>, transform_indices = @transform_3, window_bounds = array<i64: 512, 8>}, {pipeline_mode = #tpu.pipeline_mode<synchronous>, transform_indices = @transform_4, window_bounds = array<i64: 8, 32>}, {pipeline_mode = #tpu.pipeline_mode<synchronous>, transform_indices = @transform_5, window_bounds = array<i64: 24, 256>}, {pipeline_mode = #tpu.pipeline_mode<synchronous>, transform_indices = @transform_6, window_bounds = array<i64: 8, 256>}, {pipeline_mode = #tpu.pipeline_mode<synchronous>, transform_indices = @transform_7, window_bounds = array<i64: 4, 256>}, {pipeline_mode = #tpu.pipeline_mode<synchronous>, transform_indices = @transform_8, window_bounds = array<i64: 4, 256>}, {pipeline_mode = #tpu.pipeline_mode<synchronous>, transform_indices = @transform_9, window_bounds = array<i64: 8, 256>}, {pipeline_mode = #tpu.pipeline_mode<synchronous>, transform_indices = @transform_10, window_bounds = array<i64: 256, 256>}, {pipeline_mode = #tpu.pipeline_mode<synchronous>, transform_indices = @transform_11, window_bounds = array<i64: 256, 64>}, {pipeline_mode = #tpu.pipeline_mode<synchronous>, transform_indices = @transform_12, window_bounds = array<i64: 64, 128>}, {pipeline_mode = #tpu.pipeline_mode<synchronous>, transform_indices = @transform_13, window_bounds = array<i64: 24, 256>}, {transform_indices = @transform_14, window_bounds = array<i64: 8, 128>}]} {
    %c0 = arith.constant 0 : index
    %c0_0 = arith.constant 0 : index
    %0 = vector.load %arg1[%c0, %c0_0] : memref<8x16xf32, #tpu.memory_space<vmem>>, vector<8x16xf32>
    %c0_1 = arith.constant 0 : index
    %c0_2 = arith.constant 0 : index
    %1 = vector.load %arg2[%c0_1, %c0_2] : memref<1040x512xbf16, #tpu.memory_space<vmem>>, vector<16x512xbf16>
    %2 = arith.truncf %0 : vector<8x16xf32> to vector<8x16xbf16>
    %cst = arith.constant dense<0.000000e+00> : vector<8x512xf32>
    %3 = tpu.matmul %2, %1, %cst {dimension_numbers = #tpu.dot_dimension_numbers<[1], [0], [0], [1], [0, 0, 1, 1], [], []>} : vector<8x16xbf16>, vector<16x512xbf16>, vector<8x512xf32> -> vector<8x512xf32>
    %c0_3 = arith.constant 0 : index
    %c0_4 = arith.constant 0 : index
    %4 = vector.load %arg3[%c0_3, %c0_4] : memref<3x512xf32, #tpu.memory_space<vmem>>, vector<1x512xf32>
    %5 = vector.broadcast %4 : vector<1x512xf32> to vector<8x512xf32>
    %6 = arith.addf %3, %5 : vector<8x512xf32>
    %cst_5 = arith.constant 0.000000e+00 : f32
    %cst_6 = arith.constant 6.000000e+00 : f32
    %7 = vector.broadcast %cst_5 : f32 to vector<8x512xf32>
    %8 = arith.maximumf %7, %6 : vector<8x512xf32>
    %9 = vector.broadcast %cst_6 : f32 to vector<8x512xf32>
    %10 = arith.minimumf %9, %8 : vector<8x512xf32>
    %c16 = arith.constant 16 : index
    %c0_7 = arith.constant 0 : index
    %11 = vector.load %arg2[%c16, %c0_7] : memref<1040x512xbf16, #tpu.memory_space<vmem>>, vector<512x512xbf16>
    %12 = arith.truncf %10 : vector<8x512xf32> to vector<8x512xbf16>
    %cst_8 = arith.constant dense<0.000000e+00> : vector<8x512xf32>
    %13 = tpu.matmul %12, %11, %cst_8 {dimension_numbers = #tpu.dot_dimension_numbers<[1], [0], [0], [1], [0, 0, 1, 1], [], []>} : vector<8x512xbf16>, vector<512x512xbf16>, vector<8x512xf32> -> vector<8x512xf32>
    %c1 = arith.constant 1 : index
    %c0_9 = arith.constant 0 : index
    %14 = vector.load %arg3[%c1, %c0_9] : memref<3x512xf32, #tpu.memory_space<vmem>>, vector<1x512xf32>
    %15 = vector.broadcast %14 : vector<1x512xf32> to vector<8x512xf32>
    %16 = arith.addf %13, %15 : vector<8x512xf32>
    %cst_10 = arith.constant 0.000000e+00 : f32
    %cst_11 = arith.constant 6.000000e+00 : f32
    %17 = vector.broadcast %cst_10 : f32 to vector<8x512xf32>
    %18 = arith.maximumf %17, %16 : vector<8x512xf32>
    %19 = vector.broadcast %cst_11 : f32 to vector<8x512xf32>
    %20 = arith.minimumf %19, %18 : vector<8x512xf32>
    %c528 = arith.constant 528 : index
    %c0_12 = arith.constant 0 : index
    %21 = vector.load %arg2[%c528, %c0_12] : memref<1040x512xbf16, #tpu.memory_space<vmem>>, vector<512x512xbf16>
    %22 = arith.truncf %20 : vector<8x512xf32> to vector<8x512xbf16>
    %cst_13 = arith.constant dense<0.000000e+00> : vector<8x512xf32>
    %23 = tpu.matmul %22, %21, %cst_13 {dimension_numbers = #tpu.dot_dimension_numbers<[1], [0], [0], [1], [0, 0, 1, 1], [], []>} : vector<8x512xbf16>, vector<512x512xbf16>, vector<8x512xf32> -> vector<8x512xf32>
    %c2 = arith.constant 2 : index
    %c0_14 = arith.constant 0 : index
    %24 = vector.load %arg3[%c2, %c0_14] : memref<3x512xf32, #tpu.memory_space<vmem>>, vector<1x512xf32>
    %25 = vector.broadcast %24 : vector<1x512xf32> to vector<8x512xf32>
    %26 = arith.addf %23, %25 : vector<8x512xf32>
    %cst_15 = arith.constant 0.000000e+00 : f32
    %cst_16 = arith.constant 6.000000e+00 : f32
    %27 = vector.broadcast %cst_15 : f32 to vector<8x512xf32>
    %28 = arith.maximumf %27, %26 : vector<8x512xf32>
    %29 = vector.broadcast %cst_16 : f32 to vector<8x512xf32>
    %30 = arith.minimumf %29, %28 : vector<8x512xf32>
    %c1_17 = arith.constant 1 : index
    %c0_18 = arith.constant 0 : index
    %31 = vector.load %arg14[%c1_17, %c0_18] : memref<24x256xf32, #tpu.memory_space<vmem>>, vector<1x8xf32>
    %c0_19 = arith.constant 0 : index
    %c0_20 = arith.constant 0 : index
    %32 = vector.load %arg4[%c0_19, %c0_20] : memref<512x8xbf16, #tpu.memory_space<vmem>>, vector<512x8xbf16>
    %33 = arith.truncf %30 : vector<8x512xf32> to vector<8x512xbf16>
    %cst_21 = arith.constant dense<0.000000e+00> : vector<8x8xf32>
    %34 = tpu.matmul %33, %32, %cst_21 {dimension_numbers = #tpu.dot_dimension_numbers<[1], [0], [0], [1], [0, 0, 1, 1], [], []>} : vector<8x512xbf16>, vector<512x8xbf16>, vector<8x8xf32> -> vector<8x8xf32>
    %c0_22 = arith.constant 0 : index
    %c0_23 = arith.constant 0 : index
    %35 = vector.load %arg14[%c0_22, %c0_23] : memref<24x256xf32, #tpu.memory_space<vmem>>, vector<1x8xf32>
    %36 = vector.broadcast %35 : vector<1x8xf32> to vector<8x8xf32>
    %37 = arith.addf %34, %36 : vector<8x8xf32>
    %38 = math.tanh %37 : vector<8x8xf32>
    %39 = vector.broadcast %31 : vector<1x8xf32> to vector<8x8xf32>
    %40 = arith.mulf %39, %38 : vector<8x8xf32>
    %c0_24 = arith.constant 0 : index
    %c0_25 = arith.constant 0 : index
    %41 = vector.load %arg5[%c0_24, %c0_25] : memref<8x32xbf16, #tpu.memory_space<vmem>>, vector<8x32xbf16>
    %42 = arith.truncf %40 : vector<8x8xf32> to vector<8x8xbf16>
    %cst_26 = arith.constant dense<0.000000e+00> : vector<8x32xf32>
    %43 = tpu.matmul %42, %41, %cst_26 {dimension_numbers = #tpu.dot_dimension_numbers<[1], [0], [0], [1], [0, 0, 1, 1], [], []>} : vector<8x8xbf16>, vector<8x32xbf16>, vector<8x32xf32> -> vector<8x32xf32>
    %44 = vector.extract_strided_slice %43 {offsets = [0, 0], sizes = [8, 24], strides = [1, 1]} : vector<8x32xf32> to vector<8x24xf32>
    %45 = math.tanh %44 : vector<8x24xf32>
    %46 = vector.extract_strided_slice %45 {offsets = [0, 0], sizes = [8, 8], strides = [1, 1]} : vector<8x24xf32> to vector<8x8xf32>
    %47 = vector.extract_strided_slice %45 {offsets = [0, 8], sizes = [8, 8], strides = [1, 1]} : vector<8x24xf32> to vector<8x8xf32>
    %48 = vector.extract_strided_slice %45 {offsets = [0, 16], sizes = [8, 8], strides = [1, 1]} : vector<8x24xf32> to vector<8x8xf32>
    %49 = vector.extract_strided_slice %43 {offsets = [0, 24], sizes = [8, 4], strides = [1, 1]} : vector<8x32xf32> to vector<8x4xf32>
    %50 = math.tanh %49 : vector<8x4xf32>
    %51 = vector.extract_strided_slice %43 {offsets = [0, 28], sizes = [8, 4], strides = [1, 1]} : vector<8x32xf32> to vector<8x4xf32>
    %c2_27 = arith.constant 2 : index
    %c0_28 = arith.constant 0 : index
    %52 = vector.load %arg14[%c2_27, %c0_28] : memref<24x256xf32, #tpu.memory_space<vmem>>, vector<1x4xf32>
    %53 = vector.broadcast %52 : vector<1x4xf32> to vector<8x4xf32>
    %54 = arith.addf %51, %53 : vector<8x4xf32>
    %55 = arith.mulf %54, %54 : vector<8x4xf32>
    %cst_29 = arith.constant dense<0.000000e+00> : vector<8xf32>
    %56 = vector.multi_reduction <add>, %55, %cst_29 [1] : vector<8x4xf32> to vector<8xf32>
    %57 = vector.shape_cast %56 : vector<8xf32> to vector<8x1xf32>
    %cst_30 = arith.constant 9.99999996E-13 : f32
    %58 = vector.broadcast %cst_30 : f32 to vector<8x1xf32>
    %59 = arith.addf %57, %58 : vector<8x1xf32>
    %60 = math.rsqrt %59 : vector<8x1xf32>
    %61 = vector.broadcast %60 : vector<8x1xf32> to vector<8x4xf32>
    %62 = arith.mulf %54, %61 : vector<8x4xf32>
    %c3 = arith.constant 3 : index
    %c0_31 = arith.constant 0 : index
    %63 = vector.load %arg14[%c3, %c0_31] : memref<24x256xf32, #tpu.memory_space<vmem>>, vector<1x8xf32>
    %cst_32 = arith.constant 3.000000e-01 : f32
    %64 = vector.broadcast %cst_32 : f32 to vector<8x8xf32>
    %65 = arith.subf %46, %64 : vector<8x8xf32>
    %cst_33 = arith.constant 0.000000e+00 : f32
    %66 = vector.broadcast %cst_33 : f32 to vector<8x8xf32>
    %67 = arith.subf %47, %66 : vector<8x8xf32>
    %cst_34 = arith.constant 3.000000e-01 : f32
    %68 = vector.broadcast %cst_34 : f32 to vector<8x8xf32>
    %69 = arith.subf %48, %68 : vector<8x8xf32>
    %70 = arith.mulf %65, %65 : vector<8x8xf32>
    %71 = arith.mulf %67, %67 : vector<8x8xf32>
    %72 = arith.addf %70, %71 : vector<8x8xf32>
    %73 = arith.mulf %69, %69 : vector<8x8xf32>
    %74 = arith.addf %72, %73 : vector<8x8xf32>
    %75 = math.sqrt %74 : vector<8x8xf32>
    %76 = vector.broadcast %63 : vector<1x8xf32> to vector<8x8xf32>
    %77 = arith.subf %75, %76 : vector<8x8xf32>
    %cst_35 = arith.constant 1.000000e-01 : f32
    %78 = vector.broadcast %cst_35 : f32 to vector<8x8xf32>
    %79 = arith.subf %77, %78 : vector<8x8xf32>
    %c4 = arith.constant 4 : index
    %c0_36 = arith.constant 0 : index
    %80 = vector.load %arg14[%c4, %c0_36] : memref<24x256xf32, #tpu.memory_space<vmem>>, vector<8x8xf32>
    %81 = vector.extract_strided_slice %46 {offsets = [0, 0], sizes = [8, 1], strides = [1, 1]} : vector<8x8xf32> to vector<8x1xf32>
    %82 = vector.broadcast %81 : vector<8x1xf32> to vector<8x8xf32>
    %83 = arith.subf %46, %82 : vector<8x8xf32>
    %84 = vector.extract_strided_slice %47 {offsets = [0, 0], sizes = [8, 1], strides = [1, 1]} : vector<8x8xf32> to vector<8x1xf32>
    %85 = vector.broadcast %84 : vector<8x1xf32> to vector<8x8xf32>
    %86 = arith.subf %47, %85 : vector<8x8xf32>
    %87 = vector.extract_strided_slice %48 {offsets = [0, 0], sizes = [8, 1], strides = [1, 1]} : vector<8x8xf32> to vector<8x1xf32>
    %88 = vector.broadcast %87 : vector<8x1xf32> to vector<8x8xf32>
    %89 = arith.subf %48, %88 : vector<8x8xf32>
    %90 = arith.mulf %83, %83 : vector<8x8xf32>
    %91 = arith.mulf %86, %86 : vector<8x8xf32>
    %92 = arith.addf %90, %91 : vector<8x8xf32>
    %93 = arith.mulf %89, %89 : vector<8x8xf32>
    %94 = arith.addf %92, %93 : vector<8x8xf32>
    %95 = math.sqrt %94 : vector<8x8xf32>
    %96 = vector.extract_strided_slice %80 {offsets = [0, 0], sizes = [1, 8], strides = [1, 1]} : vector<8x8xf32> to vector<1x8xf32>
    %97 = vector.broadcast %96 : vector<1x8xf32> to vector<8x8xf32>
    %98 = arith.subf %97, %95 : vector<8x8xf32>
    %cst_37 = arith.constant 0.000000e+00 : f32
    %99 = vector.broadcast %cst_37 : f32 to vector<8x8xf32>
    %100 = arith.maximumf %98, %99 : vector<8x8xf32>
    %101 = vector.extract_strided_slice %46 {offsets = [0, 1], sizes = [8, 1], strides = [1, 1]} : vector<8x8xf32> to vector<8x1xf32>
    %102 = vector.broadcast %101 : vector<8x1xf32> to vector<8x8xf32>
    %103 = arith.subf %46, %102 : vector<8x8xf32>
    %104 = vector.extract_strided_slice %47 {offsets = [0, 1], sizes = [8, 1], strides = [1, 1]} : vector<8x8xf32> to vector<8x1xf32>
    %105 = vector.broadcast %104 : vector<8x1xf32> to vector<8x8xf32>
    %106 = arith.subf %47, %105 : vector<8x8xf32>
    %107 = vector.extract_strided_slice %48 {offsets = [0, 1], sizes = [8, 1], strides = [1, 1]} : vector<8x8xf32> to vector<8x1xf32>
    %108 = vector.broadcast %107 : vector<8x1xf32> to vector<8x8xf32>
    %109 = arith.subf %48, %108 : vector<8x8xf32>
    %110 = arith.mulf %103, %103 : vector<8x8xf32>
    %111 = arith.mulf %106, %106 : vector<8x8xf32>
    %112 = arith.addf %110, %111 : vector<8x8xf32>
    %113 = arith.mulf %109, %109 : vector<8x8xf32>
    %114 = arith.addf %112, %113 : vector<8x8xf32>
    %115 = math.sqrt %114 : vector<8x8xf32>
    %116 = vector.extract_strided_slice %80 {offsets = [1, 0], sizes = [1, 8], strides = [1, 1]} : vector<8x8xf32> to vector<1x8xf32>
    %117 = vector.broadcast %116 : vector<1x8xf32> to vector<8x8xf32>
    %118 = arith.subf %117, %115 : vector<8x8xf32>
    %cst_38 = arith.constant 0.000000e+00 : f32
    %119 = vector.broadcast %cst_38 : f32 to vector<8x8xf32>
    %120 = arith.maximumf %118, %119 : vector<8x8xf32>
    %121 = vector.extract_strided_slice %46 {offsets = [0, 2], sizes = [8, 1], strides = [1, 1]} : vector<8x8xf32> to vector<8x1xf32>
    %122 = vector.broadcast %121 : vector<8x1xf32> to vector<8x8xf32>
    %123 = arith.subf %46, %122 : vector<8x8xf32>
    %124 = vector.extract_strided_slice %47 {offsets = [0, 2], sizes = [8, 1], strides = [1, 1]} : vector<8x8xf32> to vector<8x1xf32>
    %125 = vector.broadcast %124 : vector<8x1xf32> to vector<8x8xf32>
    %126 = arith.subf %47, %125 : vector<8x8xf32>
    %127 = vector.extract_strided_slice %48 {offsets = [0, 2], sizes = [8, 1], strides = [1, 1]} : vector<8x8xf32> to vector<8x1xf32>
    %128 = vector.broadcast %127 : vector<8x1xf32> to vector<8x8xf32>
    %129 = arith.subf %48, %128 : vector<8x8xf32>
    %130 = arith.mulf %123, %123 : vector<8x8xf32>
    %131 = arith.mulf %126, %126 : vector<8x8xf32>
    %132 = arith.addf %130, %131 : vector<8x8xf32>
    %133 = arith.mulf %129, %129 : vector<8x8xf32>
    %134 = arith.addf %132, %133 : vector<8x8xf32>
    %135 = math.sqrt %134 : vector<8x8xf32>
    %136 = vector.extract_strided_slice %80 {offsets = [2, 0], sizes = [1, 8], strides = [1, 1]} : vector<8x8xf32> to vector<1x8xf32>
    %137 = vector.broadcast %136 : vector<1x8xf32> to vector<8x8xf32>
    %138 = arith.subf %137, %135 : vector<8x8xf32>
    %cst_39 = arith.constant 0.000000e+00 : f32
    %139 = vector.broadcast %cst_39 : f32 to vector<8x8xf32>
    %140 = arith.maximumf %138, %139 : vector<8x8xf32>
    %141 = vector.extract_strided_slice %46 {offsets = [0, 3], sizes = [8, 1], strides = [1, 1]} : vector<8x8xf32> to vector<8x1xf32>
    %142 = vector.broadcast %141 : vector<8x1xf32> to vector<8x8xf32>
    %143 = arith.subf %46, %142 : vector<8x8xf32>
    %144 = vector.extract_strided_slice %47 {offsets = [0, 3], sizes = [8, 1], strides = [1, 1]} : vector<8x8xf32> to vector<8x1xf32>
    %145 = vector.broadcast %144 : vector<8x1xf32> to vector<8x8xf32>
    %146 = arith.subf %47, %145 : vector<8x8xf32>
    %147 = vector.extract_strided_slice %48 {offsets = [0, 3], sizes = [8, 1], strides = [1, 1]} : vector<8x8xf32> to vector<8x1xf32>
    %148 = vector.broadcast %147 : vector<8x1xf32> to vector<8x8xf32>
    %149 = arith.subf %48, %148 : vector<8x8xf32>
    %150 = arith.mulf %143, %143 : vector<8x8xf32>
    %151 = arith.mulf %146, %146 : vector<8x8xf32>
    %152 = arith.addf %150, %151 : vector<8x8xf32>
    %153 = arith.mulf %149, %149 : vector<8x8xf32>
    %154 = arith.addf %152, %153 : vector<8x8xf32>
    %155 = math.sqrt %154 : vector<8x8xf32>
    %156 = vector.extract_strided_slice %80 {offsets = [3, 0], sizes = [1, 8], strides = [1, 1]} : vector<8x8xf32> to vector<1x8xf32>
    %157 = vector.broadcast %156 : vector<1x8xf32> to vector<8x8xf32>
    %158 = arith.subf %157, %155 : vector<8x8xf32>
    %cst_40 = arith.constant 0.000000e+00 : f32
    %159 = vector.broadcast %cst_40 : f32 to vector<8x8xf32>
    %160 = arith.maximumf %158, %159 : vector<8x8xf32>
    %161 = vector.extract_strided_slice %46 {offsets = [0, 4], sizes = [8, 1], strides = [1, 1]} : vector<8x8xf32> to vector<8x1xf32>
    %162 = vector.broadcast %161 : vector<8x1xf32> to vector<8x8xf32>
    %163 = arith.subf %46, %162 : vector<8x8xf32>
    %164 = vector.extract_strided_slice %47 {offsets = [0, 4], sizes = [8, 1], strides = [1, 1]} : vector<8x8xf32> to vector<8x1xf32>
    %165 = vector.broadcast %164 : vector<8x1xf32> to vector<8x8xf32>
    %166 = arith.subf %47, %165 : vector<8x8xf32>
    %167 = vector.extract_strided_slice %48 {offsets = [0, 4], sizes = [8, 1], strides = [1, 1]} : vector<8x8xf32> to vector<8x1xf32>
    %168 = vector.broadcast %167 : vector<8x1xf32> to vector<8x8xf32>
    %169 = arith.subf %48, %168 : vector<8x8xf32>
    %170 = arith.mulf %163, %163 : vector<8x8xf32>
    %171 = arith.mulf %166, %166 : vector<8x8xf32>
    %172 = arith.addf %170, %171 : vector<8x8xf32>
    %173 = arith.mulf %169, %169 : vector<8x8xf32>
    %174 = arith.addf %172, %173 : vector<8x8xf32>
    %175 = math.sqrt %174 : vector<8x8xf32>
    %176 = vector.extract_strided_slice %80 {offsets = [4, 0], sizes = [1, 8], strides = [1, 1]} : vector<8x8xf32> to vector<1x8xf32>
    %177 = vector.broadcast %176 : vector<1x8xf32> to vector<8x8xf32>
    %178 = arith.subf %177, %175 : vector<8x8xf32>
    %cst_41 = arith.constant 0.000000e+00 : f32
    %179 = vector.broadcast %cst_41 : f32 to vector<8x8xf32>
    %180 = arith.maximumf %178, %179 : vector<8x8xf32>
    %181 = vector.extract_strided_slice %46 {offsets = [0, 5], sizes = [8, 1], strides = [1, 1]} : vector<8x8xf32> to vector<8x1xf32>
    %182 = vector.broadcast %181 : vector<8x1xf32> to vector<8x8xf32>
    %183 = arith.subf %46, %182 : vector<8x8xf32>
    %184 = vector.extract_strided_slice %47 {offsets = [0, 5], sizes = [8, 1], strides = [1, 1]} : vector<8x8xf32> to vector<8x1xf32>
    %185 = vector.broadcast %184 : vector<8x1xf32> to vector<8x8xf32>
    %186 = arith.subf %47, %185 : vector<8x8xf32>
    %187 = vector.extract_strided_slice %48 {offsets = [0, 5], sizes = [8, 1], strides = [1, 1]} : vector<8x8xf32> to vector<8x1xf32>
    %188 = vector.broadcast %187 : vector<8x1xf32> to vector<8x8xf32>
    %189 = arith.subf %48, %188 : vector<8x8xf32>
    %190 = arith.mulf %183, %183 : vector<8x8xf32>
    %191 = arith.mulf %186, %186 : vector<8x8xf32>
    %192 = arith.addf %190, %191 : vector<8x8xf32>
    %193 = arith.mulf %189, %189 : vector<8x8xf32>
    %194 = arith.addf %192, %193 : vector<8x8xf32>
    %195 = math.sqrt %194 : vector<8x8xf32>
    %196 = vector.extract_strided_slice %80 {offsets = [5, 0], sizes = [1, 8], strides = [1, 1]} : vector<8x8xf32> to vector<1x8xf32>
    %197 = vector.broadcast %196 : vector<1x8xf32> to vector<8x8xf32>
    %198 = arith.subf %197, %195 : vector<8x8xf32>
    %cst_42 = arith.constant 0.000000e+00 : f32
    %199 = vector.broadcast %cst_42 : f32 to vector<8x8xf32>
    %200 = arith.maximumf %198, %199 : vector<8x8xf32>
    %201 = vector.extract_strided_slice %46 {offsets = [0, 6], sizes = [8, 1], strides = [1, 1]} : vector<8x8xf32> to vector<8x1xf32>
    %202 = vector.broadcast %201 : vector<8x1xf32> to vector<8x8xf32>
    %203 = arith.subf %46, %202 : vector<8x8xf32>
    %204 = vector.extract_strided_slice %47 {offsets = [0, 6], sizes = [8, 1], strides = [1, 1]} : vector<8x8xf32> to vector<8x1xf32>
    %205 = vector.broadcast %204 : vector<8x1xf32> to vector<8x8xf32>
    %206 = arith.subf %47, %205 : vector<8x8xf32>
    %207 = vector.extract_strided_slice %48 {offsets = [0, 6], sizes = [8, 1], strides = [1, 1]} : vector<8x8xf32> to vector<8x1xf32>
    %208 = vector.broadcast %207 : vector<8x1xf32> to vector<8x8xf32>
    %209 = arith.subf %48, %208 : vector<8x8xf32>
    %210 = arith.mulf %203, %203 : vector<8x8xf32>
    %211 = arith.mulf %206, %206 : vector<8x8xf32>
    %212 = arith.addf %210, %211 : vector<8x8xf32>
    %213 = arith.mulf %209, %209 : vector<8x8xf32>
    %214 = arith.addf %212, %213 : vector<8x8xf32>
    %215 = math.sqrt %214 : vector<8x8xf32>
    %216 = vector.extract_strided_slice %80 {offsets = [6, 0], sizes = [1, 8], strides = [1, 1]} : vector<8x8xf32> to vector<1x8xf32>
    %217 = vector.broadcast %216 : vector<1x8xf32> to vector<8x8xf32>
    %218 = arith.subf %217, %215 : vector<8x8xf32>
    %cst_43 = arith.constant 0.000000e+00 : f32
    %219 = vector.broadcast %cst_43 : f32 to vector<8x8xf32>
    %220 = arith.maximumf %218, %219 : vector<8x8xf32>
    %221 = vector.extract_strided_slice %46 {offsets = [0, 7], sizes = [8, 1], strides = [1, 1]} : vector<8x8xf32> to vector<8x1xf32>
    %222 = vector.broadcast %221 : vector<8x1xf32> to vector<8x8xf32>
    %223 = arith.subf %46, %222 : vector<8x8xf32>
    %224 = vector.extract_strided_slice %47 {offsets = [0, 7], sizes = [8, 1], strides = [1, 1]} : vector<8x8xf32> to vector<8x1xf32>
    %225 = vector.broadcast %224 : vector<8x1xf32> to vector<8x8xf32>
    %226 = arith.subf %47, %225 : vector<8x8xf32>
    %227 = vector.extract_strided_slice %48 {offsets = [0, 7], sizes = [8, 1], strides = [1, 1]} : vector<8x8xf32> to vector<8x1xf32>
    %228 = vector.broadcast %227 : vector<8x1xf32> to vector<8x8xf32>
    %229 = arith.subf %48, %228 : vector<8x8xf32>
    %230 = arith.mulf %223, %223 : vector<8x8xf32>
    %231 = arith.mulf %226, %226 : vector<8x8xf32>
    %232 = arith.addf %230, %231 : vector<8x8xf32>
    %233 = arith.mulf %229, %229 : vector<8x8xf32>
    %234 = arith.addf %232, %233 : vector<8x8xf32>
    %235 = math.sqrt %234 : vector<8x8xf32>
    %236 = vector.extract_strided_slice %80 {offsets = [7, 0], sizes = [1, 8], strides = [1, 1]} : vector<8x8xf32> to vector<1x8xf32>
    %237 = vector.broadcast %236 : vector<1x8xf32> to vector<8x8xf32>
    %238 = arith.subf %237, %235 : vector<8x8xf32>
    %cst_44 = arith.constant 0.000000e+00 : f32
    %239 = vector.broadcast %cst_44 : f32 to vector<8x8xf32>
    %240 = arith.maximumf %238, %239 : vector<8x8xf32>
    %241 = arith.maximumf %100, %120 : vector<8x8xf32>
    %242 = arith.maximumf %140, %160 : vector<8x8xf32>
    %243 = arith.maximumf %180, %200 : vector<8x8xf32>
    %244 = arith.maximumf %220, %240 : vector<8x8xf32>
    %245 = arith.maximumf %241, %242 : vector<8x8xf32>
    %246 = arith.maximumf %243, %244 : vector<8x8xf32>
    %247 = arith.maximumf %245, %246 : vector<8x8xf32>
    %cst_45 = arith.constant dense<0xFF800000> : vector<8xf32>
    %248 = vector.multi_reduction <maximumf>, %247, %cst_45 [1] : vector<8x8xf32> to vector<8xf32>
    %249 = vector.shape_cast %248 : vector<8xf32> to vector<8x1xf32>
    %250 = vector.extract_strided_slice %0 {offsets = [0, 8], sizes = [8, 4], strides = [1, 1]} : vector<8x16xf32> to vector<8x4xf32>
    %251 = vector.extract_strided_slice %0 {offsets = [0, 12], sizes = [8, 4], strides = [1, 1]} : vector<8x16xf32> to vector<8x4xf32>
    %252 = arith.subf %50, %250 : vector<8x4xf32>
    %253 = arith.mulf %252, %252 : vector<8x4xf32>
    %cst_46 = arith.constant dense<0.000000e+00> : vector<8xf32>
    %254 = vector.multi_reduction <add>, %253, %cst_46 [1] : vector<8x4xf32> to vector<8xf32>
    %255 = vector.shape_cast %254 : vector<8xf32> to vector<8x1xf32>
    %256 = math.sqrt %255 : vector<8x1xf32>
    %257 = arith.mulf %62, %251 : vector<8x4xf32>
    %cst_47 = arith.constant dense<0.000000e+00> : vector<8xf32>
    %258 = vector.multi_reduction <add>, %257, %cst_47 [1] : vector<8x4xf32> to vector<8xf32>
    %259 = vector.shape_cast %258 : vector<8xf32> to vector<8x1xf32>
    %260 = math.absf %259 : vector<8x1xf32>
    %cst_48 = arith.constant 1.000000e+00 : f32
    %261 = vector.broadcast %cst_48 : f32 to vector<8x1xf32>
    %262 = arith.subf %261, %260 : vector<8x1xf32>
    %263 = arith.addf %256, %262 : vector<8x1xf32>
    %c0_49 = arith.constant 0 : index
    %c0_50 = arith.constant 0 : index
    %264 = vector.load %arg6[%c0_49, %c0_50] : memref<24x256xbf16, #tpu.memory_space<vmem>>, vector<24x256xbf16>
    %265 = arith.truncf %45 : vector<8x24xf32> to vector<8x24xbf16>
    %cst_51 = arith.constant dense<0.000000e+00> : vector<8x256xf32>
    %266 = tpu.matmul %265, %264, %cst_51 {dimension_numbers = #tpu.dot_dimension_numbers<[1], [0], [0], [1], [0, 0, 1, 1], [], []>} : vector<8x24xbf16>, vector<24x256xbf16>, vector<8x256xf32> -> vector<8x256xf32>
    %c0_52 = arith.constant 0 : index
    %c0_53 = arith.constant 0 : index
    %267 = vector.load %arg7[%c0_52, %c0_53] : memref<8x256xbf16, #tpu.memory_space<vmem>>, vector<8x256xbf16>
    %268 = arith.truncf %79 : vector<8x8xf32> to vector<8x8xbf16>
    %cst_54 = arith.constant dense<0.000000e+00> : vector<8x256xf32>
    %269 = tpu.matmul %268, %267, %cst_54 {dimension_numbers = #tpu.dot_dimension_numbers<[1], [0], [0], [1], [0, 0, 1, 1], [], []>} : vector<8x8xbf16>, vector<8x256xbf16>, vector<8x256xf32> -> vector<8x256xf32>
    %270 = arith.addf %266, %269 : vector<8x256xf32>
    %c0_55 = arith.constant 0 : index
    %c0_56 = arith.constant 0 : index
    %271 = vector.load %arg8[%c0_55, %c0_56] : memref<4x256xbf16, #tpu.memory_space<vmem>>, vector<4x256xbf16>
    %272 = arith.truncf %50 : vector<8x4xf32> to vector<8x4xbf16>
    %cst_57 = arith.constant dense<0.000000e+00> : vector<8x256xf32>
    %273 = tpu.matmul %272, %271, %cst_57 {dimension_numbers = #tpu.dot_dimension_numbers<[1], [0], [0], [1], [0, 0, 1, 1], [], []>} : vector<8x4xbf16>, vector<4x256xbf16>, vector<8x256xf32> -> vector<8x256xf32>
    %274 = arith.addf %270, %273 : vector<8x256xf32>
    %c0_58 = arith.constant 0 : index
    %c0_59 = arith.constant 0 : index
    %275 = vector.load %arg9[%c0_58, %c0_59] : memref<4x256xbf16, #tpu.memory_space<vmem>>, vector<4x256xbf16>
    %276 = arith.truncf %62 : vector<8x4xf32> to vector<8x4xbf16>
    %cst_60 = arith.constant dense<0.000000e+00> : vector<8x256xf32>
    %277 = tpu.matmul %276, %275, %cst_60 {dimension_numbers = #tpu.dot_dimension_numbers<[1], [0], [0], [1], [0, 0, 1, 1], [], []>} : vector<8x4xbf16>, vector<4x256xbf16>, vector<8x256xf32> -> vector<8x256xf32>
    %278 = arith.addf %274, %277 : vector<8x256xf32>
    %279 = vector.extract_strided_slice %0 {offsets = [0, 8], sizes = [8, 8], strides = [1, 1]} : vector<8x16xf32> to vector<8x8xf32>
    %c0_61 = arith.constant 0 : index
    %c0_62 = arith.constant 0 : index
    %280 = vector.load %arg10[%c0_61, %c0_62] : memref<8x256xbf16, #tpu.memory_space<vmem>>, vector<8x256xbf16>
    %281 = arith.truncf %279 : vector<8x8xf32> to vector<8x8xbf16>
    %cst_63 = arith.constant dense<0.000000e+00> : vector<8x256xf32>
    %282 = tpu.matmul %281, %280, %cst_63 {dimension_numbers = #tpu.dot_dimension_numbers<[1], [0], [0], [1], [0, 0, 1, 1], [], []>} : vector<8x8xbf16>, vector<8x256xbf16>, vector<8x256xf32> -> vector<8x256xf32>
    %283 = arith.addf %278, %282 : vector<8x256xf32>
    %c15 = arith.constant 15 : index
    %c0_64 = arith.constant 0 : index
    %284 = vector.load %arg14[%c15, %c0_64] : memref<24x256xf32, #tpu.memory_space<vmem>>, vector<1x256xf32>
    %285 = vector.broadcast %249 : vector<8x1xf32> to vector<8x256xf32>
    %286 = vector.broadcast %284 : vector<1x256xf32> to vector<8x256xf32>
    %287 = arith.mulf %285, %286 : vector<8x256xf32>
    %288 = arith.addf %283, %287 : vector<8x256xf32>
    %c16_65 = arith.constant 16 : index
    %c0_66 = arith.constant 0 : index
    %289 = vector.load %arg14[%c16_65, %c0_66] : memref<24x256xf32, #tpu.memory_space<vmem>>, vector<1x256xf32>
    %290 = vector.broadcast %263 : vector<8x1xf32> to vector<8x256xf32>
    %291 = vector.broadcast %289 : vector<1x256xf32> to vector<8x256xf32>
    %292 = arith.mulf %290, %291 : vector<8x256xf32>
    %293 = arith.addf %288, %292 : vector<8x256xf32>
    %c12 = arith.constant 12 : index
    %c0_67 = arith.constant 0 : index
    %294 = vector.load %arg14[%c12, %c0_67] : memref<24x256xf32, #tpu.memory_space<vmem>>, vector<1x256xf32>
    %295 = vector.broadcast %294 : vector<1x256xf32> to vector<8x256xf32>
    %296 = arith.addf %293, %295 : vector<8x256xf32>
    %cst_68 = arith.constant 0.000000e+00 : f32
    %cst_69 = arith.constant 6.000000e+00 : f32
    %297 = vector.broadcast %cst_68 : f32 to vector<8x256xf32>
    %298 = arith.maximumf %297, %296 : vector<8x256xf32>
    %299 = vector.broadcast %cst_69 : f32 to vector<8x256xf32>
    %300 = arith.minimumf %299, %298 : vector<8x256xf32>
    %c0_70 = arith.constant 0 : index
    %c0_71 = arith.constant 0 : index
    %301 = vector.load %arg11[%c0_70, %c0_71] : memref<256x256xbf16, #tpu.memory_space<vmem>>, vector<256x256xbf16>
    %302 = arith.truncf %300 : vector<8x256xf32> to vector<8x256xbf16>
    %cst_72 = arith.constant dense<0.000000e+00> : vector<8x256xf32>
    %303 = tpu.matmul %302, %301, %cst_72 {dimension_numbers = #tpu.dot_dimension_numbers<[1], [0], [0], [1], [0, 0, 1, 1], [], []>} : vector<8x256xbf16>, vector<256x256xbf16>, vector<8x256xf32> -> vector<8x256xf32>
    %c13 = arith.constant 13 : index
    %c0_73 = arith.constant 0 : index
    %304 = vector.load %arg14[%c13, %c0_73] : memref<24x256xf32, #tpu.memory_space<vmem>>, vector<1x256xf32>
    %305 = vector.broadcast %304 : vector<1x256xf32> to vector<8x256xf32>
    %306 = arith.addf %303, %305 : vector<8x256xf32>
    %cst_74 = arith.constant 0.000000e+00 : f32
    %cst_75 = arith.constant 6.000000e+00 : f32
    %307 = vector.broadcast %cst_74 : f32 to vector<8x256xf32>
    %308 = arith.maximumf %307, %306 : vector<8x256xf32>
    %309 = vector.broadcast %cst_75 : f32 to vector<8x256xf32>
    %310 = arith.minimumf %309, %308 : vector<8x256xf32>
    %c0_76 = arith.constant 0 : index
    %c0_77 = arith.constant 0 : index
    %311 = vector.load %arg12[%c0_76, %c0_77] : memref<256x64xbf16, #tpu.memory_space<vmem>>, vector<256x64xbf16>
    %312 = arith.truncf %310 : vector<8x256xf32> to vector<8x256xbf16>
    %cst_78 = arith.constant dense<0.000000e+00> : vector<8x64xf32>
    %313 = tpu.matmul %312, %311, %cst_78 {dimension_numbers = #tpu.dot_dimension_numbers<[1], [0], [0], [1], [0, 0, 1, 1], [], []>} : vector<8x256xbf16>, vector<256x64xbf16>, vector<8x64xf32> -> vector<8x64xf32>
    %c14 = arith.constant 14 : index
    %c0_79 = arith.constant 0 : index
    %314 = vector.load %arg14[%c14, %c0_79] : memref<24x256xf32, #tpu.memory_space<vmem>>, vector<1x64xf32>
    %315 = vector.broadcast %314 : vector<1x64xf32> to vector<8x64xf32>
    %316 = arith.addf %313, %315 : vector<8x64xf32>
    %cst_80 = arith.constant 0.000000e+00 : f32
    %cst_81 = arith.constant 6.000000e+00 : f32
    %317 = vector.broadcast %cst_80 : f32 to vector<8x64xf32>
    %318 = arith.maximumf %317, %316 : vector<8x64xf32>
    %319 = vector.broadcast %cst_81 : f32 to vector<8x64xf32>
    %320 = arith.minimumf %319, %318 : vector<8x64xf32>
    %c17 = arith.constant 17 : index
    %c0_82 = arith.constant 0 : index
    %321 = vector.load %arg14[%c17, %c0_82] : memref<24x256xf32, #tpu.memory_space<vmem>>, vector<1x128xf32>
    %c0_83 = arith.constant 0 : index
    %c0_84 = arith.constant 0 : index
    %322 = vector.load %arg13[%c0_83, %c0_84] : memref<64x128xbf16, #tpu.memory_space<vmem>>, vector<64x128xbf16>
    %323 = arith.truncf %320 : vector<8x64xf32> to vector<8x64xbf16>
    %cst_85 = arith.constant dense<0.000000e+00> : vector<8x128xf32>
    %324 = tpu.matmul %323, %322, %cst_85 {dimension_numbers = #tpu.dot_dimension_numbers<[1], [0], [0], [1], [0, 0, 1, 1], [], []>} : vector<8x64xbf16>, vector<64x128xbf16>, vector<8x128xf32> -> vector<8x128xf32>
    %c14_86 = arith.constant 14 : index
    %c128 = arith.constant 128 : index
    %325 = vector.load %arg14[%c14_86, %c128] : memref<24x256xf32, #tpu.memory_space<vmem>>, vector<1x128xf32>
    %326 = vector.broadcast %325 : vector<1x128xf32> to vector<8x128xf32>
    %327 = arith.addf %324, %326 : vector<8x128xf32>
    %328 = math.tanh %327 : vector<8x128xf32>
    %329 = vector.broadcast %321 : vector<1x128xf32> to vector<8x128xf32>
    %330 = arith.mulf %329, %328 : vector<8x128xf32>
    %c0_87 = arith.constant 0 : index
    %c0_88 = arith.constant 0 : index
    %331 = vector.load %arg15[%c0_87, %c0_88] : memref<8x128xf32, #tpu.memory_space<vmem>>, vector<8x128xf32>
    tpu.vector_store %arg15[%c0_87, %c0_88], %330 {strides = array<i32>} : memref<8x128xf32, #tpu.memory_space<vmem>>, vector<8x128xf32>,
    return
  }
  func.func @transform_0(%arg0: i32) -> (i32, i32) {
    %c0_i32 = arith.constant 0 : i32
    %c0_i32_0 = arith.constant 0 : i32
    return %arg0, %c0_i32 : i32, i32
  }
  func.func @transform_1(%arg0: i32) -> (i32, i32) {
    %c0_i32 = arith.constant 0 : i32
    %c0_i32_0 = arith.constant 0 : i32
    %c0_i32_1 = arith.constant 0 : i32
    return %c0_i32, %c0_i32_0 : i32, i32
  }
  func.func @transform_2(%arg0: i32) -> (i32, i32) {
    %c0_i32 = arith.constant 0 : i32
    %c0_i32_0 = arith.constant 0 : i32
    %c0_i32_1 = arith.constant 0 : i32
    return %c0_i32, %c0_i32_0 : i32, i32
  }
  func.func @transform_3(%arg0: i32) -> (i32, i32) {
    %c0_i32 = arith.constant 0 : i32
    %c0_i32_0 = arith.constant 0 : i32
    %c0_i32_1 = arith.constant 0 : i32
    return %c0_i32, %c0_i32_0 : i32, i32
  }
  func.func @transform_4(%arg0: i32) -> (i32, i32) {
    %c0_i32 = arith.constant 0 : i32
    %c0_i32_0 = arith.constant 0 : i32
    %c0_i32_1 = arith.constant 0 : i32
    return %c0_i32, %c0_i32_0 : i32, i32
  }
  func.func @transform_5(%arg0: i32) -> (i32, i32) {
    %c0_i32 = arith.constant 0 : i32
    %c0_i32_0 = arith.constant 0 : i32
    %c0_i32_1 = arith.constant 0 : i32
    return %c0_i32, %c0_i32_0 : i32, i32
  }
  func.func @transform_6(%arg0: i32) -> (i32, i32) {
    %c0_i32 = arith.constant 0 : i32
    %c0_i32_0 = arith.constant 0 : i32
    %c0_i32_1 = arith.constant 0 : i32
    return %c0_i32, %c0_i32_0 : i32, i32
  }
  func.func @transform_7(%arg0: i32) -> (i32, i32) {
    %c0_i32 = arith.constant 0 : i32
    %c0_i32_0 = arith.constant 0 : i32
    %c0_i32_1 = arith.constant 0 : i32
    return %c0_i32, %c0_i32_0 : i32, i32
  }
  func.func @transform_8(%arg0: i32) -> (i32, i32) {
    %c0_i32 = arith.constant 0 : i32
    %c0_i32_0 = arith.constant 0 : i32
    %c0_i32_1 = arith.constant 0 : i32
    return %c0_i32, %c0_i32_0 : i32, i32
  }
  func.func @transform_9(%arg0: i32) -> (i32, i32) {
    %c0_i32 = arith.constant 0 : i32
    %c0_i32_0 = arith.constant 0 : i32
    %c0_i32_1 = arith.constant 0 : i32
    return %c0_i32, %c0_i32_0 : i32, i32
  }
  func.func @transform_10(%arg0: i32) -> (i32, i32) {
    %c0_i32 = arith.constant 0 : i32
    %c0_i32_0 = arith.constant 0 : i32
    %c0_i32_1 = arith.constant 0 : i32
    return %c0_i32, %c0_i32_0 : i32, i32
  }
  func.func @transform_11(%arg0: i32) -> (i32, i32) {
    %c0_i32 = arith.constant 0 : i32
    %c0_i32_0 = arith.constant 0 : i32
    %c0_i32_1 = arith.constant 0 : i32
    return %c0_i32, %c0_i32_0 : i32, i32
  }
  func.func @transform_12(%arg0: i32) -> (i32, i32) {
    %c0_i32 = arith.constant 0 : i32
    %c0_i32_0 = arith.constant 0 : i32
    %c0_i32_1 = arith.constant 0 : i32
    return %c0_i32, %c0_i32_0 : i32, i32
  }
  func.func @transform_13(%arg0: i32) -> (i32, i32) {
    %c0_i32 = arith.constant 0 : i32
    %c0_i32_0 = arith.constant 0 : i32
    %c0_i32_1 = arith.constant 0 : i32
    return %c0_i32, %c0_i32_0 : i32, i32
  }
  func.func @transform_14(%arg0: i32) -> (i32, i32) {
    %c0_i32 = arith.constant 0 : i32
    %c0_i32_0 = arith.constant 0 : i32
    return %arg0, %c0_i32 : i32, i32
  }
}

</mosaic_0001>

<bundles_post_ra>
// kernel: curobo_forward.1
= control target key start
LH: loop header
LB: loop body
LE: loop exit
PB: predicated region body
PF: predicated region fallthrough
CT: control target
= control target key end

     0   :  { %19 = vsyncpa [#allocation3], 0  ;;  %s5911_s0 = inlined_call_operand.vmem [shape: f32[8,16], index: 0, kind: input, shape index: {}]   ;;  %s5912_s1 = inlined_call_operand.hbm [shape: bf16[1040,512], index: 1, kind: input, shape index: {}]   ;;  %s5913_s2 = inlined_call_operand.hbm [shape: f32[3,512], index: 2, kind: input, shape index: {}]   ;;  %s5914_s3 = inlined_call_operand.vmem [shape: bf16[512,8], index: 3, kind: input, shape index: {}]   ;;  %s5915_s4 = inlined_call_operand.hbm [shape: bf16[8,32], index: 4, kind: input, shape index: {}]   ;;  %s5916_s5 = inlined_call_operand.hbm [shape: bf16[24,256], index: 5, kind: input, shape index: {}]   ;;  %s5917_s6 = inlined_call_operand.hbm [shape: bf16[8,256], index: 6, kind: input, shape index: {}]   ;;  %s5918_s7 = inlined_call_operand.hbm [shape: bf16[4,256], index: 7, kind: input, shape index: {}]   ;;  %s5919_s8 = inlined_call_operand.hbm [shape: bf16[4,256], index: 8, kind: input, shape index: {}]   ;;  %s5920_s9 = inlined_call_operand.hbm [shape: bf16[8,256], index: 9, kind: input, shape index: {}]   ;;  %s5921_s10 = inlined_call_operand.hbm [shape: bf16[256,256], index: 10, kind: input, shape index: {}]   ;;  %s5922_s11 = inlined_call_operand.vmem [shape: bf16[256,64], index: 11, kind: input, shape index: {}]   ;;  %s5923_s12 = inlined_call_operand.hbm [shape: bf16[64,128], index: 12, kind: input, shape index: {}]   ;;  %s5924_s13 = inlined_call_operand.hbm [shape: f32[24,256], index: 13, kind: input, shape index: {}]   ;;  %s5925_s14 = inlined_call_operand.vmem [shape: f32[8,128], index: 14, kind: output, shape index: {}]  }
   0x1   :  { %20 = vsyncpa [#allocation5], 0 }
   0x2   :  { %21 = vsyncpa [#allocation8], 0 }
   0x3   :  { %22 = vsyncpa [#allocation11], 0 }
   0x4   :  { %23 = vsyncpa [#allocation14], 0 }
   0x5   :  { %24 = vsyncpa [#allocation17], 0  ;;  %s5253_s29 = smov [#allocation4]   ;;  %s5254_s15 = smov [#allocation7]  }
   0x6   :  { %s45_s30 = sshll.u32 %s5253_s29, 4  ;;  %s66_s16 = sshll.u32 %s5254_s15, 4  ;;  %s46_s30 = int_to_ptr.vmem [resolvable:$true] %s45_s30  ;;  %s67_s16 = int_to_ptr.vmem [resolvable:$true] %s66_s16 }
   0x7   :  { %s5029_s17 = scalar_lea.vmem %s46_s30, 256  ;;  %p5034_p1 = scmp.lt.s32.totalorder %s46_s30, %s46_s30 }
   0x8   :  { %p5030_p0 = scmp.ne.s32.totalorder %s46_s30, %s5029_s17  ;;  %p5035_p2 = scmp.lt.s32.totalorder %s5029_s17, %s5029_s17 }
   0xa   :  { %p5036_p3 = por %p5035_p2, %p5034_p1 }
   0xc   :  { %p5037_p4 = pnand %p5036_p3, %p5030_p0 }
   0xe   :  { %5040 = shalt.err (!%p5037_p4)
}
   0xf   :  { %48 = dma.hbm_to_vmem [thread:$0]  %s5913_s2, 256, %s46_s30, [#allocation5]  }
  0x10   :  { %s5049_s20 = scalar_lea.vmem %s67_s16, 384  ;;  %p5054_p6 = scmp.lt.s32.totalorder %s67_s16, %s67_s16 }
  0x11   :  { %p5050_p5 = scmp.ne.s32.totalorder %s67_s16, %s5049_s20  ;;  %p5055_p7 = scmp.lt.s32.totalorder %s5049_s20, %s5049_s20 }
  0x13   :  { %p5056_p8 = por %p5055_p7, %p5054_p6 }
  0x15   :  { %p5057_p9 = pnand %p5056_p8, %p5050_p5 }
  0x17   :  { %5060 = shalt.err (!%p5057_p9)
}
  0x18   :  { %s5255_s21 = smov 128   ;;  %s5256_s22 = smov 8  }
  0x19   :  { %72 = dma.hbm_to_vmem [thread:$0]  %s5916_s5, 384, %s67_s16, [#allocation8], %s5255_s21, %s5255_s21, %s5256_s22  }
  0x1a   :  { %s5257_s25 = smov [#allocation10]   ;;  %s5258_s27 = smov [#allocation13]  }
  0x1b   :  { %s89_s26 = sshll.u32 %s5257_s25, 4  ;;  %s109_s2 = sshll.u32 %s5258_s27, 4  ;;  %s90_s26 = int_to_ptr.vmem [resolvable:$true] %s89_s26  ;;  %s110_s2 = int_to_ptr.vmem [resolvable:$true] %s109_s2 }
  0x1c   :  { %s5069_s28 = scalar_lea.vmem %s90_s26, 64  ;;  %p5074_p11 = scmp.lt.s32.totalorder %s90_s26, %s90_s26 }
  0x1d   :  { %p5070_p10 = scmp.ne.s32.totalorder %s90_s26, %s5069_s28  ;;  %p5075_p12 = scmp.lt.s32.totalorder %s5069_s28, %s5069_s28 }
  0x1f   :  { %p5076_p13 = por %p5075_p12, %p5074_p11 }
  0x21   :  { %p5077_p0 = pnand %p5076_p13, %p5070_p10 }
  0x23   :  { %5080 = shalt.err (!%p5077_p0)
}
  0x24   :  { %92 = dma.hbm_to_vmem [thread:$0]  %s5918_s7, 64, %s90_s26, [#allocation11]  }
  0x25   :  { %s5089_s15 = scalar_lea.vmem %s110_s2, 128  ;;  %p5094_p2 = scmp.lt.s32.totalorder %s110_s2, %s110_s2 }
  0x26   :  { %p5090_p1 = scmp.ne.s32.totalorder %s110_s2, %s5089_s15  ;;  %p5095_p3 = scmp.lt.s32.totalorder %s5089_s15, %s5089_s15 }
  0x28   :  { %p5096_p4 = por %p5095_p3, %p5094_p2 }
  0x2a   :  { %p5097_p5 = pnand %p5096_p4, %p5090_p1 }
  0x2c   :  { %5100 = shalt.err (!%p5097_p5)
}
  0x2d   :  { %112 = dma.hbm_to_vmem [thread:$0]  %s5920_s9, 128, %s110_s2, [#allocation14]  }
  0x2e   :  { %s5259_s17 = smov [#allocation16]  }
  0x2f   :  { %s132_s18 = sshll.u32 %s5259_s17, 4  ;;  %s133_s18 = int_to_ptr.vmem [resolvable:$true] %s132_s18 }
  0x30   :  { %s5109_s19 = scalar_lea.vmem %s133_s18, 512  ;;  %p5114_p7 = scmp.lt.s32.totalorder %s133_s18, %s133_s18 }
  0x31   :  { %p5110_p6 = scmp.ne.s32.totalorder %s133_s18, %s5109_s19  ;;  %p5115_p8 = scmp.lt.s32.totalorder %s5109_s19, %s5109_s19 }
  0x33   :  { %p5116_p9 = por %p5115_p8, %p5114_p7 }
  0x35   :  { %p5117_p10 = pnand %p5116_p9, %p5110_p6 }
  0x37   :  { %5120 = shalt.err (!%p5117_p10)
}
  0x38   :  { %s5260_s7 = smov 64   ;;  %s5261_s20 = smov 4  }
  0x39   :  { %138 = dma.hbm_to_vmem [thread:$0]  %s5923_s12, 512, %s133_s18, [#allocation17], %s5260_s7, %s5260_s7, %s5261_s20  }
  0x3a   :  { %s5262_s25 = smov [#allocation2]  }
  0x3b   :  { %s32_s26 = sshll.u32 %s5262_s25, 4  ;;  %s33_s26 = int_to_ptr.vmem [resolvable:$true] %s32_s26 }
  0x3c   :  { %s5129_s9 = scalar_lea.vmem %s33_s26, 33280  ;;  %p5134_p12 = scmp.lt.s32.totalorder %s33_s26, %s33_s26 }
  0x3d   :  { %p5130_p11 = scmp.ne.s32.totalorder %s33_s26, %s5129_s9  ;;  %p5135_p13 = scmp.lt.s32.totalorder %s5129_s9, %s5129_s9 }
  0x3f   :  { %p5136_p0 = por %p5135_p13, %p5134_p12 }
  0x41   :  { %p5137_p1 = pnand %p5136_p0, %p5130_p11 }
  0x43   :  { %5140 = shalt.err (!%p5137_p1)
}
  0x44   :  { %s5263_s27 = smov 256   ;;  %s5264_s2 = smov 16  }
  0x45   :  { %38 = dma.hbm_to_vmem [thread:$0]  %s5912_s1, 33280, %s33_s26, [#allocation3], %s5263_s27, %s5263_s27, %s5264_s2  }
  0x46   :  { %s5265_s12 = smov [#allocation6]   ;;  %s5266_s15 = smov [#allocation9]  }
  0x47   :  { %s57_s30 = sshll.u32 %s5265_s12, 4  ;;  %s79_s5 = sshll.u32 %s5266_s15, 4  ;;  %s58_s30 = int_to_ptr.vmem [resolvable:$true] %s57_s30  ;;  %s80_s5 = int_to_ptr.vmem [resolvable:$true] %s79_s5 }
  0x48   :  { %s5149_s16 = scalar_lea.vmem %s58_s30, 64  ;;  %p5154_p3 = scmp.lt.s32.totalorder %s58_s30, %s58_s30 }
  0x49   :  { %p5150_p2 = scmp.ne.s32.totalorder %s58_s30, %s5149_s16  ;;  %p5155_p4 = scmp.lt.s32.totalorder %s5149_s16, %s5149_s16 }
  0x4b   :  { %p5156_p5 = por %p5155_p4, %p5154_p3 }
  0x4d   :  { %p5157_p6 = pnand %p5156_p5, %p5150_p2 }
  0x4f   :  { %5160 = shalt.err (!%p5157_p6)
}
  0x50   :  { %60 = dma.hbm_to_vmem [thread:$0]  %s5915_s4, 64, %s58_s30, [#allocation5]  }
  0x51   :  { %s5169_s19 = scalar_lea.vmem %s80_s5, 128  ;;  %p5174_p8 = scmp.lt.s32.totalorder %s80_s5, %s80_s5 }
  0x52   :  { %p5170_p7 = scmp.ne.s32.totalorder %s80_s5, %s5169_s19  ;;  %p5175_p9 = scmp.lt.s32.totalorder %s5169_s19, %s5169_s19 }
  0x54   :  { %p5176_p10 = por %p5175_p9, %p5174_p8 }
  0x56   :  { %p5177_p11 = pnand %p5176_p10, %p5170_p7 }
  0x58   :  { %5180 = shalt.err (!%p5177_p11)
}
  0x59   :  { %82 = dma.hbm_to_vmem [thread:$0]  %s5917_s6, 128, %s80_s5, [#allocation8]  }
  0x5a   :  { %s5267_s20 = smov [#allocation12]   ;;  %s5268_s24 = smov [#allocation15]  }
  0x5b   :  { %s99_s23 = sshll.u32 %s5267_s20, 4  ;;  %s118_s25 = sshll.u32 %s5268_s24, 4  ;;  %s100_s23 = int_to_ptr.vmem [resolvable:$true] %s99_s23  ;;  %s119_s25 = int_to_ptr.vmem [resolvable:$true] %s118_s25 }
  0x5c   :  { %s5189_s26 = scalar_lea.vmem %s100_s23, 64  ;;  %p5194_p13 = scmp.lt.s32.totalorder %s100_s23, %s100_s23 }
  0x5d   :  { %p5190_p12 = scmp.ne.s32.totalorder %s100_s23, %s5189_s26  ;;  %p5195_p0 = scmp.lt.s32.totalorder %s5189_s26, %s5189_s26 }
  0x5f   :  { %p5196_p1 = por %p5195_p0, %p5194_p13 }
  0x61   :  { %p5197_p2 = pnand %p5196_p1, %p5190_p12 }
  0x63   :  { %5200 = shalt.err (!%p5197_p2)
}
  0x64   :  { %102 = dma.hbm_to_vmem [thread:$0]  %s5919_s8, 64, %s100_s23, [#allocation11]  }
  0x65   :  { %s5209_s28 = scalar_lea.vmem %s119_s25, 4096  ;;  %p5214_p4 = scmp.lt.s32.totalorder %s119_s25, %s119_s25 }
  0x66   :  { %p5210_p3 = scmp.ne.s32.totalorder %s119_s25, %s5209_s28  ;;  %p5215_p5 = scmp.lt.s32.totalorder %s5209_s28, %s5209_s28 }
  0x68   :  { %p5216_p6 = por %p5215_p5, %p5214_p4 }
  0x6a   :  { %p5217_p7 = pnand %p5216_p6, %p5210_p3 }
  0x6c   :  { %5220 = shalt.err (!%p5217_p7)
}
  0x6d   :  { %124 = dma.hbm_to_vmem [thread:$0]  %s5921_s10, 4096, %s119_s25, [#allocation14], %s5255_s21, %s5255_s21, %s5256_s22  }
  0x6e   :  { %s5269_s12 = smov [#allocation18]  }
  0x6f   :  { %s144_s30 = sshll.u32 %s5269_s12, 4  ;;  %s145_s30 = int_to_ptr.vmem [resolvable:$true] %s144_s30 }
  0x70   :  { %s5229_s15 = scalar_lea.vmem %s145_s30, 768  ;;  %p5234_p9 = scmp.lt.s32.totalorder %s145_s30, %s145_s30 }
  0x71   :  { %p5230_p8 = scmp.ne.s32.totalorder %s145_s30, %s5229_s15  ;;  %p5235_p10 = scmp.lt.s32.totalorder %s5229_s15, %s5229_s15 }
  0x73   :  { %p5236_p11 = por %p5235_p10, %p5234_p9 }
  0x75   :  { %p5237_p12 = pnand %p5236_p11, %p5230_p8 }
  0x77   :  { %5240 = shalt.err (!%p5237_p12)
}
  0x78   :  { %150 = dma.hbm_to_vmem [thread:$0]  %s5924_s13, 768, %s145_s30, [#allocation17], %s5263_s27, %s5263_s27, %s5264_s2  }
  0x79   :  { %5241 = dma.done.wait [#allocation3], 33280  }
  0x7a   :  { %5242 = vsyncadd [#allocation3], 4294934016 }
  0x7b   :  { %5243 = dma.done.wait [#allocation5], 320  }
  0x7c   :  { %5244 = vsyncadd [#allocation5], 4294966976 }
  0x7d   :  { %5245 = dma.done.wait [#allocation8], 512  }
  0x7e   :  { %5246 = vsyncadd [#allocation8], 4294966784 }
  0x7f   :  { %5247 = dma.done.wait [#allocation11], 128  }
  0x80   :  { %5248 = vsyncadd [#allocation11], 4294967168 }
  0x81   :  { %5249 = dma.done.wait [#allocation14], 4224  }
  0x82   :  { %5250 = vsyncadd [#allocation14], 4294963072 }
  0x83   :  { %5251 = dma.done.wait [#allocation17], 1280  }
  0x84   :  { %5252 = vsyncadd [#allocation17], 4294966016  ;;  %v5270_v0 = vmov 0   ;;  %v4493_v1 = vld [vmem:[#allocation2 + $0x4] ss:$16 sps:$4 sm:$0xff]   ;;  %vm233_vm0 = vcmask 130048  }
  0x85   :  { %269 = vmatprep.mubr.bf16.mxu0 %v5270_v0  ;;  %310 = vmatprep.mubr.bf16.mxu1 %v5270_v0  ;;  %v4495_v2 = vld [vmem:[#allocation2 + $0xc] ss:$16 sps:$4 sm:$0xff]   ;;  %v4497_v3 = vld [vmem:[#allocation2] ss:$16 sps:$4 sm:$0xff]   ;;  %v4498_v4 = vld [vmem:[#allocation2 + $0x8] ss:$16 sps:$4 sm:$0xff]  }
  0x86   :  { %251 = vmatprep.subr.bf16.mxu0 %v4493_v1  ;;  %v185_v5 = vld [vmem:[%s5911_s0] sm:$0xff]  ;;  %292 = vmatprep.subr.bf16.mxu1 %v4495_v2  ;;  %vm2611_vm1 = vcmask 1043456   ;;  %vm5272_vm2 = vmmov 0   ;;  %vm2607_vm3 = vcmask 64512   ;;  %s5274_s25 = smov 100   ;;  %vm3145_vm4 = vcmask 195584  }
  0x87   :  { %v5426_v6 = vpack.c.bf16 %v185_v5, %v185_v5  ;;  %v4499_v7 = vld [vmem:[#allocation2 + $0x100] ss:$16 sps:$4 sm:$0xff]   ;;  %252 = vmatpush1.bf16.msra.mxu0 %v4497_v3  ;;  %293 = vmatpush1.bf16.msra.mxu1 %v4498_v4  ;;  %v4501_v8 = vld [vmem:[#allocation2 + $0x104] ss:$16 sps:$4 sm:$0xff]   ;;  %s5276_s26 = smov 112   ;;  %s5277_s4 = smov 104  }
  0x88   :  { %v4502_v9 = vld [vmem:[#allocation2 + $0x300] ss:$16 sps:$4 sm:$0xff]   ;;  %v4504_v10 = vld [vmem:[#allocation2 + $0x304] ss:$16 sps:$4 sm:$0xff]   ;;  %1122 = vmatprep.subr.bf16.mxu0 %v4501_v8  ;;  %s5278_s9 = smov 120   ;;  %vm2667_vm5 = vcmask 31744  }
  0x89   :  { %v4507_v11 = vld [vmem:[#allocation2 + $0xe4] ss:$16 sps:$4 sm:$0xff]   ;;  %v4505_v12 = vld [vmem:[#allocation2 + $0xe0] ss:$16 sps:$4 sm:$0xff]   ;;  %1163 = vmatprep.subr.bf16.mxu1 %v4504_v10  ;;  %v4600_v10 = vld [vmem:[#allocation2 + $0x30c] ss:$16 sps:$4 sm:$0xff]  }
  0x8a   :  { %3963 = vmatmul.mubr.msk.bf16.vlgmr.msra.gmra.mxu0 %vm233_vm0, %v5426_v6  ;;  %3964 = vmatmul.mubr.msk.bf16.vlgmr.msra.gmra.mxu1 %vm233_vm0, %v5426_v6  ;;  %v4510_v13 = vld [vmem:[#allocation2 + $0x2e4] ss:$16 sps:$4 sm:$0xff]   ;;  %v4508_v14 = vld [vmem:[#allocation2 + $0x2e0] ss:$16 sps:$4 sm:$0xff]   ;;  %vm3212_vm6 = vcmask 1041408  }
  0x8b   :  { %1123 = vmatpush1.bf16.msra.mxu0 %v4499_v7  ;;  %1164 = vmatpush1.bf16.msra.mxu1 %v4502_v9  ;;  %v4513_v15 = vld [vmem:[#allocation2 + $0xc4] ss:$16 sps:$4 sm:$0xff]   ;;  %v4511_v17 = vld [vmem:[#allocation2 + $0xc0] ss:$16 sps:$4 sm:$0xff]   ;;  %v4597_v9 = vld [vmem:[#allocation2 + $0x10c] ss:$16 sps:$4 sm:$0xff]  }
  0x8c   :  { %1124 = vmatprep.subr.bf16.mxu0 %v4507_v11  ;;  %1165 = vmatprep.subr.bf16.mxu1 %v4510_v13  ;;  %v4516_v16 = vld [vmem:[#allocation2 + $0x2c4] ss:$16 sps:$4 sm:$0xff]   ;;  %v4514_v18 = vld [vmem:[#allocation2 + $0x2c0] ss:$16 sps:$4 sm:$0xff]   ;;  %v193_v11 = vlaneseq }
  0x8d   :  { %v4519_v19 = vld [vmem:[#allocation2 + $0xa4] ss:$16 sps:$4 sm:$0xff]   ;;  %v4517_v21 = vld [vmem:[#allocation2 + $0xa0] ss:$16 sps:$4 sm:$0xff]  }
  0x8e   :  { %v4522_v20 = vld [vmem:[#allocation2 + $0x2a4] ss:$16 sps:$4 sm:$0xff]   ;;  %v4520_v22 = vld [vmem:[#allocation2 + $0x2a0] ss:$16 sps:$4 sm:$0xff]  }
  0x8f   :  { %1125 = vmatpush1.bf16.msra.mxu0 %v4505_v12  ;;  %1166 = vmatpush1.bf16.msra.mxu1 %v4508_v14  ;;  %v4525_v23 = vld [vmem:[#allocation2 + $0x84] ss:$16 sps:$4 sm:$0xff]   ;;  %v4523_v25 = vld [vmem:[#allocation2 + $0x80] ss:$16 sps:$4 sm:$0xff]   ;;  %v5430_v12 = vshrl.u32 %v193_v11, 7 }
  0x90   :  { %1126 = vmatprep.subr.bf16.mxu0 %v4513_v15  ;;  %1167 = vmatprep.subr.bf16.mxu1 %v4516_v16  ;;  %v4528_v24 = vld [vmem:[#allocation2 + $0x284] ss:$16 sps:$4 sm:$0xff]   ;;  %v4526_v26 = vld [vmem:[#allocation2 + $0x280] ss:$16 sps:$4 sm:$0xff]   ;;  %v4642_v11 = vld [vmem:[#allocation2 + $0x22c] ss:$16 sps:$4 sm:$0xff]  }
  0x91   :  { %v4531_v27 = vld [vmem:[#allocation2 + $0x64] ss:$16 sps:$4 sm:$0xff]   ;;  %v4529_v29 = vld [vmem:[#allocation2 + $0x60] ss:$16 sps:$4 sm:$0xff]   ;;  %v5433_v13 = vsub.s32 0, %v5430_v12  ;;  %v5436_v14 = vsub.s32 2, %v5430_v12 }
  0x92   :  { %v4534_v28 = vld [vmem:[#allocation2 + $0x264] ss:$16 sps:$4 sm:$0xff]   ;;  %v4532_v30 = vld [vmem:[#allocation2 + $0x260] ss:$16 sps:$4 sm:$0xff]   ;;  %v5439_v16 = vsub.s32 1, %v5430_v12 }
  0x93   :  { %1127 = vmatpush1.bf16.msra.mxu0 %v4511_v17  ;;  %1168 = vmatpush1.bf16.msra.mxu1 %v4514_v18  ;;  %v4537_v31 = vld [vmem:[#allocation2 + $0x44] ss:$16 sps:$4 sm:$0xff]   ;;  %v4535_v33 = vld [vmem:[#allocation2 + $0x40] ss:$16 sps:$4 sm:$0xff]   ;;  %v5442_v17 = vsub.s32 3, %v5430_v12 }
  0x94   :  { %1128 = vmatprep.subr.bf16.mxu0 %v4519_v19  ;;  %1169 = vmatprep.subr.bf16.mxu1 %v4522_v20  ;;  %v4540_v32 = vld [vmem:[#allocation2 + $0x244] ss:$16 sps:$4 sm:$0xff]   ;;  %v4538_v34 = vld [vmem:[#allocation2 + $0x240] ss:$16 sps:$4 sm:$0xff]  }
  0x95   :  { %v4543_v35 = vld [vmem:[#allocation2 + $0x24] ss:$16 sps:$4 sm:$0xff]   ;;  %v4541_v37 = vld [vmem:[#allocation2 + $0x20] ss:$16 sps:$4 sm:$0xff]  }
  0x96   :  { %v4546_v36 = vld [vmem:[#allocation2 + $0x224] ss:$16 sps:$4 sm:$0xff]   ;;  %v4544_v38 = vld [vmem:[#allocation2 + $0x220] ss:$16 sps:$4 sm:$0xff]  }
  0x97   :  { %1129 = vmatpush1.bf16.msra.mxu0 %v4517_v21  ;;  %1170 = vmatpush1.bf16.msra.mxu1 %v4520_v22  ;;  %v4549_v39 = vld [vmem:[#allocation2 + $0x204] ss:$16 sps:$4 sm:$0xff]   ;;  %v4547_v41 = vld [vmem:[#allocation2 + $0x200] ss:$16 sps:$4 sm:$0xff]  }
  0x98   :  { %1130 = vmatprep.subr.bf16.mxu0 %v4525_v23  ;;  %1171 = vmatprep.subr.bf16.mxu1 %v4528_v24  ;;  %v4552_v40 = vld [vmem:[#allocation2 + $0x404] ss:$16 sps:$4 sm:$0xff]   ;;  %v4550_v42 = vld [vmem:[#allocation2 + $0x400] ss:$16 sps:$4 sm:$0xff]  }
  0x99   :  { %v4555_v43 = vld [vmem:[#allocation2 + $0x1e4] ss:$16 sps:$4 sm:$0xff]   ;;  %v4553_v44 = vld [vmem:[#allocation2 + $0x1e0] ss:$16 sps:$4 sm:$0xff]  }
  0x9a   :  { %v4558_v45 = vld [vmem:[#allocation2 + $0x3e4] ss:$16 sps:$4 sm:$0xff]   ;;  %v4556_v46 = vld [vmem:[#allocation2 + $0x3e0] ss:$16 sps:$4 sm:$0xff]  }
  0x9b   :  { %1131 = vmatpush1.bf16.msra.mxu0 %v4523_v25  ;;  %1172 = vmatpush1.bf16.msra.mxu1 %v4526_v26  ;;  %v4561_v47 = vld [vmem:[#allocation2 + $0x1c4] ss:$16 sps:$4 sm:$0xff]   ;;  %v4559_v49 = vld [vmem:[#allocation2 + $0x1c0] ss:$16 sps:$4 sm:$0xff]  }
  0x9c   :  { %1132 = vmatprep.subr.bf16.mxu0 %v4531_v27  ;;  %1173 = vmatprep.subr.bf16.mxu1 %v4534_v28  ;;  %v4564_v48 = vld [vmem:[#allocation2 + $0x3c4] ss:$16 sps:$4 sm:$0xff]   ;;  %v4562_v50 = vld [vmem:[#allocation2 + $0x3c0] ss:$16 sps:$4 sm:$0xff]  }
  0x9d   :  { %v4567_v51 = vld [vmem:[#allocation2 + $0x1a4] ss:$16 sps:$4 sm:$0xff]   ;;  %v4565_v53 = vld [vmem:[#allocation2 + $0x1a0] ss:$16 sps:$4 sm:$0xff]  }
  0x9e   :  { %v4570_v52 = vld [vmem:[#allocation2 + $0x3a4] ss:$16 sps:$4 sm:$0xff]   ;;  %v4568_v54 = vld [vmem:[#allocation2 + $0x3a0] ss:$16 sps:$4 sm:$0xff]  }
  0x9f   :  { %1133 = vmatpush1.bf16.msra.mxu0 %v4529_v29  ;;  %1174 = vmatpush1.bf16.msra.mxu1 %v4532_v30  ;;  %v4573_v55 = vld [vmem:[#allocation2 + $0x184] ss:$16 sps:$4 sm:$0xff]   ;;  %v4571_v57 = vld [vmem:[#allocation2 + $0x180] ss:$16 sps:$4 sm:$0xff]  }
  0xa0   :  { %1134 = vmatprep.subr.bf16.mxu0 %v4537_v31  ;;  %1175 = vmatprep.subr.bf16.mxu1 %v4540_v32  ;;  %v4576_v56 = vld [vmem:[#allocation2 + $0x384] ss:$16 sps:$4 sm:$0xff]   ;;  %v4574_v58 = vld [vmem:[#allocation2 + $0x380] ss:$16 sps:$4 sm:$0xff]  }
  0xa1   :  { %v4579_v59 = vld [vmem:[#allocation2 + $0x164] ss:$16 sps:$4 sm:$0xff]   ;;  %v4577_v61 = vld [vmem:[#allocation2 + $0x160] ss:$16 sps:$4 sm:$0xff]  }
  0xa2   :  { %v4582_v60 = vld [vmem:[#allocation2 + $0x364] ss:$16 sps:$4 sm:$0xff]   ;;  %v4580_v62 = vld [vmem:[#allocation2 + $0x360] ss:$16 sps:$4 sm:$0xff]  }
  0xa3   :  { %1135 = vmatpush1.bf16.msra.mxu0 %v4535_v33  ;;  %1176 = vmatpush1.bf16.msra.mxu1 %v4538_v34  ;;  %v4585_v63 = vld [vmem:[#allocation2 + $0x144] ss:$16 sps:$4 sm:$0xff]   ;;  %v4583_v2 = vld [vmem:[#allocation2 + $0x140] ss:$16 sps:$4 sm:$0xff]  }
  0xa4   :  { %1136 = vmatprep.subr.bf16.mxu0 %v4543_v35  ;;  %1177 = vmatprep.subr.bf16.mxu1 %v4546_v36  ;;  %v4588_v1 = vld [vmem:[#allocation2 + $0x344] ss:$16 sps:$4 sm:$0xff]   ;;  %v4586_v3 = vld [vmem:[#allocation2 + $0x340] ss:$16 sps:$4 sm:$0xff]  }
  0xa5   :  { %v4591_v4 = vld [vmem:[#allocation2 + $0x124] ss:$16 sps:$4 sm:$0xff]   ;;  %v4589_v7 = vld [vmem:[#allocation2 + $0x120] ss:$16 sps:$4 sm:$0xff]  }
  0xa6   :  { %v4594_v5 = vld [vmem:[#allocation2 + $0x324] ss:$16 sps:$4 sm:$0xff]   ;;  %v4592_v8 = vld [vmem:[#allocation2 + $0x320] ss:$16 sps:$4 sm:$0xff]  }
  0xa7   :  { %1137 = vmatpush1.bf16.msra.mxu0 %v4541_v37  ;;  %1178 = vmatpush1.bf16.msra.mxu1 %v4544_v38  ;;  %v191_v15 = vld [vmem:[#allocation4] ss:$4 sm:$0xf] }
  0xa8   :  { %1138 = vmatprep.subr.bf16.mxu0 %v4549_v39  ;;  %1179 = vmatprep.subr.bf16.mxu1 %v4552_v40  ;;  %v196_v18 = vrot.slane %v191_v15, %v5433_v13  ;;  %v204_v19 = vrot.slane %v191_v15, %v5436_v14  ;;  %v200_v20 = vrot.slane %v191_v15, %v5439_v16 }
  0xa9   :  { %v208_v21 = vrot.slane %v191_v15, %v5442_v17  ;;  %v4637_v15 = vld [vmem:[#allocation2 + $0x28] ss:$16 sps:$4 sm:$0xff]  }
  0xab   :  { %1139 = vmatpush2.bf16.msra.mxu0 %v4547_v41  ;;  %1180 = vmatpush2.bf16.msra.mxu1 %v4550_v42 }
  0xac   :  { %1140 = vmatprep.subr.bf16.mxu0 %v4555_v43  ;;  %1181 = vmatprep.subr.bf16.mxu1 %v4558_v45  ;;  %v4595_v45 = vld [vmem:[#allocation2 + $0x108] ss:$16 sps:$4 sm:$0xff]  }
  0xaf   :  { %1141 = vmatpush2.bf16.msra.mxu0 %v4553_v44  ;;  %1182 = vmatpush2.bf16.msra.mxu1 %v4556_v46  ;;  %v4598_v46 = vld [vmem:[#allocation2 + $0x308] ss:$16 sps:$4 sm:$0xff]  }
  0xb0   :  { %1142 = vmatprep.subr.bf16.mxu0 %v4561_v47  ;;  %1183 = vmatprep.subr.bf16.mxu1 %v4564_v48  ;;  %v4603_v48 = vld [vmem:[#allocation2 + $0xec] ss:$16 sps:$4 sm:$0xff]  }
  0xb3   :  { %1143 = vmatpush2.bf16.msra.mxu0 %v4559_v49  ;;  %1184 = vmatpush2.bf16.msra.mxu1 %v4562_v50  ;;  %v4606_v49 = vld [vmem:[#allocation2 + $0x2ec] ss:$16 sps:$4 sm:$0xff]   ;;  %v4601_v50 = vld [vmem:[#allocation2 + $0xe8] ss:$16 sps:$4 sm:$0xff]  }
  0xb4   :  { %1144 = vmatprep.subr.bf16.mxu0 %v4567_v51  ;;  %1185 = vmatprep.subr.bf16.mxu1 %v4570_v52  ;;  %v4604_v51 = vld [vmem:[#allocation2 + $0x2e8] ss:$16 sps:$4 sm:$0xff]   ;;  %v4609_v52 = vld [vmem:[#allocation2 + $0xcc] ss:$16 sps:$4 sm:$0xff]  }
  0xb7   :  { %1145 = vmatpush2.bf16.msra.mxu0 %v4565_v53  ;;  %1186 = vmatpush2.bf16.msra.mxu1 %v4568_v54  ;;  %v4612_v53 = vld [vmem:[#allocation2 + $0x2cc] ss:$16 sps:$4 sm:$0xff]   ;;  %v4607_v54 = vld [vmem:[#allocation2 + $0xc8] ss:$16 sps:$4 sm:$0xff]  }
  0xb8   :  { %1146 = vmatprep.subr.bf16.mxu0 %v4573_v55  ;;  %1187 = vmatprep.subr.bf16.mxu1 %v4576_v56  ;;  %v4610_v55 = vld [vmem:[#allocation2 + $0x2c8] ss:$16 sps:$4 sm:$0xff]   ;;  %v4615_v56 = vld [vmem:[#allocation2 + $0xac] ss:$16 sps:$4 sm:$0xff]  }
  0xbb   :  { %1147 = vmatpush2.bf16.msra.mxu0 %v4571_v57  ;;  %1188 = vmatpush2.bf16.msra.mxu1 %v4574_v58  ;;  %v4618_v57 = vld [vmem:[#allocation2 + $0x2ac] ss:$16 sps:$4 sm:$0xff]   ;;  %v4613_v58 = vld [vmem:[#allocation2 + $0xa8] ss:$16 sps:$4 sm:$0xff]  }
  0xbc   :  { %1148 = vmatprep.subr.bf16.mxu0 %v4579_v59  ;;  %1189 = vmatprep.subr.bf16.mxu1 %v4582_v60  ;;  %v4616_v59 = vld [vmem:[#allocation2 + $0x2a8] ss:$16 sps:$4 sm:$0xff]   ;;  %v4621_v60 = vld [vmem:[#allocation2 + $0x8c] ss:$16 sps:$4 sm:$0xff]  }
  0xbf   :  { %1149 = vmatpush2.bf16.msra.mxu0 %v4577_v61  ;;  %1190 = vmatpush2.bf16.msra.mxu1 %v4580_v62  ;;  %v4624_v61 = vld [vmem:[#allocation2 + $0x28c] ss:$16 sps:$4 sm:$0xff]   ;;  %v4619_v62 = vld [vmem:[#allocation2 + $0x88] ss:$16 sps:$4 sm:$0xff]  }
  0xc0   :  { %1150 = vmatprep.subr.bf16.mxu0 %v4585_v63  ;;  %1191 = vmatprep.subr.bf16.mxu1 %v4588_v1  ;;  %v4622_v63 = vld [vmem:[#allocation2 + $0x288] ss:$16 sps:$4 sm:$0xff]   ;;  %v4627_v1 = vld [vmem:[#allocation2 + $0x6c] ss:$16 sps:$4 sm:$0xff]  }
  0xc3   :  { %1151 = vmatpush2.bf16.msra.mxu0 %v4583_v2  ;;  %1192 = vmatpush2.bf16.msra.mxu1 %v4586_v3  ;;  %v4630_v2 = vld [vmem:[#allocation2 + $0x26c] ss:$16 sps:$4 sm:$0xff]   ;;  %v4625_v3 = vld [vmem:[#allocation2 + $0x68] ss:$16 sps:$4 sm:$0xff]  }
  0xc4   :  { %1152 = vmatprep.subr.bf16.mxu0 %v4591_v4  ;;  %1193 = vmatprep.subr.bf16.mxu1 %v4594_v5  ;;  %v4628_v4 = vld [vmem:[#allocation2 + $0x268] ss:$16 sps:$4 sm:$0xff]   ;;  %v4633_v5 = vld [vmem:[#allocation2 + $0x4c] ss:$16 sps:$4 sm:$0xff]  }
  0xc7   :  { %1153 = vmatpush2.bf16.msra.mxu0 %v4589_v7  ;;  %1194 = vmatpush2.bf16.msra.mxu1 %v4592_v8  ;;  %v4636_v7 = vld [vmem:[#allocation2 + $0x24c] ss:$16 sps:$4 sm:$0xff]   ;;  %v4631_v8 = vld [vmem:[#allocation2 + $0x48] ss:$16 sps:$4 sm:$0xff]  }
  0xc8   :  { %1204 = vmatprep.subr.bf16.mxu0 %v4597_v9  ;;  %1245 = vmatprep.subr.bf16.mxu1 %v4600_v10  ;;  %v4634_v9 = vld [vmem:[#allocation2 + $0x248] ss:$16 sps:$4 sm:$0xff]   ;;  %v4639_v10 = vld [vmem:[#allocation2 + $0x2c] ss:$16 sps:$4 sm:$0xff]  }
 0x14a   :  { %v271_v22 = vpop.f32.mrf.mxu0  ;;  %v312_v23 = vpop.f32.mrf.mxu1 }
 0x14b   :  { %v272_v24 = vadd.f32 %v271_v22, %v196_v18  ;;  %v313_v25 = vadd.f32 %v312_v23, %v204_v19  ;;  %v4640_v18 = vld [vmem:[#allocation2 + $0x228] ss:$16 sps:$4 sm:$0xff]   ;;  %v4645_v19 = vld [vmem:[#allocation2 + $0x20c] ss:$16 sps:$4 sm:$0xff]  }
 0x14c   :  { %v273_v26 = vpop.f32.mrf.mxu0  ;;  %v314_v27 = vpop.f32.mrf.mxu1  ;;  %v4646_v22 = vld [vmem:[#allocation2 + $0x408] ss:$16 sps:$4 sm:$0xff]   ;;  %v4651_v23 = vld [vmem:[#allocation2 + $0x1ec] ss:$16 sps:$4 sm:$0xff]  }
 0x14d   :  { %v319_v28 = vmax.f32 %v272_v24, 0.0  ;;  %v321_v29 = vmax.f32 %v313_v25, 0.0  ;;  %v274_v30 = vadd.f32 %v273_v26, %v200_v20  ;;  %v315_v31 = vadd.f32 %v314_v27, %v208_v21  ;;  %v4648_v20 = vld [vmem:[#allocation2 + $0x40c] ss:$16 sps:$4 sm:$0xff]   ;;  %v4643_v21 = vld [vmem:[#allocation2 + $0x208] ss:$16 sps:$4 sm:$0xff]  }
 0x14e   :  { %v275_v32 = vpop.f32.mrf.mxu0  ;;  %v316_v33 = vpop.f32.mrf.mxu1  ;;  %v4654_v24 = vld [vmem:[#allocation2 + $0x3ec] ss:$16 sps:$4 sm:$0xff]   ;;  %v4649_v25 = vld [vmem:[#allocation2 + $0x1e8] ss:$16 sps:$4 sm:$0xff]  }
 0x14f   :  { %v325_v34 = vmin.f32 %v321_v29, 6.0  ;;  %v320_v35 = vmax.f32 %v274_v30, 0.0  ;;  %v322_v36 = vmax.f32 %v315_v31, 0.0  ;;  %v323_v37 = vmin.f32 %v319_v28, 6.0  ;;  %v4652_v26 = vld [vmem:[#allocation2 + $0x3e8] ss:$16 sps:$4 sm:$0xff]  }
 0x150   :  { %v276_v38 = vpop.f32.mrf.mxu0  ;;  %v317_v39 = vpop.f32.mrf.mxu1  ;;  %v4657_v27 = vld [vmem:[#allocation2 + $0x1cc] ss:$16 sps:$4 sm:$0xff]   ;;  %v4655_v29 = vld [vmem:[#allocation2 + $0x1c8] ss:$16 sps:$4 sm:$0xff]  }
 0x151   :  { %v324_v40 = vmin.f32 %v320_v35, 6.0  ;;  %v326_v41 = vmin.f32 %v322_v36, 6.0  ;;  %v5448_v42 = vpack.c.bf16 %v325_v34, %v325_v34  ;;  %v5450_v47 = vpack.c.bf16 %v323_v37, %v323_v37  ;;  %v4660_v28 = vld [vmem:[#allocation2 + $0x3cc] ss:$16 sps:$4 sm:$0xff]   ;;  %v4658_v30 = vld [vmem:[#allocation2 + $0x3c8] ss:$16 sps:$4 sm:$0xff]  }
 0x152   :  { %v4663_v31 = vld [vmem:[#allocation2 + $0x1ac] ss:$16 sps:$4 sm:$0xff]   ;;  %v4661_v33 = vld [vmem:[#allocation2 + $0x1a8] ss:$16 sps:$4 sm:$0xff]  }
 0x153   :  { %v456_v43 = vpack.c.bf16 %v324_v40, %v324_v40  ;;  %v458_v44 = vpack.c.bf16 %v326_v41, %v326_v41  ;;  %v4666_v32 = vld [vmem:[#allocation2 + $0x3ac] ss:$16 sps:$4 sm:$0xff]   ;;  %v4664_v34 = vld [vmem:[#allocation2 + $0x3a8] ss:$16 sps:$4 sm:$0xff]  }
 0x154   :  { %v4669_v35 = vld [vmem:[#allocation2 + $0x18c] ss:$16 sps:$4 sm:$0xff]   ;;  %v4667_v37 = vld [vmem:[#allocation2 + $0x188] ss:$16 sps:$4 sm:$0xff]  }
 0x155   :  { %1154 = vmatprep.mubr.bf16.mxu0 %v456_v43  ;;  %1195 = vmatprep.mubr.bf16.mxu1 %v458_v44  ;;  %v4672_v36 = vld [vmem:[#allocation2 + $0x38c] ss:$16 sps:$4 sm:$0xff]   ;;  %v4670_v38 = vld [vmem:[#allocation2 + $0x388] ss:$16 sps:$4 sm:$0xff]  }
 0x156   :  { %1155 = vmatmul.mubr.bf16.vlgmr.msra.gmra.mxu0 %v5450_v47  ;;  %1196 = vmatmul.mubr.bf16.vlgmr.msra.gmra.mxu1 %v5448_v42  ;;  %v4675_v39 = vld [vmem:[#allocation2 + $0x16c] ss:$16 sps:$4 sm:$0xff]   ;;  %v4673_v41 = vld [vmem:[#allocation2 + $0x168] ss:$16 sps:$4 sm:$0xff]  }
 0x157   :  { %1205 = vmatpush1.bf16.msra.mxu0 %v4595_v45  ;;  %1246 = vmatpush1.bf16.msra.mxu1 %v4598_v46  ;;  %v4678_v40 = vld [vmem:[#allocation2 + $0x36c] ss:$16 sps:$4 sm:$0xff]   ;;  %v4679_v46 = vld [vmem:[#allocation2 + $0x148] ss:$16 sps:$4 sm:$0xff]  }
 0x158   :  { %1236 = vmatprep.mubr.bf16.mxu0 %v456_v43  ;;  %1277 = vmatprep.mubr.bf16.mxu1 %v458_v44  ;;  %v4676_v43 = vld [vmem:[#allocation2 + $0x368] ss:$16 sps:$4 sm:$0xff]   ;;  %v4681_v44 = vld [vmem:[#allocation2 + $0x14c] ss:$16 sps:$4 sm:$0xff]  }
 0x159   :  { %1206 = vmatprep.subr.bf16.mxu0 %v4603_v48  ;;  %1247 = vmatprep.subr.bf16.mxu1 %v4606_v49  ;;  %v4684_v45 = vld [vmem:[#allocation2 + $0x34c] ss:$16 sps:$4 sm:$0xff]   ;;  %v4682_v48 = vld [vmem:[#allocation2 + $0x348] ss:$16 sps:$4 sm:$0xff]  }
 0x15a   :  { %v4687_v49 = vld [vmem:[#allocation2 + $0x12c] ss:$16 sps:$4 sm:$0xff]  }
 0x15b   :  { %1207 = vmatpush1.bf16.msra.mxu0 %v4601_v50  ;;  %1248 = vmatpush1.bf16.msra.mxu1 %v4604_v51  ;;  %v4690_v50 = vld [vmem:[#allocation2 + $0x32c] ss:$16 sps:$4 sm:$0xff]   ;;  %v4685_v51 = vld [vmem:[#allocation2 + $0x128] ss:$16 sps:$4 sm:$0xff]  }
 0x15c   :  { %1208 = vmatprep.subr.bf16.mxu0 %v4609_v52  ;;  %1249 = vmatprep.subr.bf16.mxu1 %v4612_v53  ;;  %v4688_v52 = vld [vmem:[#allocation2 + $0x328] ss:$16 sps:$4 sm:$0xff]   ;;  %v4693_v53 = vld [vmem:[#allocation2 + $0x504] ss:$16 sps:$4 sm:$0xff]  }
 0x15f   :  { %1209 = vmatpush1.bf16.msra.mxu0 %v4607_v54  ;;  %1250 = vmatpush1.bf16.msra.mxu1 %v4610_v55  ;;  %v4691_v54 = vld [vmem:[#allocation2 + $0x500] ss:$16 sps:$4 sm:$0xff]   ;;  %v4696_v55 = vld [vmem:[#allocation2 + $0x4e4] ss:$16 sps:$4 sm:$0xff]  }
 0x160   :  { %1210 = vmatprep.subr.bf16.mxu0 %v4615_v56  ;;  %1251 = vmatprep.subr.bf16.mxu1 %v4618_v57  ;;  %v4694_v56 = vld [vmem:[#allocation2 + $0x4e0] ss:$16 sps:$4 sm:$0xff]   ;;  %v4699_v57 = vld [vmem:[#allocation2 + $0x4c4] ss:$16 sps:$4 sm:$0xff]  }
 0x163   :  { %1211 = vmatpush1.bf16.msra.mxu0 %v4613_v58  ;;  %1252 = vmatpush1.bf16.msra.mxu1 %v4616_v59  ;;  %v4697_v58 = vld [vmem:[#allocation2 + $0x4c0] ss:$16 sps:$4 sm:$0xff]   ;;  %v4702_v59 = vld [vmem:[#allocation2 + $0x4a4] ss:$16 sps:$4 sm:$0xff]  }
 0x164   :  { %1212 = vmatprep.subr.bf16.mxu0 %v4621_v60  ;;  %1253 = vmatprep.subr.bf16.mxu1 %v4624_v61  ;;  %v4700_v60 = vld [vmem:[#allocation2 + $0x4a0] ss:$16 sps:$4 sm:$0xff]   ;;  %v4705_v61 = vld [vmem:[#allocation2 + $0x484] ss:$16 sps:$4 sm:$0xff]  }
 0x167   :  { %1213 = vmatpush1.bf16.msra.mxu0 %v4619_v62  ;;  %1254 = vmatpush1.bf16.msra.mxu1 %v4622_v63  ;;  %v4739_v62 = vld [vmem:[#allocation2 + $0x700] ss:$16 sps:$4 sm:$0xff]   ;;  %v4741_v63 = vld [vmem:[#allocation2 + $0x704] ss:$16 sps:$4 sm:$0xff]  }
 0x168   :  { %1214 = vmatprep.subr.bf16.mxu0 %v4627_v1  ;;  %1255 = vmatprep.subr.bf16.mxu1 %v4630_v2  ;;  %v4703_v1 = vld [vmem:[#allocation2 + $0x480] ss:$16 sps:$4 sm:$0xff]   ;;  %v4747_v2 = vld [vmem:[#allocation2 + $0x6e4] ss:$16 sps:$4 sm:$0xff]  }
 0x16b   :  { %1215 = vmatpush1.bf16.msra.mxu0 %v4625_v3  ;;  %1256 = vmatpush1.bf16.msra.mxu1 %v4628_v4  ;;  %v4706_v3 = vld [vmem:[#allocation2 + $0x460] ss:$16 sps:$4 sm:$0xff]   ;;  %v4711_v4 = vld [vmem:[#allocation2 + $0x444] ss:$16 sps:$4 sm:$0xff]  }
 0x16c   :  { %1216 = vmatprep.subr.bf16.mxu0 %v4633_v5  ;;  %1257 = vmatprep.subr.bf16.mxu1 %v4636_v7  ;;  %v4751_v5 = vld [vmem:[#allocation2 + $0x6c0] ss:$16 sps:$4 sm:$0xff]   ;;  %v4753_v7 = vld [vmem:[#allocation2 + $0x6c4] ss:$16 sps:$4 sm:$0xff]  }
 0x16f   :  { %1217 = vmatpush1.bf16.msra.mxu0 %v4631_v8  ;;  %1258 = vmatpush1.bf16.msra.mxu1 %v4634_v9  ;;  %v4709_v8 = vld [vmem:[#allocation2 + $0x440] ss:$16 sps:$4 sm:$0xff]   ;;  %v4714_v9 = vld [vmem:[#allocation2 + $0x424] ss:$16 sps:$4 sm:$0xff]  }
 0x170   :  { %1218 = vmatprep.subr.bf16.mxu0 %v4639_v10  ;;  %1259 = vmatprep.subr.bf16.mxu1 %v4642_v11  ;;  %v4757_v10 = vld [vmem:[#allocation2 + $0x6a0] ss:$16 sps:$4 sm:$0xff]   ;;  %v4759_v11 = vld [vmem:[#allocation2 + $0x6a4] ss:$16 sps:$4 sm:$0xff]  }
 0x173   :  { %1219 = vmatpush1.bf16.msra.mxu0 %v4637_v15  ;;  %1260 = vmatpush1.bf16.msra.mxu1 %v4640_v18  ;;  %v4712_v15 = vld [vmem:[#allocation2 + $0x420] ss:$16 sps:$4 sm:$0xff]   ;;  %v4717_v18 = vld [vmem:[#allocation2 + $0x604] ss:$16 sps:$4 sm:$0xff]  }
 0x174   :  { %1220 = vmatprep.subr.bf16.mxu0 %v4645_v19  ;;  %1261 = vmatprep.subr.bf16.mxu1 %v4648_v20  ;;  %v4763_v19 = vld [vmem:[#allocation2 + $0x680] ss:$16 sps:$4 sm:$0xff]   ;;  %v4765_v20 = vld [vmem:[#allocation2 + $0x684] ss:$16 sps:$4 sm:$0xff]  }
 0x177   :  { %1221 = vmatpush2.bf16.msra.mxu0 %v4643_v21  ;;  %1262 = vmatpush2.bf16.msra.mxu1 %v4646_v22  ;;  %v4715_v21 = vld [vmem:[#allocation2 + $0x600] ss:$16 sps:$4 sm:$0xff]   ;;  %v4720_v22 = vld [vmem:[#allocation2 + $0x5e4] ss:$16 sps:$4 sm:$0xff]  }
 0x178   :  { %1222 = vmatprep.subr.bf16.mxu0 %v4651_v23  ;;  %1263 = vmatprep.subr.bf16.mxu1 %v4654_v24  ;;  %v4769_v23 = vld [vmem:[#allocation2 + $0x660] ss:$16 sps:$4 sm:$0xff]   ;;  %v4771_v24 = vld [vmem:[#allocation2 + $0x664] ss:$16 sps:$4 sm:$0xff]  }
 0x17b   :  { %1223 = vmatpush2.bf16.msra.mxu0 %v4649_v25  ;;  %1264 = vmatpush2.bf16.msra.mxu1 %v4652_v26  ;;  %v4718_v25 = vld [vmem:[#allocation2 + $0x5e0] ss:$16 sps:$4 sm:$0xff]   ;;  %v4723_v26 = vld [vmem:[#allocation2 + $0x5c4] ss:$16 sps:$4 sm:$0xff]  }
 0x17c   :  { %1224 = vmatprep.subr.bf16.mxu0 %v4657_v27  ;;  %1265 = vmatprep.subr.bf16.mxu1 %v4660_v28  ;;  %v4775_v27 = vld [vmem:[#allocation2 + $0x640] ss:$16 sps:$4 sm:$0xff]   ;;  %v4777_v28 = vld [vmem:[#allocation2 + $0x644] ss:$16 sps:$4 sm:$0xff]  }
 0x17f   :  { %1225 = vmatpush2.bf16.msra.mxu0 %v4655_v29  ;;  %1266 = vmatpush2.bf16.msra.mxu1 %v4658_v30  ;;  %v4721_v29 = vld [vmem:[#allocation2 + $0x5c0] ss:$16 sps:$4 sm:$0xff]   ;;  %v4726_v30 = vld [vmem:[#allocation2 + $0x5a4] ss:$16 sps:$4 sm:$0xff]  }
 0x180   :  { %1226 = vmatprep.subr.bf16.mxu0 %v4663_v31  ;;  %1267 = vmatprep.subr.bf16.mxu1 %v4666_v32  ;;  %v4781_v31 = vld [vmem:[#allocation2 + $0x620] ss:$16 sps:$4 sm:$0xff]   ;;  %v4783_v32 = vld [vmem:[#allocation2 + $0x624] ss:$16 sps:$4 sm:$0xff]  }
 0x183   :  { %1227 = vmatpush2.bf16.msra.mxu0 %v4661_v33  ;;  %1268 = vmatpush2.bf16.msra.mxu1 %v4664_v34  ;;  %v4724_v33 = vld [vmem:[#allocation2 + $0x5a0] ss:$16 sps:$4 sm:$0xff]   ;;  %v4729_v34 = vld [vmem:[#allocation2 + $0x584] ss:$16 sps:$4 sm:$0xff]  }
 0x184   :  { %1228 = vmatprep.subr.bf16.mxu0 %v4669_v35  ;;  %1269 = vmatprep.subr.bf16.mxu1 %v4672_v36  ;;  %v4787_v35 = vld [vmem:[#allocation2 + $0x800] ss:$16 sps:$4 sm:$0xff]   ;;  %v4789_v36 = vld [vmem:[#allocation2 + $0x804] ss:$16 sps:$4 sm:$0xff]  }
 0x187   :  { %1229 = vmatpush2.bf16.msra.mxu0 %v4667_v37  ;;  %1270 = vmatpush2.bf16.msra.mxu1 %v4670_v38  ;;  %v4727_v37 = vld [vmem:[#allocation2 + $0x580] ss:$16 sps:$4 sm:$0xff]   ;;  %v4732_v38 = vld [vmem:[#allocation2 + $0x564] ss:$16 sps:$4 sm:$0xff]  }
 0x188   :  { %1230 = vmatprep.subr.bf16.mxu0 %v4675_v39  ;;  %1271 = vmatprep.subr.bf16.mxu1 %v4678_v40  ;;  %v4793_v39 = vld [vmem:[#allocation2 + $0x7e0] ss:$16 sps:$4 sm:$0xff]   ;;  %v4795_v40 = vld [vmem:[#allocation2 + $0x7e4] ss:$16 sps:$4 sm:$0xff]  }
 0x18b   :  { %1231 = vmatpush2.bf16.msra.mxu0 %v4673_v41  ;;  %1272 = vmatpush2.bf16.msra.mxu1 %v4676_v43  ;;  %v4730_v41 = vld [vmem:[#allocation2 + $0x560] ss:$16 sps:$4 sm:$0xff]   ;;  %v4735_v43 = vld [vmem:[#allocation2 + $0x544] ss:$16 sps:$4 sm:$0xff]  }
 0x18c   :  { %1232 = vmatprep.subr.bf16.mxu0 %v4681_v44  ;;  %1273 = vmatprep.subr.bf16.mxu1 %v4684_v45  ;;  %v4799_v44 = vld [vmem:[#allocation2 + $0x7c0] ss:$16 sps:$4 sm:$0xff]   ;;  %v4801_v45 = vld [vmem:[#allocation2 + $0x7c4] ss:$16 sps:$4 sm:$0xff]  }
 0x18f   :  { %1233 = vmatpush2.bf16.msra.mxu0 %v4679_v46  ;;  %1274 = vmatpush2.bf16.msra.mxu1 %v4682_v48  ;;  %v4733_v46 = vld [vmem:[#allocation2 + $0x540] ss:$16 sps:$4 sm:$0xff]   ;;  %v4738_v48 = vld [vmem:[#allocation2 + $0x524] ss:$16 sps:$4 sm:$0xff]  }
 0x190   :  { %1234 = vmatprep.subr.bf16.mxu0 %v4687_v49  ;;  %1275 = vmatprep.subr.bf16.mxu1 %v4690_v50  ;;  %v4805_v49 = vld [vmem:[#allocation2 + $0x7a0] ss:$16 sps:$4 sm:$0xff]   ;;  %v4807_v50 = vld [vmem:[#allocation2 + $0x7a4] ss:$16 sps:$4 sm:$0xff]  }
 0x193   :  { %1235 = vmatpush2.bf16.msra.mxu0 %v4685_v51  ;;  %1276 = vmatpush2.bf16.msra.mxu1 %v4688_v52  ;;  %v4736_v51 = vld [vmem:[#allocation2 + $0x520] ss:$16 sps:$4 sm:$0xff]   ;;  %v4744_v52 = vld [vmem:[#allocation2 + $0x50c] ss:$16 sps:$4 sm:$0xff]  }
 0x194   :  { %2089 = vmatprep.subr.bf16.mxu0 %v4693_v53  ;;  %2130 = vmatprep.subr.bf16.mxu1 %v4741_v63  ;;  %v4811_v53 = vld [vmem:[#allocation2 + $0x780] ss:$16 sps:$4 sm:$0xff]  }
 0x196   :  { %1237 = vmatmul.mubr.bf16.vlgmr.msra.gmra.mxu0 %v5450_v47  ;;  %1278 = vmatmul.mubr.bf16.vlgmr.msra.gmra.mxu1 %v5448_v42  ;;  %v4708_v47 = vld [vmem:[#allocation2 + $0x464] ss:$16 sps:$4 sm:$0xff]   ;;  %v4745_v42 = vld [vmem:[#allocation2 + $0x6e0] ss:$16 sps:$4 sm:$0xff]  }
 0x197   :  { %2090 = vmatpush1.bf16.msra.mxu0 %v4691_v54  ;;  %2131 = vmatpush1.bf16.msra.mxu1 %v4739_v62  ;;  %v4813_v54 = vld [vmem:[#allocation2 + $0x784] ss:$16 sps:$4 sm:$0xff]  }
 0x198   :  { %2091 = vmatprep.subr.bf16.mxu0 %v4696_v55  ;;  %2132 = vmatprep.subr.bf16.mxu1 %v4747_v2  ;;  %v4819_v55 = vld [vmem:[#allocation2 + $0x764] ss:$16 sps:$4 sm:$0xff]  }
 0x199   :  { %v5456_v62 = vld [vmem:[#allocation4 + $0x1] ss:$4 sm:$0xf] }
 0x19a   :  { %v465_v63 = vrot.slane %v5456_v62, %v5433_v13 }
 0x19b   :  { %2092 = vmatpush1.bf16.msra.mxu0 %v4694_v56  ;;  %2133 = vmatpush1.bf16.msra.mxu1 %v4745_v42  ;;  %v4817_v56 = vld [vmem:[#allocation2 + $0x760] ss:$16 sps:$4 sm:$0xff]  }
 0x19c   :  { %2093 = vmatprep.subr.bf16.mxu0 %v4699_v57  ;;  %2134 = vmatprep.subr.bf16.mxu1 %v4753_v7  ;;  %v4825_v57 = vld [vmem:[#allocation2 + $0x744] ss:$16 sps:$4 sm:$0xff]  }
 0x19f   :  { %2094 = vmatpush1.bf16.msra.mxu0 %v4697_v58  ;;  %2135 = vmatpush1.bf16.msra.mxu1 %v4751_v5  ;;  %v4823_v58 = vld [vmem:[#allocation2 + $0x740] ss:$16 sps:$4 sm:$0xff]  }
 0x1a0   :  { %2095 = vmatprep.subr.bf16.mxu0 %v4702_v59  ;;  %2136 = vmatprep.subr.bf16.mxu1 %v4759_v11  ;;  %v4831_v59 = vld [vmem:[#allocation2 + $0x724] ss:$16 sps:$4 sm:$0xff]  }
 0x1a3   :  { %2096 = vmatpush1.bf16.msra.mxu0 %v4700_v60  ;;  %2137 = vmatpush1.bf16.msra.mxu1 %v4757_v10  ;;  %v4829_v60 = vld [vmem:[#allocation2 + $0x720] ss:$16 sps:$4 sm:$0xff]  }
 0x1a4   :  { %2097 = vmatprep.subr.bf16.mxu0 %v4705_v61  ;;  %2138 = vmatprep.subr.bf16.mxu1 %v4765_v20  ;;  %v4837_v61 = vld [vmem:[#allocation2 + $0x70c] ss:$16 sps:$4 sm:$0xff]  }
 0x1a7   :  { %2098 = vmatpush1.bf16.msra.mxu0 %v4703_v1  ;;  %2139 = vmatpush1.bf16.msra.mxu1 %v4763_v19  ;;  %v469_v1 = vrot.slane %v5456_v62, %v5439_v16 }
 0x1a8   :  { %2099 = vmatprep.subr.bf16.mxu0 %v4708_v47  ;;  %2140 = vmatprep.subr.bf16.mxu1 %v4771_v24 }
 0x1ab   :  { %2100 = vmatpush1.bf16.msra.mxu0 %v4706_v3  ;;  %2141 = vmatpush1.bf16.msra.mxu1 %v4769_v23  ;;  %v4742_v23 = vld [vmem:[#allocation2 + $0x508] ss:$16 sps:$4 sm:$0xff]  }
 0x1ac   :  { %2101 = vmatprep.subr.bf16.mxu0 %v4711_v4  ;;  %2142 = vmatprep.subr.bf16.mxu1 %v4777_v28  ;;  %v4754_v28 = vld [vmem:[#allocation2 + $0x4c8] ss:$16 sps:$4 sm:$0xff]  }
 0x1af   :  { %2102 = vmatpush1.bf16.msra.mxu0 %v4709_v8  ;;  %2143 = vmatpush1.bf16.msra.mxu1 %v4775_v27  ;;  %v4756_v27 = vld [vmem:[#allocation2 + $0x4cc] ss:$16 sps:$4 sm:$0xff]  }
 0x1b0   :  { %2103 = vmatprep.subr.bf16.mxu0 %v4714_v9  ;;  %2144 = vmatprep.subr.bf16.mxu1 %v4783_v32  ;;  %v4766_v32 = vld [vmem:[#allocation2 + $0x488] ss:$16 sps:$4 sm:$0xff]  }
 0x1b3   :  { %2104 = vmatpush1.bf16.msra.mxu0 %v4712_v15  ;;  %2145 = vmatpush1.bf16.msra.mxu1 %v4781_v31  ;;  %v4768_v31 = vld [vmem:[#allocation2 + $0x48c] ss:$16 sps:$4 sm:$0xff]  }
 0x1b4   :  { %2105 = vmatprep.subr.bf16.mxu0 %v4717_v18  ;;  %2146 = vmatprep.subr.bf16.mxu1 %v4789_v36  ;;  %v4778_v36 = vld [vmem:[#allocation2 + $0x448] ss:$16 sps:$4 sm:$0xff]  }
 0x1b7   :  { %2106 = vmatpush2.bf16.msra.mxu0 %v4715_v21  ;;  %2147 = vmatpush2.bf16.msra.mxu1 %v4787_v35  ;;  %v4780_v35 = vld [vmem:[#allocation2 + $0x44c] ss:$16 sps:$4 sm:$0xff]  }
 0x1b8   :  { %2107 = vmatprep.subr.bf16.mxu0 %v4720_v22  ;;  %2148 = vmatprep.subr.bf16.mxu1 %v4795_v40  ;;  %v4790_v40 = vld [vmem:[#allocation2 + $0x608] ss:$16 sps:$4 sm:$0xff]  }
 0x1bb   :  { %2108 = vmatpush2.bf16.msra.mxu0 %v4718_v25  ;;  %2149 = vmatpush2.bf16.msra.mxu1 %v4793_v39  ;;  %v4750_v25 = vld [vmem:[#allocation2 + $0x4ec] ss:$16 sps:$4 sm:$0xff]  }
 0x1bc   :  { %2109 = vmatprep.subr.bf16.mxu0 %v4723_v26  ;;  %2150 = vmatprep.subr.bf16.mxu1 %v4801_v45  ;;  %v4748_v26 = vld [vmem:[#allocation2 + $0x4e8] ss:$16 sps:$4 sm:$0xff]   ;;  %v4792_v39 = vld [vmem:[#allocation2 + $0x60c] ss:$16 sps:$4 sm:$0xff]  }
 0x1bd   :  { %v4802_v45 = vld [vmem:[#allocation2 + $0x5c8] ss:$16 sps:$4 sm:$0xff]  }
 0x1bf   :  { %2110 = vmatpush2.bf16.msra.mxu0 %v4721_v29  ;;  %2151 = vmatpush2.bf16.msra.mxu1 %v4799_v44  ;;  %v4762_v29 = vld [vmem:[#allocation2 + $0x4ac] ss:$16 sps:$4 sm:$0xff]  }
 0x1c0   :  { %2111 = vmatprep.subr.bf16.mxu0 %v4726_v30  ;;  %2152 = vmatprep.subr.bf16.mxu1 %v4807_v50  ;;  %v4760_v30 = vld [vmem:[#allocation2 + $0x4a8] ss:$16 sps:$4 sm:$0xff]   ;;  %v4804_v44 = vld [vmem:[#allocation2 + $0x5cc] ss:$16 sps:$4 sm:$0xff]  }
 0x1c1   :  { %v4814_v50 = vld [vmem:[#allocation2 + $0x588] ss:$16 sps:$4 sm:$0xff]  }
 0x1c3   :  { %2112 = vmatpush2.bf16.msra.mxu0 %v4724_v33  ;;  %2153 = vmatpush2.bf16.msra.mxu1 %v4805_v49  ;;  %v4774_v33 = vld [vmem:[#allocation2 + $0x46c] ss:$16 sps:$4 sm:$0xff]  }
 0x1c4   :  { %2113 = vmatprep.subr.bf16.mxu0 %v4729_v34  ;;  %2154 = vmatprep.subr.bf16.mxu1 %v4813_v54  ;;  %v4772_v34 = vld [vmem:[#allocation2 + $0x468] ss:$16 sps:$4 sm:$0xff]   ;;  %v4816_v49 = vld [vmem:[#allocation2 + $0x58c] ss:$16 sps:$4 sm:$0xff]  }
 0x1c5   :  { %v4820_v54 = vld [vmem:[#allocation2 + $0x568] ss:$16 sps:$4 sm:$0xff]  }
 0x1c7   :  { %2114 = vmatpush2.bf16.msra.mxu0 %v4727_v37  ;;  %2155 = vmatpush2.bf16.msra.mxu1 %v4811_v53  ;;  %v4786_v37 = vld [vmem:[#allocation2 + $0x42c] ss:$16 sps:$4 sm:$0xff]   ;;  %v477_v53 = vrot.slane %v5456_v62, %v5442_v17 }
 0x1c8   :  { %2115 = vmatprep.subr.bf16.mxu0 %v4732_v38  ;;  %2156 = vmatprep.subr.bf16.mxu1 %v4819_v55  ;;  %v4784_v38 = vld [vmem:[#allocation2 + $0x428] ss:$16 sps:$4 sm:$0xff]  }
 0x1cb   :  { %2116 = vmatpush2.bf16.msra.mxu0 %v4730_v41  ;;  %2157 = vmatpush2.bf16.msra.mxu1 %v4817_v56  ;;  %v4798_v41 = vld [vmem:[#allocation2 + $0x5ec] ss:$16 sps:$4 sm:$0xff]  }
 0x1cc   :  { %2117 = vmatprep.subr.bf16.mxu0 %v4735_v43  ;;  %2158 = vmatprep.subr.bf16.mxu1 %v4825_v57  ;;  %v4796_v43 = vld [vmem:[#allocation2 + $0x5e8] ss:$16 sps:$4 sm:$0xff]   ;;  %v4828_v57 = vld [vmem:[#allocation2 + $0x54c] ss:$16 sps:$4 sm:$0xff]  }
 0x1cf   :  { %2118 = vmatpush2.bf16.msra.mxu0 %v4733_v46  ;;  %2159 = vmatpush2.bf16.msra.mxu1 %v4823_v58  ;;  %v4810_v46 = vld [vmem:[#allocation2 + $0x5ac] ss:$16 sps:$4 sm:$0xff]  }
 0x1d0   :  { %2119 = vmatprep.subr.bf16.mxu0 %v4738_v48  ;;  %2160 = vmatprep.subr.bf16.mxu1 %v4831_v59  ;;  %v4808_v48 = vld [vmem:[#allocation2 + $0x5a8] ss:$16 sps:$4 sm:$0xff]  }
 0x1d3   :  { %2120 = vmatpush2.bf16.msra.mxu0 %v4736_v51  ;;  %2161 = vmatpush2.bf16.msra.mxu1 %v4829_v60  ;;  %v4822_v51 = vld [vmem:[#allocation2 + $0x56c] ss:$16 sps:$4 sm:$0xff]  }
 0x1d4   :  { %2171 = vmatprep.subr.bf16.mxu0 %v4744_v52  ;;  %2212 = vmatprep.subr.bf16.mxu1 %v4837_v61  ;;  %v473_v52 = vrot.slane %v5456_v62, %v5436_v14 }
 0x216   :  { %v1156_v47 = vpop.f32.mrf.mxu0  ;;  %v1197_v42 = vpop.f32.mrf.mxu1 }
 0x217   :  { %v1157_v2 = vadd.f32 %v1156_v47, %v465_v63 }
 0x218   :  { %v1158_v3 = vpop.f32.mrf.mxu0  ;;  %v1199_v4 = vpop.f32.mrf.mxu1 }
 0x219   :  { %v1198_v5 = vadd.f32 %v1197_v42, %v1157_v2  ;;  %v1159_v7 = vadd.f32 %v1158_v3, %v469_v1  ;;  %v4826_v1 = vld [vmem:[#allocation2 + $0x548] ss:$16 sps:$4 sm:$0xff]   ;;  %v4834_v2 = vld [vmem:[#allocation2 + $0x52c] ss:$16 sps:$4 sm:$0xff]  }
 0x21a   :  { %v1160_v8 = vpop.f32.mrf.mxu0  ;;  %v1201_v9 = vpop.f32.mrf.mxu1 }
 0x21b   :  { %v1286_v10 = vmax.f32 %v1198_v5, 0.0  ;;  %v1200_v11 = vadd.f32 %v1199_v4, %v1159_v7  ;;  %v4832_v8 = vld [vmem:[#allocation2 + $0x528] ss:$16 sps:$4 sm:$0xff]  }
 0x21c   :  { %v1161_v15 = vpop.f32.mrf.mxu0  ;;  %v1202_v18 = vpop.f32.mrf.mxu1 }
 0x21d   :  { %v1287_v19 = vmax.f32 %v1200_v11, 0.0  ;;  %v1290_v20 = vmin.f32 %v1286_v10, 6.0  ;;  %v4835_v15 = vld [vmem:[#allocation2 + $0x708] ss:$16 sps:$4 sm:$0xff]  }
 0x21f   :  { %v1291_v21 = vmin.f32 %v1287_v19, 6.0  ;;  %v5462_v24 = vpack.c.bf16 %v1290_v20, %v1290_v20  ;;  %v4840_v19 = vld [vmem:[#allocation2 + $0x6ec] ss:$16 sps:$4 sm:$0xff]   ;;  %v4838_v20 = vld [vmem:[#allocation2 + $0x6e8] ss:$16 sps:$4 sm:$0xff]  }
 0x221   :  { %v1423_v22 = vpack.c.bf16 %v1291_v21, %v1291_v21  ;;  %v4843_v21 = vld [vmem:[#allocation2 + $0x6cc] ss:$16 sps:$4 sm:$0xff]  }
 0x223   :  { %2121 = vmatprep.mubr.bf16.mxu0 %v1423_v22 }
 0x224   :  { %2122 = vmatmul.mubr.bf16.vlgmr.msra.gmra.mxu0 %v5462_v24 }
 0x225   :  { %2172 = vmatpush1.bf16.msra.mxu0 %v4742_v23  ;;  %2203 = vmatprep.mubr.bf16.mxu0 %v1423_v22  ;;  %v4841_v22 = vld [vmem:[#allocation2 + $0x6c8] ss:$16 sps:$4 sm:$0xff]   ;;  %v4846_v23 = vld [vmem:[#allocation2 + $0x6ac] ss:$16 sps:$4 sm:$0xff]  }
 0x226   :  { %2173 = vmatprep.subr.bf16.mxu0 %v4750_v25  ;;  %v4883_v25 = vld [vmem:[%s5914_s3 + $0x78] sm:$0xff]  }
 0x229   :  { %2174 = vmatpush1.bf16.msra.mxu0 %v4748_v26  ;;  %v4884_v26 = vld [vmem:[%s5914_s3 + $0x38] sm:$0xff]  }
 0x22a   :  { %2175 = vmatprep.subr.bf16.mxu0 %v4756_v27  ;;  %v4844_v27 = vld [vmem:[#allocation2 + $0x6a8] ss:$16 sps:$4 sm:$0xff]  }
 0x22d   :  { %2176 = vmatpush1.bf16.msra.mxu0 %v4754_v28  ;;  %v4886_v28 = vld [vmem:[%s5914_s3 + $0x30] sm:$0xff]  }
 0x22e   :  { %2177 = vmatprep.subr.bf16.mxu0 %v4762_v29  ;;  %v4849_v29 = vld [vmem:[#allocation2 + $0x68c] ss:$16 sps:$4 sm:$0xff]  }
 0x231   :  { %2178 = vmatpush1.bf16.msra.mxu0 %v4760_v30  ;;  %v4887_v30 = vld [vmem:[%s5914_s3 + $0x68] sm:$0xff]  }
 0x232   :  { %2179 = vmatprep.subr.bf16.mxu0 %v4768_v31  ;;  %v4847_v31 = vld [vmem:[#allocation2 + $0x688] ss:$16 sps:$4 sm:$0xff]  }
 0x235   :  { %2180 = vmatpush1.bf16.msra.mxu0 %v4766_v32  ;;  %v4888_v32 = vld [vmem:[%s5914_s3 + $0x28] sm:$0xff]  }
 0x236   :  { %2181 = vmatprep.subr.bf16.mxu0 %v4774_v33  ;;  %v4852_v33 = vld [vmem:[#allocation2 + $0x66c] ss:$16 sps:$4 sm:$0xff]  }
 0x239   :  { %2182 = vmatpush1.bf16.msra.mxu0 %v4772_v34  ;;  %v4889_v34 = vld [vmem:[%s5914_s3 + $0x60] sm:$0xff]  }
 0x23a   :  { %2183 = vmatprep.subr.bf16.mxu0 %v4780_v35  ;;  %v4850_v35 = vld [vmem:[#allocation2 + $0x668] ss:$16 sps:$4 sm:$0xff]  }
 0x23d   :  { %2184 = vmatpush1.bf16.msra.mxu0 %v4778_v36  ;;  %v4890_v36 = vld [vmem:[%s5914_s3 + $0x20] sm:$0xff]  }
 0x23e   :  { %2185 = vmatprep.subr.bf16.mxu0 %v4786_v37  ;;  %v4855_v37 = vld [vmem:[#allocation2 + $0x64c] ss:$16 sps:$4 sm:$0xff]  }
 0x241   :  { %2186 = vmatpush1.bf16.msra.mxu0 %v4784_v38  ;;  %v4891_v38 = vld [vmem:[%s5914_s3 + $0x58] sm:$0xff]  }
 0x242   :  { %2187 = vmatprep.subr.bf16.mxu0 %v4792_v39  ;;  %v4853_v39 = vld [vmem:[#allocation2 + $0x648] ss:$16 sps:$4 sm:$0xff]  }
 0x245   :  { %2188 = vmatpush2.bf16.msra.mxu0 %v4790_v40  ;;  %v4892_v40 = vld [vmem:[%s5914_s3 + $0x18] sm:$0xff]  }
 0x246   :  { %2189 = vmatprep.subr.bf16.mxu0 %v4798_v41  ;;  %v4858_v41 = vld [vmem:[#allocation2 + $0x62c] ss:$16 sps:$4 sm:$0xff]  }
 0x249   :  { %2190 = vmatpush2.bf16.msra.mxu0 %v4796_v43  ;;  %v4856_v43 = vld [vmem:[#allocation2 + $0x628] ss:$16 sps:$4 sm:$0xff]  }
 0x24a   :  { %2191 = vmatprep.subr.bf16.mxu0 %v4804_v44  ;;  %v4861_v44 = vld [vmem:[#allocation2 + $0x80c] ss:$16 sps:$4 sm:$0xff]  }
 0x24d   :  { %2192 = vmatpush2.bf16.msra.mxu0 %v4802_v45  ;;  %v4859_v45 = vld [vmem:[#allocation2 + $0x808] ss:$16 sps:$4 sm:$0xff]  }
 0x24e   :  { %2193 = vmatprep.subr.bf16.mxu0 %v4810_v46  ;;  %v4864_v46 = vld [vmem:[#allocation2 + $0x7ec] ss:$16 sps:$4 sm:$0xff]  }
 0x251   :  { %2194 = vmatpush2.bf16.msra.mxu0 %v4808_v48  ;;  %v4862_v48 = vld [vmem:[#allocation2 + $0x7e8] ss:$16 sps:$4 sm:$0xff]  }
 0x252   :  { %2195 = vmatprep.subr.bf16.mxu0 %v4816_v49  ;;  %v4867_v49 = vld [vmem:[#allocation2 + $0x7cc] ss:$16 sps:$4 sm:$0xff]  }
 0x255   :  { %2196 = vmatpush2.bf16.msra.mxu0 %v4814_v50  ;;  %v4865_v50 = vld [vmem:[#allocation2 + $0x7c8] ss:$16 sps:$4 sm:$0xff]  }
 0x256   :  { %v1238_v55 = vpop.f32.mrf.mxu0  ;;  %v1279_v56 = vpop.f32.mrf.mxu1  ;;  %2197 = vmatprep.subr.bf16.mxu0 %v4822_v51  ;;  %v4870_v51 = vld [vmem:[#allocation2 + $0x7ac] ss:$16 sps:$4 sm:$0xff]  }
 0x257   :  { %v1239_v58 = vadd.f32 %v1238_v55, %v473_v52  ;;  %v4868_v52 = vld [vmem:[#allocation2 + $0x7a8] ss:$16 sps:$4 sm:$0xff]   ;;  %v4876_v55 = vld [vmem:[#allocation2 + $0x76c] ss:$16 sps:$4 sm:$0xff]  }
 0x258   :  { %v1240_v59 = vpop.f32.mrf.mxu0  ;;  %v1281_v60 = vpop.f32.mrf.mxu1 }
 0x259   :  { %v1280_v61 = vadd.f32 %v1279_v56, %v1239_v58  ;;  %v1241_v63 = vadd.f32 %v1240_v59, %v477_v53  ;;  %2198 = vmatpush2.bf16.msra.mxu0 %v4820_v54  ;;  %v4873_v53 = vld [vmem:[#allocation2 + $0x78c] ss:$16 sps:$4 sm:$0xff]   ;;  %v4871_v54 = vld [vmem:[#allocation2 + $0x788] ss:$16 sps:$4 sm:$0xff]  }
 0x25a   :  { %v1242_v47 = vpop.f32.mrf.mxu0  ;;  %v1283_v42 = vpop.f32.mrf.mxu1  ;;  %2199 = vmatprep.subr.bf16.mxu0 %v4828_v57  ;;  %v4874_v56 = vld [vmem:[#allocation2 + $0x768] ss:$16 sps:$4 sm:$0xff]   ;;  %v4879_v57 = vld [vmem:[#allocation2 + $0x74c] ss:$16 sps:$4 sm:$0xff]  }
 0x25b   :  { %v1288_v3 = vmax.f32 %v1280_v61, 0.0  ;;  %v1282_v4 = vadd.f32 %v1281_v60, %v1241_v63  ;;  %v4877_v58 = vld [vmem:[#allocation2 + $0x748] ss:$16 sps:$4 sm:$0xff]   ;;  %v4882_v59 = vld [vmem:[#allocation2 + $0x72c] ss:$16 sps:$4 sm:$0xff]   ;;  %v4893_v61 = vld [vmem:[%s5914_s3 + $0x50] sm:$0xff]  }
 0x25c   :  { %v1243_v5 = vpop.f32.mrf.mxu0  ;;  %v1284_v62 = vpop.f32.mrf.mxu1  ;;  %v4880_v60 = vld [vmem:[#allocation2 + $0x728] ss:$16 sps:$4 sm:$0xff]   ;;  %v4894_v63 = vld [vmem:[%s5914_s3 + $0x10] sm:$0xff]   ;;  %v4897_v42 = vld [vmem:[%s5914_s3 + $0x40] sm:$0xff]  }
 0x25d   :  { %v1289_v7 = vmax.f32 %v1282_v4, 0.0  ;;  %2200 = vmatpush2.bf16.msra.mxu0 %v4826_v1  ;;  %v1292_v9 = vmin.f32 %v1288_v3, 6.0  ;;  %v4895_v1 = vld [vmem:[%s5914_s3 + $0x48] sm:$0xff]   ;;  %v4899_v3 = vld [vmem:[%s5914_s3 + $0xf8] sm:$0xff]   ;;  %v4901_v5 = vld [vmem:[%s5914_s3 + $0xf0] sm:$0xff]  }
 0x25e   :  { %2201 = vmatprep.subr.bf16.mxu0 %v4834_v2  ;;  %v4896_v47 = vld [vmem:[%s5914_s3 + $0x8] sm:$0xff]   ;;  %v4898_v2 = vld [vmem:[%s5914_s3] sm:$0xff]   ;;  %v4900_v4 = vld [vmem:[%s5914_s3 + $0xb8] sm:$0xff]  }
 0x25f   :  { %v1293_v10 = vmin.f32 %v1289_v7, 6.0  ;;  %v5469_v18 = vpack.c.bf16 %v1292_v9, %v1292_v9  ;;  %v4902_v62 = vld [vmem:[%s5914_s3 + $0xb0] sm:$0xff]   ;;  %v4903_v7 = vld [vmem:[%s5914_s3 + $0xe8] sm:$0xff]   ;;  %v4905_v9 = vld [vmem:[%s5914_s3 + $0xe0] sm:$0xff]  }
 0x261   :  { %v1425_v11 = vpack.c.bf16 %v1293_v10, %v1293_v10  ;;  %2202 = vmatpush2.bf16.msra.mxu0 %v4832_v8  ;;  %v4904_v8 = vld [vmem:[%s5914_s3 + $0xa8] sm:$0xff]   ;;  %v4906_v10 = vld [vmem:[%s5914_s3 + $0xa0] sm:$0xff]  }
 0x262   :  { %4329 = vmatprep.subr.bf16.mxu0 %v4883_v25 }
 0x263   :  { %2162 = vmatprep.mubr.bf16.mxu1 %v1425_v11 }
 0x264   :  { %2163 = vmatmul.mubr.bf16.vlgmr.msra.gmra.mxu1 %v5469_v18  ;;  %2204 = vmatmul.mubr.bf16.vlgmr.msra.gmra.mxu0 %v5462_v24  ;;  %v4885_v24 = vld [vmem:[%s5914_s3 + $0x70] sm:$0xff]  }
 0x265   :  { %2213 = vmatpush1.bf16.msra.mxu1 %v4835_v15  ;;  %2244 = vmatprep.mubr.bf16.mxu1 %v1425_v11  ;;  %v4907_v11 = vld [vmem:[%s5914_s3 + $0xd8] sm:$0xff]  }
 0x266   :  { %2214 = vmatprep.subr.bf16.mxu1 %v4840_v19  ;;  %4330 = vmatpush3.bf16.msra.mxu0 %v4884_v26  ;;  %v4908_v15 = vld [vmem:[%s5914_s3 + $0x98] sm:$0xff]   ;;  %v4910_v19 = vld [vmem:[%s5914_s3 + $0x90] sm:$0xff]  }
 0x267   :  { %4331 = vmatprep.subr.bf16.mxu0 %v4885_v24  ;;  %v4913_v24 = vld [vmem:[%s5914_s3 + $0xc0] sm:$0xff]  }
 0x269   :  { %2215 = vmatpush1.bf16.msra.mxu1 %v4838_v20 }
 0x26a   :  { %2216 = vmatprep.subr.bf16.mxu1 %v4843_v21  ;;  %4332 = vmatpush3.bf16.msra.mxu0 %v4886_v28  ;;  %v1427_v28 = vld [vmem:[#allocation4 + $0x2] ss:$4 sm:$0xf] }
 0x26b   :  { %4333 = vmatprep.subr.bf16.mxu0 %v4887_v30  ;;  %v1436_v30 = vrot.slane %v1427_v28, %v5439_v16 }
 0x26d   :  { %2217 = vmatpush1.bf16.msra.mxu1 %v4841_v22  ;;  %v4911_v22 = vld [vmem:[%s5914_s3 + $0xc8] sm:$0xff]  }
 0x26e   :  { %2218 = vmatprep.subr.bf16.mxu1 %v4846_v23  ;;  %4334 = vmatpush3.bf16.msra.mxu0 %v4888_v32  ;;  %v4912_v23 = vld [vmem:[%s5914_s3 + $0x88] sm:$0xff]  }
 0x26f   :  { %4335 = vmatprep.subr.bf16.mxu0 %v4889_v34 }
 0x271   :  { %2219 = vmatpush1.bf16.msra.mxu1 %v4844_v27  ;;  %v4914_v27 = vld [vmem:[%s5914_s3 + $0x80] sm:$0xff]  }
 0x272   :  { %2220 = vmatprep.subr.bf16.mxu1 %v4849_v29  ;;  %4336 = vmatpush3.bf16.msra.mxu0 %v4890_v36  ;;  %v1432_v29 = vrot.slane %v1427_v28, %v5433_v13 }
 0x273   :  { %4337 = vmatprep.subr.bf16.mxu0 %v4891_v38 }
 0x275   :  { %2221 = vmatpush1.bf16.msra.mxu1 %v4847_v31 }
 0x276   :  { %2222 = vmatprep.subr.bf16.mxu1 %v4852_v33  ;;  %4338 = vmatpush3.bf16.msra.mxu0 %v4892_v40 }
 0x277   :  { %4339 = vmatprep.subr.bf16.mxu0 %v4893_v61 }
 0x279   :  { %2223 = vmatpush1.bf16.msra.mxu1 %v4850_v35 }
 0x27a   :  { %2224 = vmatprep.subr.bf16.mxu1 %v4855_v37  ;;  %4340 = vmatpush3.bf16.msra.mxu0 %v4894_v63 }
 0x27b   :  { %4341 = vmatprep.subr.bf16.mxu0 %v4895_v1 }
 0x27d   :  { %2225 = vmatpush1.bf16.msra.mxu1 %v4853_v39 }
 0x27e   :  { %2226 = vmatprep.subr.bf16.mxu1 %v4858_v41  ;;  %4342 = vmatpush3.bf16.msra.mxu0 %v4896_v47 }
 0x27f   :  { %4343 = vmatprep.subr.bf16.mxu0 %v4897_v42 }
 0x281   :  { %2227 = vmatpush1.bf16.msra.mxu1 %v4856_v43 }
 0x282   :  { %2228 = vmatprep.subr.bf16.mxu1 %v4861_v44  ;;  %4344 = vmatpush3.bf16.msra.mxu0 %v4898_v2 }
 0x285   :  { %2229 = vmatpush2.bf16.msra.mxu1 %v4859_v45 }
 0x286   :  { %2230 = vmatprep.subr.bf16.mxu1 %v4864_v46 }
 0x289   :  { %2231 = vmatpush2.bf16.msra.mxu1 %v4862_v48 }
 0x28a   :  { %2232 = vmatprep.subr.bf16.mxu1 %v4867_v49 }
 0x28d   :  { %2233 = vmatpush2.bf16.msra.mxu1 %v4865_v50 }
 0x28e   :  { %2234 = vmatprep.subr.bf16.mxu1 %v4870_v51  ;;  %v1440_v51 = vrot.slane %v1427_v28, %v5436_v14 }
 0x291   :  { %2235 = vmatpush2.bf16.msra.mxu1 %v4868_v52  ;;  %v1444_v52 = vrot.slane %v1427_v28, %v5442_v17 }
 0x292   :  { %2236 = vmatprep.subr.bf16.mxu1 %v4873_v53 }
 0x295   :  { %2237 = vmatpush2.bf16.msra.mxu1 %v4871_v54 }
 0x296   :  { %2238 = vmatprep.subr.bf16.mxu1 %v4876_v55 }
 0x299   :  { %2239 = vmatpush2.bf16.msra.mxu1 %v4874_v56 }
 0x29a   :  { %2240 = vmatprep.subr.bf16.mxu1 %v4879_v57 }
 0x29d   :  { %2241 = vmatpush2.bf16.msra.mxu1 %v4877_v58 }
 0x29e   :  { %2242 = vmatprep.subr.bf16.mxu1 %v4882_v59 }
 0x2a1   :  { %2243 = vmatpush2.bf16.msra.mxu1 %v4880_v60 }
 0x2a2   :  { %4351 = vmatprep.subr.bf16.mxu1 %v4899_v3  ;;  %v2605_v3 = vld [vmem:[#allocation6] sm:$0xf] }
 0x2a4   :  { %2245 = vmatmul.mubr.bf16.vlgmr.msra.gmra.mxu1 %v5469_v18  ;;  %v4909_v18 = vld [vmem:[%s5914_s3 + $0xd0] sm:$0xff]   ;;  %s5273_s3 = smov 28  }
 0x2a5   :  { %4352 = vmatpush3.bf16.msra.mxu1 %v4900_v4  ;;  %v5271_v4 = vmov 0.0  }
 0x2a6   :  { %4353 = vmatprep.subr.bf16.mxu1 %v4901_v5  ;;  %v2613_v5 = vsel %vm2611_vm1, %v2605_v3, 0  ;;  %v5289_v3 = vmov 23  }
 0x2a9   :  { %4354 = vmatpush3.bf16.msra.mxu1 %v4902_v62  ;;  %v2656_v62 = vld [vmem:[#allocation18 + $0x2] ss:$0 sm:$0xff] }
 0x2aa   :  { %4355 = vmatprep.subr.bf16.mxu1 %v4903_v7  ;;  %2658 = vrot.lane.b32.xlu0 %v2656_v62, %s5273_s3  ;;  %v5291_v62 = vmov 3  }
 0x2ad   :  { %4356 = vmatpush3.bf16.msra.mxu1 %v4904_v8 }
 0x2ae   :  { %4357 = vmatprep.subr.bf16.mxu1 %v4905_v9 }
 0x2b1   :  { %4358 = vmatpush3.bf16.msra.mxu1 %v4906_v10 }
 0x2b2   :  { %4359 = vmatprep.subr.bf16.mxu1 %v4907_v11 }
 0x2b5   :  { %4360 = vmatpush3.bf16.msra.mxu1 %v4908_v15  ;;  %v2330_v15 = vld [vmem:[#allocation18] ss:$0 sm:$0xff] }
 0x2b6   :  { %4361 = vmatprep.subr.bf16.mxu1 %v4909_v18 }
 0x2b9   :  { %4362 = vmatpush3.bf16.msra.mxu1 %v4910_v19 }
 0x2ba   :  { %4363 = vmatprep.subr.bf16.mxu1 %v4911_v22 }
 0x2bd   :  { %4364 = vmatpush3.bf16.msra.mxu1 %v4912_v23 }
 0x2be   :  { %4365 = vmatprep.subr.bf16.mxu1 %v4913_v24 }
 0x2c1   :  { %4366 = vmatpush3.bf16.msra.mxu1 %v4914_v27 }
 0x2c2   :  { %4402 = vmatprep.subr.bf16.mxu1 %v5271_v4 }
 0x2e4   :  { %v2123_v20 = vpop.f32.mrf.mxu0 }
 0x2e5   :  { %v2124_v31 = vadd.f32 %v2123_v20, %v1432_v29  ;;  %v3071_v29 = vld [vmem:[#allocation7 + $0x10] sm:$0xff] }
 0x2e6   :  { %v2125_v21 = vpop.f32.mrf.mxu0 }
 0x2e7   :  { %v2126_v34 = vadd.f32 %v2125_v21, %v1436_v30  ;;  %v4263_v30 = vcombine.high %v3071_v29, %v3071_v29 }
 0x2e8   :  { %v2127_v25 = vpop.f32.mrf.mxu0 }
 0x2e9   :  { %4264 = vmatprep.subr.msk.bf16.mxu0 %vm2611_vm1, %v4263_v30 }
 0x2ea   :  { %v2128_v26 = vpop.f32.mrf.mxu0 }
 0x2eb   :  { %v2261_v26 = vld [vmem:[#allocation18 + $0x1] ss:$0 sm:$0xff] }
 0x324   :  { %v2164_v32 = vpop.f32.mrf.mxu1  ;;  %v2205_v33 = vpop.f32.mrf.mxu0 }
 0x325   :  { %v2165_v35 = vadd.f32 %v2164_v32, %v2124_v31  ;;  %v2206_v53 = vadd.f32 %v2205_v33, %v1440_v51  ;;  %v4262_v31 = vcombine.low %v3071_v29, %v3071_v29  ;;  %v4919_v32 = vld [vmem:[#allocation7 + $0x4] ss:$8 sps:$4 sm:$0xff]  }
 0x326   :  { %v2166_v36 = vpop.f32.mrf.mxu1  ;;  %v2207_v37 = vpop.f32.mrf.mxu0 }
 0x327   :  { %v2253_v38 = vmax.f32 %v2165_v35, 0.0  ;;  %v2167_v39 = vadd.f32 %v2166_v36, %v2126_v34  ;;  %v2208_v55 = vadd.f32 %v2207_v37, %v1444_v52  ;;  %v3150_v33 = vsel %vm2611_vm1, %v4262_v31, 0  ;;  %v4917_v34 = vld [vmem:[#allocation7] ss:$8 sps:$4 sm:$0xff]   ;;  %v2659_v35 = vpop.permute.xlu0 %2658 }
 0x328   :  { %v2168_v40 = vpop.f32.mrf.mxu1  ;;  %v2209_v41 = vpop.f32.mrf.mxu0  ;;  %v5279_v52 = vmov 10  }
 0x329   :  { %v2254_v43 = vmax.f32 %v2167_v39, 0.0  ;;  %v2257_v44 = vmin.f32 %v2253_v38, 6.0 }
 0x32a   :  { %v2169_v45 = vpop.f32.mrf.mxu1  ;;  %v2210_v46 = vpop.f32.mrf.mxu0 }
 0x32b   :  { %v2258_v48 = vmin.f32 %v2254_v43, 6.0  ;;  %v2326_v50 = vpack.c.bf16 %v2257_v44, %v2257_v44  ;;  %v5275_v43 = vmov 8  }
 0x32c   :  { %4468 = vset.pattern.permute.xlu1 %v5275_v43  ;;  %v3328_v43 = vld [vmem:[#allocation13] sm:$0xff] }
 0x32d   :  { %v2327_v49 = vpack.c.bf16 %v2258_v48, %v2258_v48 }
 0x32f   :  { %2555 = vmatprep.mubr.bf16.mxu0 %v2327_v49 }
 0x330   :  { %2556 = vmatmul.mubr.bf16.vlgmr.msra.gmra.mxu0 %v2326_v50 }
 0x331   :  { %3187 = vmatprep.mubr.bf16.mxu0 %v5270_v0  ;;  %3168 = vmatpush1.bf16.msra.mxu0 %v3150_v33 }
 0x332   :  { %3169 = vmatprep.subr.bf16.mxu0 %v4919_v32 }
 0x335   :  { %3170 = vmatpush1.bf16.msra.mxu0 %v4917_v34 }
 0x364   :  { %v2246_v54 = vpop.f32.mrf.mxu1 }
 0x365   :  { %v2247_v56 = vadd.f32 %v2246_v54, %v2206_v53  ;;  %v5280_v53 = vmov 11   ;;  %v5282_v54 = vmov 13  }
 0x366   :  { %v2248_v57 = vpop.f32.mrf.mxu1 }
 0x367   :  { %v2255_v58 = vmax.f32 %v2247_v56, 0.0  ;;  %v2249_v59 = vadd.f32 %v2248_v57, %v2208_v55  ;;  %v3073_v55 = vld [vmem:[#allocation9] sm:$0xff] }
 0x368   :  { %v2250_v60 = vpop.f32.mrf.mxu1  ;;  %v4257_v56 = vcombine.high %v3073_v55, %v3073_v55  ;;  %v4256_v57 = vcombine.low %v3073_v55, %v3073_v55  ;;  %v5020_v55 = vld [vmem:[%s5911_s0] sm:$0xff] }
 0x369   :  { %v2256_v61 = vmax.f32 %v2249_v59, 0.0  ;;  %v2259_v63 = vmin.f32 %v2255_v58, 6.0  ;;  %v5283_v59 = vmov 14  }
 0x36a   :  { %v2251_v1 = vpop.f32.mrf.mxu1  ;;  %v3084_v58 = vsel %vm2611_vm1, %v4256_v57, 0  ;;  %v5612_v60 = vld.sshfl [vmem:[#allocation10] sm:$0x33 pattern:$0x76325410]  ;;  %v5299_v57 = vmov 4  }
 0x36b   :  { %v2260_v47 = vmin.f32 %v2256_v61, 6.0  ;;  %v2328_v2 = vpack.c.bf16 %v2259_v63, %v2259_v63  ;;  %v5284_v61 = vmov 16   ;;  %v3208_v63 = vcombine.high %v5612_v60, %v5612_v60 }
 0x36c   :  { %v5285_v1 = vmov 17  }
 0x36d   :  { %v2329_v42 = vpack.c.bf16 %v2260_v47, %v2260_v47  ;;  %v5286_v47 = vmov 19  }
 0x36f   :  { %2595 = vmatprep.mubr.bf16.mxu1 %v2329_v42  ;;  %v5287_v42 = vmov 20  }
 0x370   :  { %2596 = vmatmul.mubr.bf16.vlgmr.msra.gmra.mxu1 %v2328_v2  ;;  %v5288_v2 = vmov 22  }
 0x371   :  { %4404 = vmatprep.mubr.msk.bf16.mxu1 %vm5272_vm2, %v5271_v4  ;;  %4403 = vmatpush3.bf16.msra.mxu1 %v2613_v5  ;;  %v5290_v5 = vmov 2  }
 0x372   :  { %4258 = vmatprep.subr.msk.bf16.mxu1 %vm2611_vm1, %v4257_v56  ;;  %v5298_v56 = vmov 1  }
 0x3f0   :  { %v4345_v7 = vpop.f32.mrf.mxu0 }
 0x3f2   :  { %v4346_v8 = vpop.f32.mrf.mxu0 }
 0x3f3   :  { %v4347_v11 = vadd.f32 %v4346_v8, %v4345_v7 }
 0x3f4   :  { %v4348_v9 = vpop.f32.mrf.mxu0 }
 0x3f5   :  { %v2558_v20 = vadd.f32 %v4347_v11, %v2330_v15  ;;  %v5292_v9 = vmov 5   ;;  %v5293_v15 = vmov 6  }
 0x3f6   :  { %v4349_v10 = vpop.f32.mrf.mxu0 }
 0x430   :  { %v4367_v18 = vpop.f32.mrf.mxu1 }
 0x432   :  { %v4368_v19 = vpop.f32.mrf.mxu1 }
 0x433   :  { %v4369_v21 = vadd.f32 %v4368_v19, %v4367_v18  ;;  %v4269_v19 = vld.sshfl [vmem:[#allocation12] sm:$0x33 pattern:$0x76325410] }
 0x434   :  { %v4370_v22 = vpop.f32.mrf.mxu1 }
 0x435   :  { %v2598_v23 = vadd.f32 %v4369_v21, %v2558_v20  ;;  %v3275_v21 = vcombine.high %v4269_v19, %v4269_v19  ;;  %v3280_v22 = vsel %vm3212_vm6, %v4269_v19, 0 }
 0x436   :  { %v4371_v25 = vpop.f32.mrf.mxu1 }
 0x437   :  { %4992 = vtanh.f32 %v2598_v23  ;;  %4270 = vmatprep.subr.msk.bf16.mxu0 %vm3212_vm6, %v3275_v21 }
 0x444   :  { %v4993_v24 = vpop.eup %4992 }
 0x445   :  { %v2604_v27 = vmul.f32 %v4993_v24, %v2261_v26 }
 0x447   :  { %v2606_v28 = vpack.c.bf16 %v2604_v27, %v2604_v27 }
 0x449   :  { %4405 = vmatmul.mubr.msk.bf16.vlgmr.msra.gmra.mxu1 %vm2607_vm3, %v2606_v28 }
 0x44a   :  { %3121 = vmatprep.mubr.bf16.mxu1 %v5270_v0  ;;  %3104 = vmatpush1.bf16.msra.mxu1 %v3084_v58 }
 0x44b   :  { %4267 = vmatprep.subr.msk.bf16.mxu1 %vm3212_vm6, %v3208_v63 }
 0x509   :  { %v2649_v36 = vpop.f32.mrf.mxu1 }
 0x50a   :  { %4994 = vtanh.f32 %v2649_v36  ;;  %v5583_v37 = vadd.f32 %v2659_v35, %v2649_v36  ;;  %v2674_v35 = vld [vmem:[#allocation18 + $0x3] ss:$0 sm:$0xff] }
 0x50b   :  { %v4406_v38 = vpop.f32.mrf.mxu1 }
 0x50c   :  { %v2662_v39 = vmul.f32 %v5583_v37, %v5583_v37 }
 0x50d   :  { %v2652_v40 = vpop.f32.mrf.mxu1 }
 0x50e   :  { %2664 = vrot.lane.b32.xlu0 %v2662_v39, %s5274_s25 }
 0x50f   :  { %v4407_v41 = vpop.f32.mrf.mxu1 }
 0x510   :  { %v5294_v41 = vmov 12  }
 0x517   :  { %v5588_v44 = vpop.eup %4994 }
 0x518   :  { %v3072_v45 = vpack.c.bf16 %v5588_v44, %v5588_v44  ;;  %v4254_v46 = vadd.f32 -0.3, %v5588_v44  ;;  %v2677_v51 = vmul.f32 %v5588_v44, %v5588_v44 }
 0x51a   :  { %4265 = vmatmul.mubr.msk.bf16.vlgmr.msra.gmra.mxu0 %vm3145_vm4, %v3072_v45  ;;  %v5593_v48 = vmul.f32 %v4254_v46, %v4254_v46  ;;  %v3214_v46 = vsel %vm3212_vm6, %v5612_v60, 0 }
 0x51b   :  { %3317 = vmatprep.mubr.bf16.mxu0 %v5270_v0  ;;  %3300 = vmatpush1.bf16.msra.mxu0 %v3280_v22 }
 0x51c   :  { %2684 = vrot.lane.b32.xlu0 %v5593_v48, %s5276_s26 }
 0x520   :  { %3198 = vrot.lane.b32.xlu0 %v3072_v45, %s5277_s4 }
 0x524   :  { %3330 = vrot.lane.b32.xlu0 %v5426_v6, %s5278_s9  ;;  %v5281_v6 = vmov 9  }
 0x525   :  { %4469 = vset.pattern.permute.xlu0 %v5281_v6  ;;  %v5297_v6 = vmov 21  }
 0x580   :  { %v2665_v49 = vpop.permute.xlu0 %2664 }
 0x581   :  { %v2668_v50 = vsel %vm2667_vm5, %v2665_v49, 0.0  ;;  %v5295_v49 = vmov 15  }
 0x582   :  { %2669 = vadd.xlane.f32.xlu1 %v2668_v50  ;;  %v4272_v50 = vcombine.low %v3328_v43, %v3328_v43 }
 0x58e   :  { %v2685_v26 = vpop.permute.xlu0 %2684 }
 0x593   :  { %2679 = vrot.lane.b32.xlu1 %v2677_v51, %s5278_s9  ;;  %v5296_v51 = vmov 18  }
 0x597   :  { %2706 = vperm.xlu1 %4468, %v5588_v44  }
 0x59b   :  { %4470 = vset.pattern.permute.xlu1 %v5279_v52  ;;  %v3341_v52 = vsel %vm2611_vm1, %v4272_v50, 0 }
 0x59c   :  { %2788 = vperm.xlu1 %4470, %v5588_v44  }
 0x5a0   :  { %4471 = vset.pattern.permute.xlu1 %v5280_v53  ;;  %v3199_v53 = vpop.permute.xlu0 %3198 }
 0x5a1   :  { %2829 = vperm.xlu1 %4471, %v5588_v44  }
 0x5a5   :  { %4473 = vset.pattern.permute.xlu1 %v5282_v54  ;;  %v3331_v54 = vpop.permute.xlu0 %3330 }
 0x5a6   :  { %2911 = vperm.xlu1 %4473, %v5588_v44  }
 0x5aa   :  { %4474 = vset.pattern.permute.xlu1 %v5283_v59  ;;  %v5300_v59 = vmov 7  }
 0x5ab   :  { %2952 = vperm.xlu1 %4474, %v5588_v44  }
 0x5af   :  { %4476 = vset.pattern.permute.xlu1 %v5284_v61 }
 0x5b0   :  { %2711 = vperm.xlu1 %4476, %v5588_v44  }
 0x5b4   :  { %4477 = vset.pattern.permute.xlu1 %v5285_v1 }
 0x5b5   :  { %2752 = vperm.xlu1 %4477, %v5588_v44  }
 0x5b9   :  { %4479 = vset.pattern.permute.xlu1 %v5286_v47 }
 0x5ba   :  { %2834 = vperm.xlu1 %4479, %v5588_v44  }
 0x5be   :  { %4480 = vset.pattern.permute.xlu1 %v5287_v42 }
 0x5bf   :  { %2875 = vperm.xlu1 %4480, %v5588_v44  }
 0x5c3   :  { %4482 = vset.pattern.permute.xlu1 %v5288_v2 }
 0x5c4   :  { %2957 = vperm.xlu1 %4482, %v5588_v44  }
 0x5c8   :  { %4483 = vset.pattern.permute.xlu1 %v5289_v3 }
 0x5c9   :  { %2998 = vperm.xlu1 %4483, %v5588_v44  }
 0x5cd   :  { %4484 = vset.pattern.permute.xlu1 %v5270_v0 }
 0x5ce   :  { %2701 = vperm.xlu1 %4484, %v5588_v44  }
 0x5d2   :  { %4486 = vset.pattern.permute.xlu1 %v5290_v5 }
 0x5d3   :  { %2783 = vperm.xlu1 %4486, %v5588_v44  }
 0x5d7   :  { %4487 = vset.pattern.permute.xlu1 %v5291_v62 }
 0x5d8   :  { %2824 = vperm.xlu1 %4487, %v5588_v44  }
 0x5da   :  { %v5628_v7 = vpop.f32.mrf.mxu0 }
 0x5dc   :  { %v5630_v8 = vpop.f32.mrf.mxu0  ;;  %4489 = vset.pattern.permute.xlu1 %v5292_v9 }
 0x5dd   :  { %2906 = vperm.xlu1 %4489, %v5588_v44  }
 0x5de   :  { %v3193_v10 = vpop.f32.mrf.mxu0 }
 0x5e0   :  { %v3194_v11 = vpop.f32.mrf.mxu0 }
 0x5e1   :  { %4490 = vset.pattern.permute.xlu1 %v5293_v15 }
 0x5e2   :  { %2947 = vperm.xlu1 %4490, %v5588_v44  }
 0x60b   :  { %v2670_v18 = vpop.xlane.xlu1 %2669 }
 0x60c   :  { %v2671_v20 = vadd.f32 1e-12, %v2670_v18 }
 0x60e   :  { %4996 = vrsqrt.f32 %v2671_v20 }
 0x60f   :  { %v2680_v23 = vpop.permute.xlu1 %2679 }
 0x610   :  { %v2682_v25 = vadd.f32 %v2680_v23, %v5593_v48  ;;  %v4273_v48 = vcombine.high %v3328_v43, %v3328_v43 }
 0x612   :  { %v2687_v24 = vadd.f32 %v2685_v26, %v2682_v25 }
 0x613   :  { %v2707_v27 = vpop.permute.xlu1 %2706 }
 0x614   :  { %4998 = vrsqrt.f32 %v2687_v24  ;;  %v2709_v28 = vsub.f32 %v5588_v44, %v2707_v27  ;;  %vm2690_vm7 = vcmp.eq.f32.partialorder %v2687_v24, inf  ;;  %v2693_v36 = vand.u32 2147483648, %v2687_v24 }
 0x615   :  { %vm2692_vm8 = vcmp.eq.f32.partialorder %v2687_v24, 0.0 }
 0x616   :  { %v2716_v29 = vmul.f32 %v2709_v28, %v2709_v28 }
 0x618   :  { %2718 = vrot.lane.b32.xlu1 %v2716_v29, %s5278_s9 }
 0x61b   :  { %v4997_v30 = vpop.eup %4996 }
 0x61c   :  { %v5640_v31 = vmul.f32 %v4997_v30, %v5583_v37 }
 0x61e   :  { %v3263_v32 = vpack.c.bf16 %v5640_v31, %v5640_v31 }
 0x620   :  { %3265 = vrot.lane.b32.xlu0 %v3263_v32, %s5274_s25 }
 0x621   :  { %v4999_v33 = vpop.eup %4998 }
 0x622   :  { %v2689_v34 = vmul.f32 %v4999_v33, %v2687_v24 }
 0x624   :  { %2747 = vperm.xlu0 %4469, %v5588_v44   ;;  %v2691_v38 = vsel %vm2690_vm7, %v2687_v24, %v2689_v34 }
 0x625   :  { %v2694_v39 = vsel %vm2692_vm8, %v2693_v36, %v2691_v38 }
 0x626   :  { %v2695_v40 = vsub.f32 %v2694_v39, %v2674_v35 }
 0x628   :  { %4472 = vset.pattern.permute.xlu0 %v5294_v41  ;;  %v4255_v37 = vadd.f32 -0.1, %v2695_v40 }
 0x629   :  { %2870 = vperm.xlu0 %4472, %v5588_v44  }
 0x62a   :  { %v3074_v45 = vpack.c.bf16 %v4255_v37, %v4255_v37 }
 0x62c   :  { %4259 = vmatmul.mubr.msk.bf16.vlgmr.msra.gmra.mxu1 %vm2607_vm3, %v3074_v45 }
 0x62d   :  { %4475 = vset.pattern.permute.xlu0 %v5295_v49  ;;  %3234 = vmatpush1.bf16.msra.mxu1 %v3214_v46 }
 0x62e   :  { %2993 = vperm.xlu0 %4475, %v5588_v44   ;;  %3251 = vmatprep.mubr.bf16.mxu1 %v5270_v0 }
 0x62f   :  { %4274 = vmatprep.subr.msk.bf16.mxu1 %vm2611_vm1, %v4273_v48 }
 0x632   :  { %4478 = vset.pattern.permute.xlu0 %v5296_v51 }
 0x633   :  { %2793 = vperm.xlu0 %4478, %v5588_v44  }
 0x634   :  { %4268 = vmatmul.mubr.msk.bf16.vlgmr.msra.gmra.mxu1 %vm2667_vm5, %v3199_v53 }
 0x635   :  { %3361 = vmatpush1.bf16.msra.mxu1 %v3341_v52  ;;  %3378 = vmatprep.mubr.bf16.mxu1 %v5270_v0  ;;  %v2789_v0 = vpop.permute.xlu1 %2788 }
 0x636   :  { %v2791_v58 = vsub.f32 %v5588_v44, %v2789_v0  ;;  %v4927_v0 = vld [vmem:[#allocation15 + $0x60] ss:$8 sps:$4 sm:$0xff]  }
 0x637   :  { %4481 = vset.pattern.permute.xlu0 %v5297_v6 }
 0x638   :  { %2916 = vperm.xlu0 %4481, %v5588_v44   ;;  %v2798_v60 = vmul.f32 %v2791_v58, %v2791_v58  ;;  %v4932_v58 = vld [vmem:[#allocation15 + $0x54] ss:$8 sps:$4 sm:$0xff]  }
 0x639   :  { %v2830_v61 = vpop.permute.xlu1 %2829 }
 0x63a   :  { %v2832_v9 = vsub.f32 %v5588_v44, %v2830_v61  ;;  %v4933_v61 = vld [vmem:[#allocation15 + $0x40] ss:$8 sps:$4 sm:$0xff]  }
 0x63c   :  { %3039 = vrot.lane.b32.xlu0 %v5020_v55, %s5264_s2  ;;  %4275 = vmatmul.mubr.msk.bf16.vlgmr.msra.gmra.mxu1 %vm2607_vm3, %v3331_v54  ;;  %v2839_v18 = vmul.f32 %v2832_v9, %v2832_v9  ;;  %v4924_v55 = vld [vmem:[#allocation15 + $0x70] ss:$8 sps:$4 sm:$0xff]  }
 0x63d   :  { %4485 = vset.pattern.permute.xlu0 %v5298_v56  ;;  %v2912_v63 = vpop.permute.xlu1 %2911  ;;  %v4926_v56 = vld [vmem:[#allocation15 + $0x74] ss:$8 sps:$4 sm:$0xff]  }
 0x63e   :  { %v2914_v19 = vsub.f32 %v5588_v44, %v2912_v63  ;;  %3649 = vmatprep.subr.bf16.mxu0 %v4926_v56  ;;  %v4938_v63 = vld [vmem:[#allocation15 + $0x34] ss:$8 sps:$4 sm:$0xff]  }
 0x640   :  { %2742 = vperm.xlu0 %4485, %v5588_v44   ;;  %v2921_v23 = vmul.f32 %v2914_v19, %v2914_v19 }
 0x641   :  { %v2953_v47 = vpop.permute.xlu1 %2952 }
 0x642   :  { %v2955_v20 = vsub.f32 %v5588_v44, %v2953_v47 }
 0x644   :  { %4488 = vset.pattern.permute.xlu0 %v5299_v57  ;;  %v2962_v26 = vmul.f32 %v2955_v20, %v2955_v20  ;;  %v4929_v57 = vld [vmem:[#allocation15 + $0x64] ss:$8 sps:$4 sm:$0xff]  }
 0x645   :  { %2865 = vperm.xlu0 %4488, %v5588_v44   ;;  %v2712_v42 = vpop.permute.xlu1 %2711 }
 0x646   :  { %v2714_v24 = vsub.f32 %v5588_v44, %v2712_v42 }
 0x648   :  { %v2722_v32 = vmul.f32 %v2714_v24, %v2714_v24 }
 0x649   :  { %4491 = vset.pattern.permute.xlu0 %v5300_v59  ;;  %v2753_v2 = vpop.permute.xlu1 %2752  ;;  %v4930_v59 = vld [vmem:[#allocation15 + $0x50] ss:$8 sps:$4 sm:$0xff]  }
 0x64a   :  { %2988 = vperm.xlu0 %4491, %v5588_v44   ;;  %v2755_v28 = vsub.f32 %v5588_v44, %v2753_v2 }
 0x64c   :  { %v2763_v35 = vmul.f32 %v2755_v28, %v2755_v28 }
 0x64d   :  { %v2835_v15 = vpop.permute.xlu1 %2834 }
 0x64e   :  { %2800 = vrot.lane.b32.xlu0 %v2798_v60, %s5278_s9  ;;  %v2837_v36 = vsub.f32 %v5588_v44, %v2835_v15  ;;  %v4935_v60 = vld [vmem:[#allocation15 + $0x44] ss:$8 sps:$4 sm:$0xff]  }
 0x64f   :  { %4492 = vset.pattern.permute.xlu0 %v5289_v3 }
 0x650   :  { %v2845_v41 = vmul.f32 %v2837_v36, %v2837_v36 }
 0x651   :  { %v2876_v27 = vpop.permute.xlu1 %2875 }
 0x652   :  { %v2878_v38 = vsub.f32 %v5588_v44, %v2876_v27 }
 0x654   :  { %v2886_v43 = vmul.f32 %v2878_v38, %v2878_v38 }
 0x655   :  { %v2958_v34 = vpop.permute.xlu1 %2957 }
 0x656   :  { %v2960_v45 = vsub.f32 %v5588_v44, %v2958_v34 }
 0x658   :  { %v2968_v51 = vmul.f32 %v2960_v45, %v2960_v45 }
 0x659   :  { %v2999_v46 = vpop.permute.xlu1 %2998 }
 0x65a   :  { %v3001_v49 = vsub.f32 %v5588_v44, %v2999_v46 }
 0x65c   :  { %v3009_v53 = vmul.f32 %v3001_v49, %v3001_v49 }
 0x692   :  { %v3266_v1 = vpop.permute.xlu0 %3265 }
 0x693   :  { %4271 = vmatmul.mubr.msk.bf16.vlgmr.msra.gmra.mxu0 %vm2667_vm5, %v3266_v1 }
 0x694   :  { %3650 = vmatpush1.bf16.msra.mxu0 %v4924_v55 }
 0x695   :  { %3651 = vmatprep.subr.bf16.mxu0 %v4929_v57 }
 0x698   :  { %3652 = vmatpush1.bf16.msra.mxu0 %v4927_v0 }
 0x699   :  { %3653 = vmatprep.subr.bf16.mxu0 %v4932_v58 }
 0x69c   :  { %3654 = vmatpush1.bf16.msra.mxu0 %v4930_v59 }
 0x69d   :  { %3655 = vmatprep.subr.bf16.mxu0 %v4935_v60 }
 0x69f   :  { %v2748_v5 = vpop.permute.xlu0 %2747 }
 0x6a0   :  { %v2750_v62 = vsub.f32 %v5588_v44, %v2748_v5  ;;  %3656 = vmatpush1.bf16.msra.mxu0 %v4933_v61 }
 0x6a1   :  { %3657 = vmatprep.subr.bf16.mxu0 %v4938_v63 }
 0x6a2   :  { %v2757_v10 = vmul.f32 %v2750_v62, %v2750_v62 }
 0x6a4   :  { %2759 = vrot.lane.b32.xlu1 %v2757_v10, %s5278_s9  ;;  %v2871_v11 = vpop.permute.xlu0 %2870 }
 0x6a5   :  { %v2873_v3 = vsub.f32 %v5588_v44, %v2871_v11  ;;  %v2702_v11 = vpop.permute.xlu1 %2701 }
 0x6a7   :  { %v2880_v21 = vmul.f32 %v2873_v3, %v2873_v3 }
 0x6a8   :  { %2841 = vrot.lane.b32.xlu1 %v2839_v18, %s5278_s9 }
 0x6a9   :  { %2882 = vrot.lane.b32.xlu0 %v2880_v21, %s5278_s9  ;;  %v2994_v22 = vpop.permute.xlu0 %2993  ;;  %v2784_v20 = vpop.permute.xlu1 %2783 }
 0x6aa   :  { %v2996_v25 = vsub.f32 %v5588_v44, %v2994_v22 }
 0x6ac   :  { %2923 = vrot.lane.b32.xlu1 %v2921_v23, %s5278_s9  ;;  %v3003_v29 = vmul.f32 %v2996_v25, %v2996_v25 }
 0x6ad   :  { %2964 = vrot.lane.b32.xlu0 %v2962_v26, %s5278_s9  ;;  %v2825_v25 = vpop.permute.xlu1 %2824 }
 0x6ae   :  { %v2794_v30 = vpop.permute.xlu0 %2793  ;;  %v2827_v45 = vsub.f32 %v5588_v44, %v2825_v25 }
 0x6af   :  { %v2796_v33 = vsub.f32 %v5588_v44, %v2794_v30 }
 0x6b0   :  { %3005 = vrot.lane.b32.xlu1 %v3003_v29, %s5278_s9 }
 0x6b1   :  { %2724 = vrot.lane.b32.xlu0 %v2722_v32, %s5276_s26  ;;  %v2804_v39 = vmul.f32 %v2796_v33, %v2796_v33  ;;  %v2907_v24 = vpop.permute.xlu1 %2906 }
 0x6b2   :  { %v2909_v55 = vsub.f32 %v5588_v44, %v2907_v24  ;;  %v2860_v24 = vsub.s32 7, %v5430_v12 }
 0x6b3   :  { %v2917_v40 = vpop.permute.xlu0 %2916 }
 0x6b4   :  { %2765 = vrot.lane.b32.xlu1 %v2763_v35, %s5276_s26  ;;  %v2919_v37 = vsub.f32 %v5588_v44, %v2917_v40  ;;  %v2704_v35 = vsub.f32 %v5588_v44, %v2702_v11 }
 0x6b5   :  { %2806 = vrot.lane.b32.xlu0 %v2804_v39, %s5276_s26 }
 0x6b6   :  { %v2927_v50 = vmul.f32 %v2919_v37, %v2919_v37  ;;  %v2715_v40 = vmul.f32 %v2704_v35, %v2704_v35 }
 0x6b7   :  { %v3040_v48 = vpop.permute.xlu0 %3039 }
 0x6b8   :  { %2847 = vrot.lane.b32.xlu1 %v2845_v41, %s5276_s26  ;;  %v3042_v52 = vsub.f32 %v5588_v44, %v3040_v48  ;;  %v3058_v54 = vmul.f32 %v3040_v48, %v5640_v31  ;;  %v4936_v31 = vld [vmem:[#allocation15 + $0x30] ss:$8 sps:$4 sm:$0xff]   ;;  %v2786_v41 = vsub.f32 %v5588_v44, %v2784_v20 }
 0x6b9   :  { %2888 = vrot.lane.b32.xlu0 %v2886_v43, %s5276_s26  ;;  %3658 = vmatpush1.bf16.msra.mxu0 %v4936_v31  ;;  %v2920_v31 = vmul.f32 %v2909_v55, %v2909_v55 }
 0x6ba   :  { %v3043_v6 = vmul.f32 %v3042_v52, %v3042_v52  ;;  %v2797_v49 = vmul.f32 %v2786_v41, %v2786_v41 }
 0x6bc   :  { %2929 = vrot.lane.b32.xlu1 %v2927_v50, %s5276_s26 }
 0x6bd   :  { %2970 = vrot.lane.b32.xlu0 %v2968_v51, %s5276_s26 }
 0x6c0   :  { %3011 = vrot.lane.b32.xlu1 %v3009_v53, %s5276_s26 }
 0x6c1   :  { %3045 = vrot.lane.b32.xlu0 %v3043_v6, %s5277_s4 }
 0x6c4   :  { %3060 = vrot.lane.b32.xlu1 %v3058_v54, %s5274_s25  ;;  %v2838_v54 = vmul.f32 %v2827_v45, %v2827_v45 }
 0x6ec   :  { %v3123_v1 = vpop.f32.mrf.mxu1 }
 0x6ed   :  { %v3190_v5 = vadd.f32 %v5628_v7, %v3123_v1  ;;  %v2743_v7 = vpop.permute.xlu0 %2742 }
 0x6ee   :  { %v3125_v47 = vpop.f32.mrf.mxu1  ;;  %v2745_v38 = vsub.f32 %v5588_v44, %v2743_v7  ;;  %v2819_v7 = vsub.s32 6, %v5430_v12 }
 0x6ef   :  { %v3192_v9 = vadd.f32 %v5630_v8, %v3125_v47  ;;  %v2948_v8 = vpop.permute.xlu1 %2947 }
 0x6f0   :  { %v3127_v42 = vpop.f32.mrf.mxu1  ;;  %v2756_v46 = vmul.f32 %v2745_v38, %v2745_v38  ;;  %v2950_v0 = vsub.f32 %v5588_v44, %v2948_v8 }
 0x6f1   :  { %v2866_v27 = vpop.permute.xlu0 %2865 }
 0x6f2   :  { %v3128_v2 = vpop.f32.mrf.mxu1  ;;  %v2868_v50 = vsub.f32 %v5588_v44, %v2866_v27 }
 0x6f3   :  { %v2719_v29 = vpop.permute.xlu1 %2718  ;;  %v2961_v2 = vmul.f32 %v2950_v0, %v2950_v0 }
 0x6f4   :  { %v3253_v62 = vpop.f32.mrf.mxu1  ;;  %v2721_v37 = vadd.f32 %v2719_v29, %v2715_v40  ;;  %v2879_v58 = vmul.f32 %v2868_v50, %v2868_v50 }
 0x6f5   :  { %v5704_v10 = vadd.f32 %v3253_v62, %v3190_v5  ;;  %v2989_v28 = vpop.permute.xlu0 %2988 }
 0x6f6   :  { %v3255_v15 = vpop.f32.mrf.mxu1  ;;  %v2991_v1 = vsub.f32 %v5588_v44, %v2989_v28  ;;  %v2697_v28 = vld [vmem:[#allocation18] sm:$0xf0] }
 0x6f7   :  { %v5706_v3 = vadd.f32 %v3255_v15, %v3192_v9  ;;  %v5755_v38 = vrot.slane %v2697_v28, %v2819_v7 }
 0x6f8   :  { %v3257_v18 = vpop.f32.mrf.mxu1  ;;  %v3002_v15 = vmul.f32 %v2991_v1, %v2991_v1 }
 0x6f9   :  { %v2801_v32 = vpop.permute.xlu0 %2800 }
 0x6fa   :  { %v3258_v19 = vpop.f32.mrf.mxu1  ;;  %v2803_v53 = vadd.f32 %v2801_v32, %v2797_v49 }
 0x6fc   :  { %v5708_v21 = vpop.f32.mrf.mxu1 }
 0x6fe   :  { %v5710_v22 = vpop.f32.mrf.mxu1 }
 0x700   :  { %v3384_v23 = vpop.f32.mrf.mxu1 }
 0x701   :  { %v2737_v23 = vsub.s32 4, %v5430_v12 }
 0x702   :  { %v3385_v26 = vpop.f32.mrf.mxu1 }
 0x703   :  { %v2778_v26 = vsub.s32 5, %v5430_v12  ;;  %v5751_v35 = vrot.slane %v2697_v28, %v2737_v23  ;;  %v5757_v12 = vrot.slane %v2697_v28, %v2860_v24 }
 0x716   :  { %v2760_v30 = vpop.permute.xlu1 %2759 }
 0x717   :  { %v2762_v52 = vadd.f32 %v2760_v30, %v2756_v46  ;;  %v5748_v30 = vld [vmem:[#allocation18 + $0x10] sm:$0xf] }
 0x718   :  { %v2902_v41 = vrot.slane %v5748_v30, %v5433_v13  ;;  %v3025_v46 = vrot.slane %v5748_v30, %v5442_v17 }
 0x71a   :  { %v2842_v33 = vpop.permute.xlu1 %2841 }
 0x71b   :  { %v2883_v34 = vpop.permute.xlu0 %2882  ;;  %v2844_v60 = vadd.f32 %v2842_v33, %v2838_v54 }
 0x71c   :  { %v2885_v61 = vadd.f32 %v2883_v34, %v2879_v58 }
 0x71e   :  { %v2924_v36 = vpop.permute.xlu1 %2923 }
 0x71f   :  { %v2965_v39 = vpop.permute.xlu0 %2964  ;;  %v2926_v62 = vadd.f32 %v2924_v36, %v2920_v31  ;;  %v5753_v36 = vrot.slane %v2697_v28, %v2778_v26 }
 0x720   :  { %v2967_v9 = vadd.f32 %v2965_v39, %v2961_v2  ;;  %v4941_v2 = vld [vmem:[#allocation15 + $0x24] ss:$8 sps:$4 sm:$0xff]  }
 0x721   :  { %3659 = vmatprep.subr.bf16.mxu0 %v4941_v2 }
 0x722   :  { %v3006_v43 = vpop.permute.xlu1 %3005 }
 0x723   :  { %v2725_v48 = vpop.permute.xlu0 %2724  ;;  %v3008_v44 = vadd.f32 %v3006_v43, %v3002_v15  ;;  %v2984_v43 = vrot.slane %v5748_v30, %v5436_v14 }
 0x724   :  { %v5717_v51 = vadd.f32 %v2725_v48, %v2721_v37  ;;  %v2943_v37 = vrot.slane %v5748_v30, %v5439_v16  ;;  %v4951_v30 = vld [vmem:[#allocation15 + $0xe0] ss:$8 sps:$4 sm:$0xff]  }
 0x726   :  { %v2766_v6 = vpop.permute.xlu1 %2765  ;;  %5000 = vrsqrt.f32 %v5717_v51  ;;  %vm2730_vm9 = vcmp.eq.f32.partialorder %v5717_v51, inf  ;;  %vm2732_vm10 = vcmp.eq.f32.partialorder %v5717_v51, 0.0  ;;  %v2733_v48 = vand.u32 2147483648, %v5717_v51 }
 0x727   :  { %v5720_v56 = vadd.f32 %v2766_v6, %v2762_v52  ;;  %v2807_v57 = vpop.permute.xlu0 %2806 }
 0x728   :  { %v5724_v59 = vadd.f32 %v2807_v57, %v2803_v53 }
 0x729   :  { %5002 = vrsqrt.f32 %v5720_v56  ;;  %vm2771_vm11 = vcmp.eq.f32.partialorder %v5720_v56, inf  ;;  %vm2773_vm12 = vcmp.eq.f32.partialorder %v5720_v56, 0.0  ;;  %v2774_v53 = vand.u32 2147483648, %v5720_v56 }
 0x72a   :  { %5004 = vrsqrt.f32 %v5724_v59  ;;  %v2848_v63 = vpop.permute.xlu1 %2847  ;;  %vm2812_vm13 = vcmp.eq.f32.partialorder %v5724_v59, inf  ;;  %vm2814_vm14 = vcmp.eq.f32.partialorder %v5724_v59, 0.0  ;;  %v2815_v54 = vand.u32 2147483648, %v5724_v59 }
 0x72b   :  { %v5729_v47 = vadd.f32 %v2848_v63, %v2844_v60  ;;  %v2889_v42 = vpop.permute.xlu0 %2888 }
 0x72c   :  { %v5731_v5 = vadd.f32 %v2889_v42, %v2885_v61 }
 0x72d   :  { %5006 = vrsqrt.f32 %v5729_v47  ;;  %vm2853_vm15 = vcmp.eq.f32.partialorder %v5729_v47, inf  ;;  %vm2855_vm0 = vcmp.eq.f32.partialorder %v5729_v47, 0.0  ;;  %v2856_v0 = vand.u32 2147483648, %v5729_v47 }
 0x72e   :  { %5008 = vrsqrt.f32 %v5731_v5  ;;  %v2930_v11 = vpop.permute.xlu1 %2929  ;;  %vm2894_vm1 = vcmp.eq.f32.partialorder %v5731_v5, inf  ;;  %vm2896_vm4 = vcmp.eq.f32.partialorder %v5731_v5, 0.0  ;;  %v2897_v63 = vand.u32 2147483648, %v5731_v5 }
 0x72f   :  { %v5735_v18 = vadd.f32 %v2930_v11, %v2926_v62  ;;  %v2971_v19 = vpop.permute.xlu0 %2970 }
 0x730   :  { %v5737_v20 = vadd.f32 %v2971_v19, %v2967_v9  ;;  %v4939_v19 = vld [vmem:[#allocation15 + $0x20] ss:$8 sps:$4 sm:$0xff]  }
 0x731   :  { %5010 = vrsqrt.f32 %v5735_v18  ;;  %vm2937_vm6 = vcmp.eq.f32.partialorder %v5735_v18, 0.0  ;;  %v2938_v15 = vand.u32 2147483648, %v5735_v18  ;;  %3660 = vmatpush1.bf16.msra.mxu0 %v4939_v19 }
 0x732   :  { %5012 = vrsqrt.f32 %v5737_v20  ;;  %v3012_v25 = vpop.permute.xlu1 %3011  ;;  %vm2976_vm7 = vcmp.eq.f32.partialorder %v5737_v20, inf  ;;  %vm2978_vm8 = vcmp.eq.f32.partialorder %v5737_v20, 0.0  ;;  %v2979_v7 = vand.u32 2147483648, %v5737_v20 }
 0x733   :  { %v5745_v27 = vadd.f32 %v3012_v25, %v3008_v44  ;;  %v3046_v8 = vpop.permute.xlu0 %3045  ;;  %v5001_v32 = vpop.eup %5000 }
 0x734   :  { %v3048_v29 = vsel %vm2667_vm5, %v3046_v8, 0.0  ;;  %v2729_v52 = vmul.f32 %v5001_v32, %v5717_v51 }
 0x735   :  { %5014 = vrsqrt.f32 %v5745_v27  ;;  %3049 = vadd.xlane.f32.xlu0 %v3048_v29  ;;  %v4944_v29 = vld [vmem:[#allocation15 + $0x14] ss:$8 sps:$4 sm:$0xff]  }
 0x736   :  { %v5003_v33 = vpop.eup %5002  ;;  %v3061_v34 = vpop.permute.xlu1 %3060  ;;  %v2731_v1 = vsel %vm2730_vm9, %v5717_v51, %v2729_v52  ;;  %vm3017_vm9 = vcmp.eq.f32.partialorder %v5745_v27, inf  ;;  %3661 = vmatprep.subr.bf16.mxu0 %v4944_v29  ;;  %v4945_v52 = vld [vmem:[#allocation15] ss:$8 sps:$4 sm:$0xff]  }
 0x737   :  { %v5005_v39 = vpop.eup %5004  ;;  %v3063_v40 = vsel %vm2667_vm5, %v3061_v34, 0.0  ;;  %v2770_v45 = vmul.f32 %v5003_v33, %v5720_v56  ;;  %vm2935_vm5 = vcmp.eq.f32.partialorder %v5735_v18, inf  ;;  %v4978_v29 = vld [vmem:[%s5922_s11 + $0x60] sm:$0xff]  }
 0x738   :  { %3064 = vadd.xlane.f32.xlu1 %v3063_v40  ;;  %v2811_v49 = vmul.f32 %v5005_v39, %v5724_v59  ;;  %v4942_v39 = vld [vmem:[#allocation15 + $0x10] ss:$8 sps:$4 sm:$0xff]  }
 0x739   :  { %v2772_v57 = vsel %vm2771_vm11, %v5720_v56, %v2770_v45  ;;  %v2734_v56 = vsel %vm2732_vm10, %v2733_v48, %v2731_v1  ;;  %vm3019_vm10 = vcmp.eq.f32.partialorder %v5745_v27, 0.0  ;;  %3662 = vmatpush1.bf16.msra.mxu0 %v4942_v39  ;;  %v4954_v1 = vld [vmem:[#allocation15 + $0xd0] ss:$8 sps:$4 sm:$0xff]  }
 0x73a   :  { %v5007_v50 = vpop.eup %5006  ;;  %v2813_v60 = vsel %vm2812_vm13, %v5724_v59, %v2811_v49  ;;  %v2775_v9 = vsel %vm2773_vm12, %v2774_v53, %v2772_v57  ;;  %v2739_v40 = vsub.f32 %v5751_v35, %v2734_v56  ;;  %v4963_v56 = vld [vmem:[#allocation15 + $0xa0] ss:$8 sps:$4 sm:$0xff]  }
 0x73b   :  { %v5009_v6 = vpop.eup %5008  ;;  %v2852_v55 = vmul.f32 %v5007_v50, %v5729_v47  ;;  %v2816_v44 = vsel %vm2814_vm14, %v2815_v54, %v2813_v60  ;;  %v2780_v24 = vsub.f32 %v5753_v36, %v2775_v9  ;;  %v4957_v9 = vld [vmem:[#allocation15 + $0xc0] ss:$8 sps:$4 sm:$0xff]  }
 0x73c   :  { %v2893_v58 = vmul.f32 %v5009_v6, %v5731_v5  ;;  %v2821_v32 = vsub.f32 %v5755_v38, %v2816_v44  ;;  %v2740_v53 = vmax.f32 %v2739_v40, 0.0  ;;  %v4960_v44 = vld [vmem:[#allocation15 + $0xb0] ss:$8 sps:$4 sm:$0xff]  }
 0x73d   :  { %v2854_v61 = vsel %vm2853_vm15, %v5729_v47, %v2852_v55  ;;  %v2781_v45 = vmax.f32 %v2780_v24, 0.0  ;;  %v4974_v24 = vld [vmem:[%s5922_s11 + $0x70] sm:$0xff]  }
 0x73e   :  { %v5011_v31 = vpop.eup %5010  ;;  %v2857_v42 = vsel %vm2855_vm0, %v2856_v0, %v2854_v61  ;;  %v2895_v47 = vsel %vm2894_vm1, %v5731_v5, %v2893_v58  ;;  %v3020_v5 = vand.u32 2147483648, %v5745_v27  ;;  %v2822_v48 = vmax.f32 %v2821_v32, 0.0  ;;  %v4948_v0 = vld [vmem:[#allocation15 + $0xf0] ss:$8 sps:$4 sm:$0xff]   ;;  %v4953_v61 = vld [vmem:[#allocation15 + $0xe4] ss:$8 sps:$4 sm:$0xff]  }
 0x73f   :  { %v5013_v62 = vpop.eup %5012  ;;  %v2934_v11 = vmul.f32 %v5011_v31, %v5735_v18  ;;  %v2862_v25 = vsub.f32 %v5757_v12, %v2857_v42  ;;  %v2898_v8 = vsel %vm2896_vm4, %v2897_v63, %v2895_v47  ;;  %v4956_v63 = vld [vmem:[#allocation15 + $0xd4] ss:$8 sps:$4 sm:$0xff]   ;;  %v4959_v42 = vld [vmem:[#allocation15 + $0xc4] ss:$8 sps:$4 sm:$0xff]  }
 0x740   :  { %v2975_v23 = vmul.f32 %v5013_v62, %v5737_v20  ;;  %v4979_v32 = vld [vmem:[%s5922_s11 + $0x20] sm:$0xff]  }
 0x741   :  { %v2936_v26 = vsel %vm2935_vm5, %v5735_v18, %v2934_v11  ;;  %v2863_v18 = vmax.f32 %v2862_v25, 0.0  ;;  %v4962_v11 = vld [vmem:[#allocation15 + $0xb4] ss:$8 sps:$4 sm:$0xff]   ;;  %v4966_v25 = vld [vmem:[#allocation15 + $0x90] ss:$8 sps:$4 sm:$0xff]  }
 0x742   :  { %v5015_v59 = vpop.eup %5014  ;;  %v2939_v28 = vsel %vm2937_vm6, %v2938_v15, %v2936_v26  ;;  %v2977_v51 = vsel %vm2976_vm7, %v5737_v20, %v2975_v23  ;;  %v2903_v20 = vsub.f32 %v2902_v41, %v2898_v8  ;;  %v4965_v23 = vld [vmem:[#allocation15 + $0xa4] ss:$8 sps:$4 sm:$0xff]   ;;  %v4969_v26 = vld [vmem:[#allocation15 + $0x80] ss:$8 sps:$4 sm:$0xff]  }
 0x743   :  { %v2944_v33 = vsub.f32 %v2943_v37, %v2939_v28  ;;  %v2980_v34 = vsel %vm2978_vm8, %v2979_v7, %v2977_v51  ;;  %v3016_v12 = vmul.f32 %v5015_v59, %v5745_v27  ;;  %v4947_v37 = vld [vmem:[#allocation15 + $0x4] ss:$8 sps:$4 sm:$0xff]   ;;  %v3029_v14 = vmax.f32 %v2822_v48, %v2863_v18  ;;  %v4973_v59 = vld [vmem:[%s5922_s11 + $0x38] sm:$0xff]  }
 0x744   :  { %v2985_v36 = vsub.f32 %v2984_v43, %v2980_v34  ;;  %3663 = vmatprep.subr.bf16.mxu0 %v4947_v37  ;;  %v2904_v41 = vmax.f32 %v2903_v20, 0.0  ;;  %v4950_v43 = vld [vmem:[#allocation15 + $0xf4] ss:$8 sps:$4 sm:$0xff]   ;;  %v4971_v7 = vld [vmem:[#allocation15 + $0x84] ss:$8 sps:$4 sm:$0xff]  }
 0x745   :  { %v3018_v38 = vsel %vm3017_vm9, %v5745_v27, %v3016_v12  ;;  %v2945_v49 = vmax.f32 %v2944_v33, 0.0  ;;  %3664 = vmatpush1.bf16.msra.mxu0 %v4945_v52  ;;  %v3028_v27 = vmax.f32 %v2740_v53, %v2781_v45  ;;  %v4975_v8 = vld [vmem:[%s5922_s11 + $0x30] sm:$0xff]   ;;  %v4976_v28 = vld [vmem:[%s5922_s11 + $0x68] sm:$0xff]   ;;  %v4980_v33 = vld [vmem:[%s5922_s11 + $0x58] sm:$0xff]  }
 0x746   :  { %v3021_v35 = vsel %vm3019_vm10, %v3020_v5, %v3018_v38  ;;  %v2986_v6 = vmax.f32 %v2985_v36, 0.0  ;;  %3665 = vmatprep.subr.bf16.mxu0 %v4950_v43  ;;  %v4977_v51 = vld [vmem:[%s5922_s11 + $0x28] sm:$0xff]   ;;  %v4981_v34 = vld [vmem:[%s5922_s11 + $0x18] sm:$0xff]  }
 0x747   :  { %v3026_v50 = vsub.f32 %v3025_v46, %v3021_v35  ;;  %v3030_v55 = vmax.f32 %v2904_v41, %v2945_v49  ;;  %v3032_v58 = vmax.f32 %v3028_v27, %v3029_v14  ;;  %v3390_v38 = vld [vmem:[#allocation18 + $0x17] ss:$8 sm:$0x3]  ;;  %v3407_v35 = vld [vmem:[#allocation18 + $0x20] ss:$8 sm:$0x3] }
 0x748   :  { %v3395_v48 = vrot.slane %v3390_v38, %v5433_v13  ;;  %v3399_v49 = vrot.slane %v3390_v38, %v5439_v16  ;;  %v3416_v52 = vrot.slane %v3407_v35, %v5439_v16  ;;  %v3424_v41 = vld [vmem:[#allocation18 + $0x14] ss:$8 sm:$0x3] }
 0x749   :  { %v3027_v54 = vmax.f32 %v3026_v50, 0.0  ;;  %3666 = vmatpush2.bf16.msra.mxu0 %v4948_v0  ;;  %v3412_v50 = vrot.slane %v3407_v35, %v5433_v13 }
 0x74a   :  { %3667 = vmatprep.subr.bf16.mxu0 %v4953_v61 }
 0x74b   :  { %v3031_v57 = vmax.f32 %v2986_v6, %v3027_v54 }
 0x74d   :  { %v3033_v60 = vmax.f32 %v3030_v55, %v3031_v57  ;;  %3668 = vmatpush2.bf16.msra.mxu0 %v4951_v30  ;;  %v3429_v55 = vrot.slane %v3424_v41, %v5433_v13  ;;  %v3433_v57 = vrot.slane %v3424_v41, %v5439_v16 }
 0x74e   :  { %3669 = vmatprep.subr.bf16.mxu0 %v4956_v63 }
 0x74f   :  { %v3034_v17 = vmax.f32 %v3032_v58, %v3033_v60 }
 0x751   :  { %v3035_v46 = vsel %vm2607_vm3, %v3034_v17, -inf  ;;  %3670 = vmatpush2.bf16.msra.mxu0 %v4954_v1 }
 0x752   :  { %3036 = vmax.xlane.f32.xlu0 %v3035_v46  ;;  %3671 = vmatprep.subr.bf16.mxu0 %v4959_v42 }
 0x753   :  { %v3319_v31 = vpop.f32.mrf.mxu0 }
 0x754   :  { %v5837_v2 = vadd.f32 %v3319_v31, %v5704_v10  ;;  %v4968_v10 = vld [vmem:[#allocation15 + $0x94] ss:$8 sps:$4 sm:$0xff]  }
 0x755   :  { %v3321_v62 = vpop.f32.mrf.mxu0  ;;  %3672 = vmatpush2.bf16.msra.mxu0 %v4957_v9  ;;  %v4983_v9 = vld [vmem:[%s5922_s11 + $0x10] sm:$0xff]  }
 0x756   :  { %v5840_v47 = vadd.f32 %v3321_v62, %v5706_v3  ;;  %3673 = vmatprep.subr.bf16.mxu0 %v4962_v11  ;;  %v4972_v3 = vld [vmem:[%s5922_s11 + $0x78] sm:$0xff]   ;;  %v3387_v54 = vadd.f32 %v5708_v21, %v5837_v2  ;;  %v4982_v62 = vld [vmem:[%s5922_s11 + $0x50] sm:$0xff]   ;;  %v4985_v11 = vld [vmem:[%s5922_s11 + $0x8] sm:$0xff]  }
 0x757   :  { %v3323_v15 = vpop.f32.mrf.mxu0  ;;  %4375 = vmatprep.subr.bf16.mxu1 %v4972_v3 }
 0x758   :  { %4376 = vmatpush3.bf16.msra.mxu1 %v4973_v59  ;;  %v3388_v14 = vadd.f32 %v5710_v22, %v5840_v47  ;;  %v4984_v47 = vld [vmem:[%s5922_s11 + $0x48] sm:$0xff]   ;;  %v4986_v15 = vld [vmem:[%s5922_s11 + $0x40] sm:$0xff]  }
 0x759   :  { %v3324_v19 = vpop.f32.mrf.mxu0  ;;  %3674 = vmatpush2.bf16.msra.mxu0 %v4960_v44  ;;  %4377 = vmatprep.subr.bf16.mxu1 %v4974_v24  ;;  %v3477_v44 = vld [vmem:[#allocation18 + $0x15] ss:$8 sm:$0x3] }
 0x75a   :  { %3675 = vmatprep.subr.bf16.mxu0 %v4965_v23  ;;  %v4987_v19 = vld [vmem:[%s5922_s11] sm:$0xff]   ;;  %v3482_v23 = vrot.slane %v3477_v44, %v5433_v13  ;;  %v4989_v13 = vld [vmem:[#allocation16 + $0x10] sm:$0xff]  }
 0x75c   :  { %4378 = vmatpush3.bf16.msra.mxu1 %v4975_v8 }
 0x75d   :  { %3676 = vmatpush2.bf16.msra.mxu0 %v4963_v56  ;;  %4379 = vmatprep.subr.bf16.mxu1 %v4976_v28  ;;  %v3486_v56 = vrot.slane %v3477_v44, %v5439_v16  ;;  %v4990_v16 = vld [vmem:[#allocation16 + $0x8] sm:$0xff]  }
 0x75e   :  { %3677 = vmatprep.subr.bf16.mxu0 %v4968_v10 }
 0x760   :  { %4380 = vmatpush3.bf16.msra.mxu1 %v4977_v51 }
 0x761   :  { %3678 = vmatpush2.bf16.msra.mxu0 %v4966_v25  ;;  %4381 = vmatprep.subr.bf16.mxu1 %v4978_v29 }
 0x762   :  { %3679 = vmatprep.subr.bf16.mxu0 %v4971_v7 }
 0x764   :  { %4382 = vmatpush3.bf16.msra.mxu1 %v4979_v32  ;;  %v4988_v32 = vld [vmem:[#allocation16 + $0x18] sm:$0xff]  }
 0x765   :  { %3680 = vmatpush2.bf16.msra.mxu0 %v4969_v26  ;;  %4383 = vmatprep.subr.bf16.mxu1 %v4980_v33 }
 0x768   :  { %4384 = vmatpush3.bf16.msra.mxu1 %v4981_v34  ;;  %v4991_v34 = vld [vmem:[#allocation16] sm:$0xff]  }
 0x769   :  { %4385 = vmatprep.subr.bf16.mxu1 %v4982_v62 }
 0x76c   :  { %4386 = vmatpush3.bf16.msra.mxu1 %v4983_v9 }
 0x76d   :  { %4387 = vmatprep.subr.bf16.mxu1 %v4984_v47 }
 0x770   :  { %4388 = vmatpush3.bf16.msra.mxu1 %v4985_v11 }
 0x771   :  { %4389 = vmatprep.subr.bf16.mxu1 %v4986_v15 }
 0x774   :  { %4390 = vmatpush3.bf16.msra.mxu1 %v4987_v19 }
 0x775   :  { %4408 = vmatprep.subr.bf16.mxu1 %v5271_v4 }
 0x7be   :  { %v3050_v12 = vpop.xlane.xlu0 %3049 }
 0x7bf   :  { %5016 = vrsqrt.f32 %v3050_v12  ;;  %vm3053_vm3 = vcmp.eq.f32.partialorder %v3050_v12, inf  ;;  %v3056_v36 = vand.u32 2147483648, %v3050_v12  ;;  %vm3055_vm11 = vcmp.eq.f32.partialorder %v3050_v12, 0.0 }
 0x7c1   :  { %v3065_v5 = vpop.xlane.xlu1 %3064 }
 0x7c2   :  { %v3066_v20 = vand.u32 2147483647, %v3065_v5 }
 0x7c4   :  { %v3067_v45 = vsub.f32 1.0, %v3066_v20 }
 0x7cc   :  { %v5017_v39 = vpop.eup %5016 }
 0x7cd   :  { %v3052_v40 = vmul.f32 %v5017_v39, %v3050_v12  ;;  %v3728_v39 = vld [vmem:[#allocation18 + $0x16] ss:$0 sm:$0xff] }
 0x7cf   :  { %v3054_v18 = vsel %vm3053_vm3, %v3050_v12, %v3052_v40 }
 0x7d0   :  { %v3057_v37 = vsel %vm3055_vm11, %v3056_v36, %v3054_v18 }
 0x7d1   :  { %v3068_v53 = vadd.f32 %v3067_v45, %v3057_v37  ;;  %v3877_v45 = vld [vmem:[#allocation18 + $0x1e] ss:$0 sm:$0xff] }
 0x7d3   :  { %v3419_v0 = vmul.f32 %v3412_v50, %v3068_v53  ;;  %v3420_v58 = vmul.f32 %v3416_v52, %v3068_v53  ;;  %v3867_v53 = vld [vmem:[#allocation18 + $0x21] ss:$0 sm:$0xff] }
 0x7db   :  { %v3037_v6 = vpop.xlane.xlu0 %3036 }
 0x7dc   :  { %v3402_v43 = vmul.f32 %v3395_v48, %v3037_v6  ;;  %v3403_v27 = vmul.f32 %v3399_v49, %v3037_v6 }
 0x7de   :  { %v3404_v60 = vadd.f32 %v3402_v43, %v3387_v54  ;;  %v3405_v61 = vadd.f32 %v3403_v27, %v3388_v14 }
 0x7e0   :  { %v3421_v17 = vadd.f32 %v3419_v0, %v3404_v60  ;;  %v3422_v30 = vadd.f32 %v3420_v58, %v3405_v61 }
 0x7e2   :  { %v3436_v46 = vadd.f32 %v3429_v55, %v3421_v17  ;;  %v3437_v63 = vadd.f32 %v3433_v57, %v3422_v30 }
 0x7e4   :  { %v3438_v31 = vmax.f32 %v3436_v46, 0.0  ;;  %v3439_v1 = vmax.f32 %v3437_v63, 0.0 }
 0x7e6   :  { %v3440_v21 = vmin.f32 %v3438_v31, 6.0  ;;  %v3441_v42 = vmin.f32 %v3439_v1, 6.0 }
 0x7e8   :  { %v3475_v2 = vpack.c.bf16 %v3441_v42, %v3441_v42  ;;  %v3474_v22 = vpack.c.bf16 %v3440_v21, %v3440_v21 }
 0x7ea   :  { %3681 = vmatprep.mubr.bf16.mxu0 %v3475_v2 }
 0x7eb   :  { %3682 = vmatmul.mubr.bf16.vlgmr.msra.gmra.mxu0 %v3474_v22 }
 0x8ab   :  { %v3683_v10 = vpop.f32.mrf.mxu0 }
 0x8ac   :  { %v3684_v25 = vadd.f32 %v3683_v10, %v3482_v23 }
 0x8ad   :  { %v3685_v26 = vpop.f32.mrf.mxu0 }
 0x8ae   :  { %v3690_v7 = vmax.f32 %v3684_v25, 0.0  ;;  %v3686_v3 = vadd.f32 %v3685_v26, %v3486_v56 }
 0x8af   :  { %v3687_v59 = vpop.f32.mrf.mxu0 }
 0x8b0   :  { %v3691_v24 = vmax.f32 %v3686_v3, 0.0  ;;  %v3692_v8 = vmin.f32 %v3690_v7, 6.0 }
 0x8b1   :  { %v3688_v28 = vpop.f32.mrf.mxu0 }
 0x8b2   :  { %v3693_v51 = vmin.f32 %v3691_v24, 6.0  ;;  %v3726_v33 = vpack.c.bf16 %v3692_v8, %v3692_v8 }
 0x8b4   :  { %v3727_v29 = vpack.c.bf16 %v3693_v51, %v3693_v51 }
 0x8b6   :  { %3857 = vmatprep.mubr.bf16.mxu1 %v3727_v29 }
 0x8b7   :  { %3858 = vmatmul.mubr.bf16.vlgmr.msra.gmra.mxu1 %v3726_v33 }
 0x8b8   :  { %4409 = vmatpush3.bf16.msra.mxu1 %v4988_v32  ;;  %4416 = vmatprep.mubr.msk.bf16.mxu1 %vm5272_vm2, %v5271_v4  ;;  %vm3902_vm2 = vcmask 523264  }
 0x8b9   :  { %4410 = vmatprep.subr.bf16.mxu1 %v5271_v4 }
 0x8bc   :  { %4411 = vmatpush3.bf16.msra.mxu1 %v4989_v13 }
 0x8bd   :  { %4412 = vmatprep.subr.bf16.mxu1 %v5271_v4 }
 0x8c0   :  { %4413 = vmatpush3.bf16.msra.mxu1 %v4990_v16 }
 0x8c1   :  { %4414 = vmatprep.subr.bf16.mxu1 %v5271_v4 }
 0x8c4   :  { %4415 = vmatpush3.bf16.msra.mxu1 %v4991_v34 }
 0x977   :  { %v4391_v12 = vpop.f32.mrf.mxu1 }
 0x979   :  { %v4392_v40 = vpop.f32.mrf.mxu1 }
 0x97a   :  { %v4393_v5 = vadd.f32 %v4392_v40, %v4391_v12 }
 0x97b   :  { %v4394_v18 = vpop.f32.mrf.mxu1 }
 0x97c   :  { %v3860_v20 = vadd.f32 %v4393_v5, %v3728_v39 }
 0x97d   :  { %v4395_v36 = vpop.f32.mrf.mxu1 }
 0x97e   :  { %v3865_v38 = vmax.f32 %v3860_v20, 0.0 }
 0x980   :  { %v3866_v35 = vmin.f32 %v3865_v38, 6.0 }
 0x982   :  { %v3876_v37 = vpack.c.bf16 %v3866_v35, %v3866_v35 }
 0x984   :  { %4417 = vmatmul.mubr.msk.bf16.vlgmr.msra.gmra.mxu1 %vm3902_vm2, %v3876_v37 }
 0xa44   :  { %v3940_v48 = vpop.f32.mrf.mxu1 }
 0xa45   :  { %v3941_v49 = vadd.f32 %v3940_v48, %v3877_v45 }
 0xa46   :  { %v4418_v50 = vpop.f32.mrf.mxu1 }
 0xa47   :  { %5018 = vtanh.f32 %v3941_v49 }
 0xa48   :  { %v3943_v4 = vpop.f32.mrf.mxu1 }
 0xa4a   :  { %v4419_v52 = vpop.f32.mrf.mxu1 }
 0xa54   :  { %v5019_v41 = vpop.eup %5018 }
 0xa55   :  { %v3947_v6 = vmul.f32 %v5019_v41, %v3867_v53 }
 0xa57   :  { %3948 = vst [vmem:[%s5925_s14] sm:$0xff] %v3947_v6 }
 0xa58   :  { %3953 = vsyncpa [#allocation3], 1 }
 0xa59   :  { %3954 = vsyncpa [#allocation5], 1 }
 0xa5a   :  { %3955 = vsyncpa [#allocation8], 1 }
 0xa5b   :  { %3956 = vsyncpa [#allocation11], 1 }
 0xa5c   :  { %3957 = vsyncpa [#allocation14], 1 }
 0xa5d   :  { %3958 = vsyncpa [#allocation17], 1 }

</bundles_post_ra>
